<compile_context>
chip_gen: v6e
topology: v6e:2x2x1
jax: 0.10.0
libtpu: 0.0.40
codegen_flags: <defaults>
</compile_context>

<pallas_src>
import jax
import jax.numpy as jnp
from jax.experimental import pallas as pl
from jax.experimental.pallas import tpu as pltpu

EPS = 1e-5
LANE = 128


def _round_up(x, m):
    return (x + m - 1) // m * m


def _vmem_limit_bytes():
    # Generation-aware scoped-VMEM budget: leave ~8 MiB of headroom for Mosaic
    # internal scratch below the physical capacity (64 MiB/TC on v7x,
    # 128 MiB on v5e/v6e).
    try:
        cap = int(pltpu.get_tpu_info().vmem_capacity_bytes)
    except Exception:
        cap = 64 << 20
    return max(32 << 20, cap - (8 << 20))


# --------------------------- kernels ---------------------------------------

def conv1x1_kernel(x_ref, w_ref, y_ref, s_ref):
    # x_ref: (1, H, W, Cin_p) bf16 | w_ref: (Cin_p, Cmid_p) bf16
    # y_ref: (1, H, W, Cmid_p) f32 | s_ref: (1, 1, Cmid_p) f32 per-tile sums
    _, H, W, Cin = x_ref.shape
    Cmid = w_ref.shape[1]
    x = x_ref[0].reshape(H * W, Cin)
    y = jnp.dot(x, w_ref[...], preferred_element_type=jnp.float32)
    y_ref[0] = y.reshape(H, W, Cmid)
    s_ref[0] = jnp.sum(y, axis=0, keepdims=True)


def bn_relu_conv3x3_kernel(y_in_ref, scale_ref, shift_ref, w_ref,
                           y_out_ref, s_ref, pad_ref):
    # y_in_ref : (1, H, W, Ci) f32   pre-BN conv output of the previous stage
    # scale/shift: (1, Ci) f32       folded BN affine (g*invstd, b - mean*scale)
    # w_ref    : (9, Ci, Co) bf16    3x3 weights, tap-major (kh*3+kw, ci, co)
    # y_out_ref: (1, H, W, Co) f32 | s_ref: (1, 1, Co) f32 per-tile sums
    # pad_ref  : (H+2, W+2, Ci) f32  VMEM halo scratch (frame stays zero)
    _, H, W, Ci = y_in_ref.shape
    Co = w_ref.shape[2]

    scale = scale_ref[...].reshape(1, 1, Ci)
    shift = shift_ref[...].reshape(1, 1, Ci)
    z = jnp.maximum(y_in_ref[0] * scale + shift, 0.0)          # (H, W, Ci) f32

    # Zero only the 1-pixel halo frame; the interior is fully overwritten.
    pad_ref[0:1, :, :] = jnp.zeros((1, W + 2, Ci), jnp.float32)
    pad_ref[H + 1:H + 2, :, :] = jnp.zeros((1, W + 2, Ci), jnp.float32)
    pad_ref[:, 0:1, :] = jnp.zeros((H + 2, 1, Ci), jnp.float32)
    pad_ref[:, W + 1:W + 2, :] = jnp.zeros((H + 2, 1, Ci), jnp.float32)
    pad_ref[1:H + 1, 1:W + 1, :] = z

    # 3x3 conv = 9 accumulated MXU dots (no im2col concatenate temporary).
    acc = jnp.zeros((H * W, Co), jnp.float32)
    for kh in range(3):
        for kw in range(3):
            tap = pad_ref[kh:kh + H, kw:kw + W, :].astype(jnp.bfloat16)
            acc = acc + jnp.dot(tap.reshape(H * W, Ci), w_ref[kh * 3 + kw],
                                preferred_element_type=jnp.float32)

    y_out_ref[0] = acc.reshape(H, W, Co)
    s_ref[0] = jnp.sum(acc, axis=0, keepdims=True)


def bn_residual_relu_kernel(y_ref, scale_ref, shift_ref, x_ref, o_ref):
    # out = relu(bn3(y3) + x0); residual path kept in f32.
    _, H, W, C = y_ref.shape
    scale = scale_ref[...].reshape(1, 1, C)
    shift = shift_ref[...].reshape(1, 1, C)
    o_ref[0] = jnp.maximum(y_ref[0] * scale + shift + x_ref[0], 0.0)


# --------------------------- wrapper ----------------------------------------

def basic_block_large(x_nchw, w1_oihw, w2_oihw, w3_oihw, g1, b1, g2, b2, g3, b3):
    """x_nchw: (N, Cin, H, W) f32, PyTorch OIHW weights.  Returns (N, Cout, H, W) f32."""
    N, Cin, H, W = x_nchw.shape
    Cmid = w1_oihw.shape[0]
    Cout = w3_oihw.shape[0]
    assert Cin == Cout, "identity residual requires in_features == out_features"

    Cin_p = _round_up(Cin, LANE)
    Cmid_p = _round_up(Cmid, LANE)
    Cout_p = _round_up(Cout, LANE)
    assert Cin_p == Cout_p
    P = N * H * W

    # NCHW -> NHWC + zero-pad channels to a lane-dense multiple of 128.
    x_nhwc = jnp.pad(jnp.transpose(x_nchw, (0, 2, 3, 1)),
                     ((0, 0), (0, 0), (0, 0), (0, Cin_p - Cin)))
    x_conv = x_nhwc.astype(jnp.bfloat16)   # bf16 conv path (smaller stage-1 DMA)
    # x_nhwc (f32) stays as the residual path (full-precision skip-add).

    # ---- weight / BN-param packing (cached once in a real model) ----
    w1 = (jnp.zeros((Cin_p, Cmid_p), jnp.float32)
          .at[:Cin, :Cmid].set(jnp.transpose(w1_oihw[:, :, 0, 0], (1, 0)))
          .astype(jnp.bfloat16))

    def pack3x3(w_oihw, ip, op):
        o, i = w_oihw.shape[0], w_oihw.shape[1]
        w = jnp.transpose(w_oihw, (2, 3, 1, 0)).reshape(9, i, o)   # (tap, ci, co)
        return (jnp.zeros((9, ip, op), jnp.float32)
                .at[:, :i, :o].set(w).astype(jnp.bfloat16))

    w2 = pack3x3(w2_oihw, Cmid_p, Cmid_p)
    w3 = pack3x3(w3_oihw, Cmid_p, Cout_p)

    def pack_bn(g, b, cp):
        c = g.shape[0]
        return (jnp.ones((cp,), jnp.float32).at[:c].set(g),
                jnp.zeros((cp,), jnp.float32).at[:c].set(b))

    g1p, b1p = pack_bn(g1, b1, Cmid_p)
    g2p, b2p = pack_bn(g2, b2, Cmid_p)
    g3p, b3p = pack_bn(g3, b3, Cout_p)

    cparams = pltpu.CompilerParams(
        dimension_semantics=("parallel",),
        vmem_limit_bytes=_vmem_limit_bytes())

    def tile_spec(c):
        return pl.BlockSpec((1, H, W, c), lambda b: (b, 0, 0, 0))

    def chan_spec(c):
        return pl.BlockSpec((1, c), lambda b: (0, 0))

    def sums_spec(c):
        return pl.BlockSpec((1, 1, c), lambda b: (b, 0, 0))

    # ---- stage 1: conv1 (1x1 == channel matmul) + per-tile channel sums ----
    y1, s1 = pl.pallas_call(
        conv1x1_kernel,
        grid=(N,),
        in_specs=[tile_spec(Cin_p),
                  pl.BlockSpec((Cin_p, Cmid_p), lambda b: (0, 0))],
        out_specs=(tile_spec(Cmid_p), sums_spec(Cmid_p)),
        out_shape=(jax.ShapeDtypeStruct((N, H, W, Cmid_p), jnp.float32),
                   jax.ShapeDtypeStruct((N, 1, Cmid_p), jnp.float32)),
        compiler_params=cparams,
        cost_estimate=pl.CostEstimate(
            flops=2 * P * Cin_p * Cmid_p, transcendentals=0,
            bytes_accessed=P * Cin_p * 2 + Cin_p * Cmid_p * 2 + P * Cmid_p * 4),
    )(x_conv, w1)

    def bn_fold(y, sums, gamma, beta):
        # Exact training-mode BN: mean from in-kernel partial sums, exact
        # TWO-PASS biased variance from one fused read of y (avoids the
        # E[y^2]-mean^2 cancellation), folded into a per-channel affine.
        mean = jnp.sum(sums, axis=(0, 1)) / P
        var = jnp.mean(jnp.square(y - mean), axis=(0, 1, 2))
        scale = gamma * jax.lax.rsqrt(var + EPS)
        shift = beta - mean * scale
        return scale.reshape(1, -1), shift.reshape(1, -1)

    def conv3x3_stage(y_in, scale, shift, w, ci, co):
        return pl.pallas_call(
            bn_relu_conv3x3_kernel,
            grid=(N,),
            in_specs=[tile_spec(ci), chan_spec(ci), chan_spec(ci),
                      pl.BlockSpec((9, ci, co), lambda b: (0, 0, 0))],
            out_specs=(tile_spec(co), sums_spec(co)),
            out_shape=(jax.ShapeDtypeStruct((N, H, W, co), jnp.float32),
                       jax.ShapeDtypeStruct((N, 1, co), jnp.float32)),
            scratch_shapes=[pltpu.VMEM((H + 2, W + 2, ci), jnp.float32)],
            compiler_params=cparams,
            cost_estimate=pl.CostEstimate(
                flops=2 * P * 9 * ci * co, transcendentals=0,
                bytes_accessed=P * ci * 4 + 9 * ci * co * 2 + P * co * 4),
        )(y_in, scale, shift, w)

    # ---- stage 2: bn1 + relu + conv2 (3x3, pad 1) ----
    scale1, shift1 = bn_fold(y1, s1, g1p, b1p)
    y2, s2 = conv3x3_stage(y1, scale1, shift1, w2, Cmid_p, Cmid_p)

    # ---- stage 3: bn2 + relu + conv3 (3x3, pad 1) ----
    scale2, shift2 = bn_fold(y2, s2, g2p, b2p)
    y3, s3 = conv3x3_stage(y2, scale2, shift2, w3, Cmid_p, Cout_p)

    # ---- stage 4: bn3 + identity residual + relu ----
    scale3, shift3 = bn_fold(y3, s3, g3p, b3p)
    out = pl.pallas_call(
        bn_residual_relu_kernel,
        grid=(N,),
        in_specs=[tile_spec(Cout_p), chan_spec(Cout_p), chan_spec(Cout_p),
                  tile_spec(Cout_p)],
        out_specs=tile_spec(Cout_p),
        out_shape=jax.ShapeDtypeStruct((N, H, W, Cout_p), jnp.float32),
        compiler_params=cparams,
        cost_estimate=pl.CostEstimate(
            flops=4 * P * Cout_p, transcendentals=0,
            bytes_accessed=3 * P * Cout_p * 4),
    )(y3, scale3, shift3, x_nhwc)

    # Strip channel padding, back to NCHW for the PyTorch-style contract.
    return jnp.transpose(out[..., :Cout], (0, 3, 1, 2))


# ---------------- pure-JAX reference (for verification) ----------------

def _bn_ref(x, g, b):
    mean = jnp.mean(x, axis=(0, 2, 3), keepdims=True)
    var = jnp.mean((x - mean) ** 2, axis=(0, 2, 3), keepdims=True)
    return (x - mean) / jnp.sqrt(var + EPS) * g.reshape(1, -1, 1, 1) + \
        b.reshape(1, -1, 1, 1)


def basic_block_reference(x, w1_oihw, w2_oihw, w3_oihw, g1, b1, g2, b2, g3, b3):
    # Mirrors the kernel's compute precision: conv operands rounded to bf16,
    # f32 accumulation, BatchNorm (two-pass batch stats) and residual in f32.
    def conv(a, w, pad):
        return jax.lax.conv_general_dilated(
            a.astype(jnp.bfloat16), w.astype(jnp.bfloat16),
            window_strides=(1, 1), padding=pad,
            dimension_numbers=("NCHW", "OIHW", "NCHW"),
            preferred_element_type=jnp.float32)

    x0 = x
    y = conv(x, w1_oihw, "VALID")
    y = jax.nn.relu(_bn_ref(y, g1, b1))
    y = conv(y, w2_oihw, ((1, 1), (1, 1)))
    y = jax.nn.relu(_bn_ref(y, g2, b2))
    y = conv(y, w3_oihw, ((1, 1), (1, 1)))
    y = _bn_ref(y, g3, b3)
    return jax.nn.relu(y + x0)


if __name__ == "__main__":
    # Small shapes consistent with the module (in_features == out_features so
    # the identity residual applies; mid = out_features // 4).
    N, H, W = 2, 16, 16
    in_features = 32
    out_features = 32
    Cmid = out_features // 4

    key = jax.random.PRNGKey(0)
    kx, k1, k2, k3, kg1, kb1, kg2, kb2, kg3, kb3 = jax.random.split(key, 10)

    x = jax.random.normal(kx, (N, in_features, H, W), jnp.float32)

    # PyTorch OIHW conv weights (bias=False in the module).
    w1 = 0.1 * jax.random.normal(k1, (Cmid, in_features, 1, 1), jnp.float32)
    w2 = 0.1 * jax.random.normal(k2, (Cmid, Cmid, 3, 3), jnp.float32)
    w3 = 0.1 * jax.random.normal(k3, (out_features, Cmid, 3, 3), jnp.float32)

    # BatchNorm affine params (perturbed from gamma=1, beta=0 defaults).
    g1 = 1.0 + 0.1 * jax.random.normal(kg1, (Cmid,), jnp.float32)
    b1 = 0.1 * jax.random.normal(kb1, (Cmid,), jnp.float32)
    g2 = 1.0 + 0.1 * jax.random.normal(kg2, (Cmid,), jnp.float32)
    b2 = 0.1 * jax.random.normal(kb2, (Cmid,), jnp.float32)
    g3 = 1.0 + 0.1 * jax.random.normal(kg3, (out_features,), jnp.float32)
    b3 = 0.1 * jax.random.normal(kb3, (out_features,), jnp.float32)

    out = jax.jit(basic_block_large)(x, w1, w2, w3, g1, b1, g2, b2, g3, b3)
    out = jax.block_until_ready(out)

    ref = basic_block_reference(x, w1, w2, w3, g1, b1, g2, b2, g3, b3)
    assert out.shape == ref.shape == (N, out_features, H, W)
    err = float(jnp.max(jnp.abs(out - ref)))
    # Tolerance covers bf16 operand rounding accumulated across the three
    # stacked convs and batch-statistic reduction-order differences.
    assert err < 2e-2, f"max abs err {err}"

    print("KERNEL_OK")
</pallas_src>

<mosaic_0001>
module attributes {stable_mosaic.version = 11 : i64} {
  func.func @conv1x1_kernel(%arg0: i32, %arg1: memref<1x16x16x128xbf16, #tpu.memory_space<vmem>>, %arg2: memref<128x128xbf16, #tpu.memory_space<vmem>>, %arg3: memref<1x16x16x128xf32, #tpu.memory_space<vmem>>, %arg4: memref<1x1x128xf32, #tpu.memory_space<vmem>>) attributes {dimension_semantics = [#tpu.dimension_semantics<parallel>], iteration_bounds = array<i64: 2>, scalar_prefetch = 0 : i64, scratch_operands = 0 : i64, tpu.core_type = #tpu.core_type<tc>, window_params = [{transform_indices = @transform_0, window_bounds = array<i64: 1, 16, 16, 128>}, {pipeline_mode = #tpu.pipeline_mode<synchronous>, transform_indices = @transform_1, window_bounds = array<i64: 128, 128>}, {transform_indices = @transform_2, window_bounds = array<i64: 1, 16, 16, 128>}, {transform_indices = @transform_3, window_bounds = array<i64: 1, 1, 128>}]} {
    %c0 = arith.constant 0 : index
    %c0_0 = arith.constant 0 : index
    %c0_1 = arith.constant 0 : index
    %c0_2 = arith.constant 0 : index
    %0 = vector.load %arg1[%c0, %c0_0, %c0_1, %c0_2] : memref<1x16x16x128xbf16, #tpu.memory_space<vmem>>, vector<1x16x16x128xbf16>
    %1 = vector.shape_cast %0 : vector<1x16x16x128xbf16> to vector<16x16x128xbf16>
    %2 = vector.shape_cast %1 : vector<16x16x128xbf16> to vector<256x128xbf16>
    %c0_3 = arith.constant 0 : index
    %c0_4 = arith.constant 0 : index
    %3 = vector.load %arg2[%c0_3, %c0_4] : memref<128x128xbf16, #tpu.memory_space<vmem>>, vector<128x128xbf16>
    %cst = arith.constant dense<0.000000e+00> : vector<256x128xf32>
    %4 = tpu.matmul %2, %3, %cst {dimension_numbers = #tpu.dot_dimension_numbers<[1], [0], [0], [1], [0, 0, 1, 1], [], []>} : vector<256x128xbf16>, vector<128x128xbf16>, vector<256x128xf32> -> vector<256x128xf32>
    %5 = vector.shape_cast %4 : vector<256x128xf32> to vector<16x16x128xf32>
    %c0_5 = arith.constant 0 : index
    %c0_6 = arith.constant 0 : index
    %c0_7 = arith.constant 0 : index
    %c0_8 = arith.constant 0 : index
    %6 = vector.load %arg3[%c0_5, %c0_6, %c0_7, %c0_8] : memref<1x16x16x128xf32, #tpu.memory_space<vmem>>, vector<1x16x16x128xf32>
    %7 = vector.shape_cast %6 : vector<1x16x16x128xf32> to vector<16x16x128xf32>
    %8 = vector.shape_cast %5 : vector<16x16x128xf32> to vector<1x16x16x128xf32>
    tpu.vector_store %arg3[%c0_5, %c0_6, %c0_7, %c0_8], %8 {strides = array<i32>} : memref<1x16x16x128xf32, #tpu.memory_space<vmem>>, vector<1x16x16x128xf32>,
    %cst_9 = arith.constant dense<0.000000e+00> : vector<128xf32>
    %9 = vector.multi_reduction <add>, %4, %cst_9 [0] : vector<256x128xf32> to vector<128xf32>
    %10 = vector.shape_cast %9 : vector<128xf32> to vector<1x128xf32>
    %c0_10 = arith.constant 0 : index
    %c0_11 = arith.constant 0 : index
    %c0_12 = arith.constant 0 : index
    %11 = vector.load %arg4[%c0_10, %c0_11, %c0_12] : memref<1x1x128xf32, #tpu.memory_space<vmem>>, vector<1x1x128xf32>
    %12 = vector.shape_cast %11 : vector<1x1x128xf32> to vector<1x128xf32>
    %13 = vector.shape_cast %10 : vector<1x128xf32> to vector<1x1x128xf32>
    tpu.vector_store %arg4[%c0_10, %c0_11, %c0_12], %13 {strides = array<i32>} : memref<1x1x128xf32, #tpu.memory_space<vmem>>, vector<1x1x128xf32>,
    return
  }
  func.func @transform_0(%arg0: i32) -> (i32, i32, i32, i32) {
    %c0_i32 = arith.constant 0 : i32
    %c0_i32_0 = arith.constant 0 : i32
    %c0_i32_1 = arith.constant 0 : i32
    %c0_i32_2 = arith.constant 0 : i32
    return %arg0, %c0_i32, %c0_i32_0, %c0_i32_1 : i32, i32, i32, i32
  }
  func.func @transform_1(%arg0: i32) -> (i32, i32) {
    %c0_i32 = arith.constant 0 : i32
    %c0_i32_0 = arith.constant 0 : i32
    %c0_i32_1 = arith.constant 0 : i32
    return %c0_i32, %c0_i32_0 : i32, i32
  }
  func.func @transform_2(%arg0: i32) -> (i32, i32, i32, i32) {
    %c0_i32 = arith.constant 0 : i32
    %c0_i32_0 = arith.constant 0 : i32
    %c0_i32_1 = arith.constant 0 : i32
    %c0_i32_2 = arith.constant 0 : i32
    return %arg0, %c0_i32, %c0_i32_0, %c0_i32_1 : i32, i32, i32, i32
  }
  func.func @transform_3(%arg0: i32) -> (i32, i32, i32) {
    %c0_i32 = arith.constant 0 : i32
    %c0_i32_0 = arith.constant 0 : i32
    %c0_i32_1 = arith.constant 0 : i32
    return %arg0, %c0_i32, %c0_i32_0 : i32, i32, i32
  }
}

module attributes {stable_mosaic.version = 11 : i64} {
  func.func @bn_relu_conv3x3_kernel(%arg0: i32, %arg1: memref<1x16x16x128xf32, #tpu.memory_space<vmem>>, %arg2: memref<1x128xf32, #tpu.memory_space<vmem>>, %arg3: memref<1x128xf32, #tpu.memory_space<vmem>>, %arg4: memref<9x128x128xbf16, #tpu.memory_space<vmem>>, %arg5: memref<1x16x16x128xf32, #tpu.memory_space<vmem>>, %arg6: memref<1x1x128xf32, #tpu.memory_space<vmem>>, %arg7: memref<18x18x128xf32, #tpu.memory_space<vmem>>) attributes {dimension_semantics = [#tpu.dimension_semantics<parallel>], iteration_bounds = array<i64: 2>, scalar_prefetch = 0 : i64, scratch_operands = 1 : i64, tpu.core_type = #tpu.core_type<tc>, window_params = [{transform_indices = @transform_0, window_bounds = array<i64: 1, 16, 16, 128>}, {pipeline_mode = #tpu.pipeline_mode<synchronous>, transform_indices = @transform_1, window_bounds = array<i64: 1, 128>}, {pipeline_mode = #tpu.pipeline_mode<synchronous>, transform_indices = @transform_2, window_bounds = array<i64: 1, 128>}, {pipeline_mode = #tpu.pipeline_mode<synchronous>, transform_indices = @transform_3, window_bounds = array<i64: 9, 128, 128>}, {transform_indices = @transform_4, window_bounds = array<i64: 1, 16, 16, 128>}, {transform_indices = @transform_5, window_bounds = array<i64: 1, 1, 128>}]} {
    %c0 = arith.constant 0 : index
    %c0_0 = arith.constant 0 : index
    %0 = vector.load %arg2[%c0, %c0_0] : memref<1x128xf32, #tpu.memory_space<vmem>>, vector<1x128xf32>
    %1 = vector.shape_cast %0 : vector<1x128xf32> to vector<1x1x128xf32>
    %c0_1 = arith.constant 0 : index
    %c0_2 = arith.constant 0 : index
    %2 = vector.load %arg3[%c0_1, %c0_2] : memref<1x128xf32, #tpu.memory_space<vmem>>, vector<1x128xf32>
    %3 = vector.shape_cast %2 : vector<1x128xf32> to vector<1x1x128xf32>
    %c0_3 = arith.constant 0 : index
    %c0_4 = arith.constant 0 : index
    %c0_5 = arith.constant 0 : index
    %c0_6 = arith.constant 0 : index
    %4 = vector.load %arg1[%c0_3, %c0_4, %c0_5, %c0_6] : memref<1x16x16x128xf32, #tpu.memory_space<vmem>>, vector<1x16x16x128xf32>
    %5 = vector.shape_cast %4 : vector<1x16x16x128xf32> to vector<16x16x128xf32>
    %6 = vector.broadcast %1 : vector<1x1x128xf32> to vector<16x16x128xf32>
    %7 = arith.mulf %5, %6 : vector<16x16x128xf32>
    %8 = vector.broadcast %3 : vector<1x1x128xf32> to vector<16x16x128xf32>
    %9 = arith.addf %7, %8 : vector<16x16x128xf32>
    %cst = arith.constant 0.000000e+00 : f32
    %10 = vector.broadcast %cst : f32 to vector<16x16x128xf32>
    %11 = arith.maximumf %9, %10 : vector<16x16x128xf32>
    %cst_7 = arith.constant 0.000000e+00 : f32
    %12 = vector.broadcast %cst_7 : f32 to vector<1x18x128xf32>
    %c0_8 = arith.constant 0 : index
    %c0_9 = arith.constant 0 : index
    %c0_10 = arith.constant 0 : index
    %13 = vector.load %arg7[%c0_8, %c0_9, %c0_10] : memref<18x18x128xf32, #tpu.memory_space<vmem>>, vector<1x18x128xf32>
    tpu.vector_store %arg7[%c0_8, %c0_9, %c0_10], %12 {strides = array<i32>} : memref<18x18x128xf32, #tpu.memory_space<vmem>>, vector<1x18x128xf32>,
    %cst_11 = arith.constant 0.000000e+00 : f32
    %14 = vector.broadcast %cst_11 : f32 to vector<1x18x128xf32>
    %c17 = arith.constant 17 : index
    %c0_12 = arith.constant 0 : index
    %c0_13 = arith.constant 0 : index
    %15 = vector.load %arg7[%c17, %c0_12, %c0_13] : memref<18x18x128xf32, #tpu.memory_space<vmem>>, vector<1x18x128xf32>
    tpu.vector_store %arg7[%c17, %c0_12, %c0_13], %14 {strides = array<i32>} : memref<18x18x128xf32, #tpu.memory_space<vmem>>, vector<1x18x128xf32>,
    %cst_14 = arith.constant 0.000000e+00 : f32
    %16 = vector.broadcast %cst_14 : f32 to vector<18x1x128xf32>
    %c0_15 = arith.constant 0 : index
    %c0_16 = arith.constant 0 : index
    %c0_17 = arith.constant 0 : index
    %17 = vector.load %arg7[%c0_15, %c0_16, %c0_17] : memref<18x18x128xf32, #tpu.memory_space<vmem>>, vector<18x1x128xf32>
    tpu.vector_store %arg7[%c0_15, %c0_16, %c0_17], %16 {strides = array<i32>} : memref<18x18x128xf32, #tpu.memory_space<vmem>>, vector<18x1x128xf32>,
    %cst_18 = arith.constant 0.000000e+00 : f32
    %18 = vector.broadcast %cst_18 : f32 to vector<18x1x128xf32>
    %c0_19 = arith.constant 0 : index
    %c17_20 = arith.constant 17 : index
    %c0_21 = arith.constant 0 : index
    %19 = vector.load %arg7[%c0_19, %c17_20, %c0_21] : memref<18x18x128xf32, #tpu.memory_space<vmem>>, vector<18x1x128xf32>
    tpu.vector_store %arg7[%c0_19, %c17_20, %c0_21], %18 {strides = array<i32>} : memref<18x18x128xf32, #tpu.memory_space<vmem>>, vector<18x1x128xf32>,
    %c1 = arith.constant 1 : index
    %c1_22 = arith.constant 1 : index
    %c0_23 = arith.constant 0 : index
    %20 = vector.load %arg7[%c1, %c1_22, %c0_23] : memref<18x18x128xf32, #tpu.memory_space<vmem>>, vector<16x16x128xf32>
    tpu.vector_store %arg7[%c1, %c1_22, %c0_23], %11 {strides = array<i32>} : memref<18x18x128xf32, #tpu.memory_space<vmem>>, vector<16x16x128xf32>,
    %cst_24 = arith.constant 0.000000e+00 : f32
    %21 = vector.broadcast %cst_24 : f32 to vector<256x128xf32>
    %c0_25 = arith.constant 0 : index
    %c0_26 = arith.constant 0 : index
    %c0_27 = arith.constant 0 : index
    %22 = vector.load %arg7[%c0_25, %c0_26, %c0_27] : memref<18x18x128xf32, #tpu.memory_space<vmem>>, vector<16x16x128xf32>
    %23 = arith.truncf %22 : vector<16x16x128xf32> to vector<16x16x128xbf16>
    %24 = vector.shape_cast %23 : vector<16x16x128xbf16> to vector<256x128xbf16>
    %c0_28 = arith.constant 0 : index
    %c0_29 = arith.constant 0 : index
    %c0_30 = arith.constant 0 : index
    %25 = vector.load %arg4[%c0_28, %c0_29, %c0_30] : memref<9x128x128xbf16, #tpu.memory_space<vmem>>, vector<1x128x128xbf16>
    %26 = vector.shape_cast %25 : vector<1x128x128xbf16> to vector<128x128xbf16>
    %cst_31 = arith.constant dense<0.000000e+00> : vector<256x128xf32>
    %27 = tpu.matmul %24, %26, %cst_31 {dimension_numbers = #tpu.dot_dimension_numbers<[1], [0], [0], [1], [0, 0, 1, 1], [], []>} : vector<256x128xbf16>, vector<128x128xbf16>, vector<256x128xf32> -> vector<256x128xf32>
    %28 = arith.addf %21, %27 : vector<256x128xf32>
    %c0_32 = arith.constant 0 : index
    %c1_33 = arith.constant 1 : index
    %c0_34 = arith.constant 0 : index
    %29 = vector.load %arg7[%c0_32, %c1_33, %c0_34] : memref<18x18x128xf32, #tpu.memory_space<vmem>>, vector<16x16x128xf32>
    %30 = arith.truncf %29 : vector<16x16x128xf32> to vector<16x16x128xbf16>
    %31 = vector.shape_cast %30 : vector<16x16x128xbf16> to vector<256x128xbf16>
    %c1_35 = arith.constant 1 : index
    %c0_36 = arith.constant 0 : index
    %c0_37 = arith.constant 0 : index
    %32 = vector.load %arg4[%c1_35, %c0_36, %c0_37] : memref<9x128x128xbf16, #tpu.memory_space<vmem>>, vector<1x128x128xbf16>
    %33 = vector.shape_cast %32 : vector<1x128x128xbf16> to vector<128x128xbf16>
    %cst_38 = arith.constant dense<0.000000e+00> : vector<256x128xf32>
    %34 = tpu.matmul %31, %33, %cst_38 {dimension_numbers = #tpu.dot_dimension_numbers<[1], [0], [0], [1], [0, 0, 1, 1], [], []>} : vector<256x128xbf16>, vector<128x128xbf16>, vector<256x128xf32> -> vector<256x128xf32>
    %35 = arith.addf %28, %34 : vector<256x128xf32>
    %c0_39 = arith.constant 0 : index
    %c2 = arith.constant 2 : index
    %c0_40 = arith.constant 0 : index
    %36 = vector.load %arg7[%c0_39, %c2, %c0_40] : memref<18x18x128xf32, #tpu.memory_space<vmem>>, vector<16x16x128xf32>
    %37 = arith.truncf %36 : vector<16x16x128xf32> to vector<16x16x128xbf16>
    %38 = vector.shape_cast %37 : vector<16x16x128xbf16> to vector<256x128xbf16>
    %c2_41 = arith.constant 2 : index
    %c0_42 = arith.constant 0 : index
    %c0_43 = arith.constant 0 : index
    %39 = vector.load %arg4[%c2_41, %c0_42, %c0_43] : memref<9x128x128xbf16, #tpu.memory_space<vmem>>, vector<1x128x128xbf16>
    %40 = vector.shape_cast %39 : vector<1x128x128xbf16> to vector<128x128xbf16>
    %cst_44 = arith.constant dense<0.000000e+00> : vector<256x128xf32>
    %41 = tpu.matmul %38, %40, %cst_44 {dimension_numbers = #tpu.dot_dimension_numbers<[1], [0], [0], [1], [0, 0, 1, 1], [], []>} : vector<256x128xbf16>, vector<128x128xbf16>, vector<256x128xf32> -> vector<256x128xf32>
    %42 = arith.addf %35, %41 : vector<256x128xf32>
    %c1_45 = arith.constant 1 : index
    %c0_46 = arith.constant 0 : index
    %c0_47 = arith.constant 0 : index
    %43 = vector.load %arg7[%c1_45, %c0_46, %c0_47] : memref<18x18x128xf32, #tpu.memory_space<vmem>>, vector<16x16x128xf32>
    %44 = arith.truncf %43 : vector<16x16x128xf32> to vector<16x16x128xbf16>
    %45 = vector.shape_cast %44 : vector<16x16x128xbf16> to vector<256x128xbf16>
    %c3 = arith.constant 3 : index
    %c0_48 = arith.constant 0 : index
    %c0_49 = arith.constant 0 : index
    %46 = vector.load %arg4[%c3, %c0_48, %c0_49] : memref<9x128x128xbf16, #tpu.memory_space<vmem>>, vector<1x128x128xbf16>
    %47 = vector.shape_cast %46 : vector<1x128x128xbf16> to vector<128x128xbf16>
    %cst_50 = arith.constant dense<0.000000e+00> : vector<256x128xf32>
    %48 = tpu.matmul %45, %47, %cst_50 {dimension_numbers = #tpu.dot_dimension_numbers<[1], [0], [0], [1], [0, 0, 1, 1], [], []>} : vector<256x128xbf16>, vector<128x128xbf16>, vector<256x128xf32> -> vector<256x128xf32>
    %49 = arith.addf %42, %48 : vector<256x128xf32>
    %c1_51 = arith.constant 1 : index
    %c1_52 = arith.constant 1 : index
    %c0_53 = arith.constant 0 : index
    %50 = vector.load %arg7[%c1_51, %c1_52, %c0_53] : memref<18x18x128xf32, #tpu.memory_space<vmem>>, vector<16x16x128xf32>
    %51 = arith.truncf %50 : vector<16x16x128xf32> to vector<16x16x128xbf16>
    %52 = vector.shape_cast %51 : vector<16x16x128xbf16> to vector<256x128xbf16>
    %c4 = arith.constant 4 : index
    %c0_54 = arith.constant 0 : index
    %c0_55 = arith.constant 0 : index
    %53 = vector.load %arg4[%c4, %c0_54, %c0_55] : memref<9x128x128xbf16, #tpu.memory_space<vmem>>, vector<1x128x128xbf16>
    %54 = vector.shape_cast %53 : vector<1x128x128xbf16> to vector<128x128xbf16>
    %cst_56 = arith.constant dense<0.000000e+00> : vector<256x128xf32>
    %55 = tpu.matmul %52, %54, %cst_56 {dimension_numbers = #tpu.dot_dimension_numbers<[1], [0], [0], [1], [0, 0, 1, 1], [], []>} : vector<256x128xbf16>, vector<128x128xbf16>, vector<256x128xf32> -> vector<256x128xf32>
    %56 = arith.addf %49, %55 : vector<256x128xf32>
    %c1_57 = arith.constant 1 : index
    %c2_58 = arith.constant 2 : index
    %c0_59 = arith.constant 0 : index
    %57 = vector.load %arg7[%c1_57, %c2_58, %c0_59] : memref<18x18x128xf32, #tpu.memory_space<vmem>>, vector<16x16x128xf32>
    %58 = arith.truncf %57 : vector<16x16x128xf32> to vector<16x16x128xbf16>
    %59 = vector.shape_cast %58 : vector<16x16x128xbf16> to vector<256x128xbf16>
    %c5 = arith.constant 5 : index
    %c0_60 = arith.constant 0 : index
    %c0_61 = arith.constant 0 : index
    %60 = vector.load %arg4[%c5, %c0_60, %c0_61] : memref<9x128x128xbf16, #tpu.memory_space<vmem>>, vector<1x128x128xbf16>
    %61 = vector.shape_cast %60 : vector<1x128x128xbf16> to vector<128x128xbf16>
    %cst_62 = arith.constant dense<0.000000e+00> : vector<256x128xf32>
    %62 = tpu.matmul %59, %61, %cst_62 {dimension_numbers = #tpu.dot_dimension_numbers<[1], [0], [0], [1], [0, 0, 1, 1], [], []>} : vector<256x128xbf16>, vector<128x128xbf16>, vector<256x128xf32> -> vector<256x128xf32>
    %63 = arith.addf %56, %62 : vector<256x128xf32>
    %c2_63 = arith.constant 2 : index
    %c0_64 = arith.constant 0 : index
    %c0_65 = arith.constant 0 : index
    %64 = vector.load %arg7[%c2_63, %c0_64, %c0_65] : memref<18x18x128xf32, #tpu.memory_space<vmem>>, vector<16x16x128xf32>
    %65 = arith.truncf %64 : vector<16x16x128xf32> to vector<16x16x128xbf16>
    %66 = vector.shape_cast %65 : vector<16x16x128xbf16> to vector<256x128xbf16>
    %c6 = arith.constant 6 : index
    %c0_66 = arith.constant 0 : index
    %c0_67 = arith.constant 0 : index
    %67 = vector.load %arg4[%c6, %c0_66, %c0_67] : memref<9x128x128xbf16, #tpu.memory_space<vmem>>, vector<1x128x128xbf16>
    %68 = vector.shape_cast %67 : vector<1x128x128xbf16> to vector<128x128xbf16>
    %cst_68 = arith.constant dense<0.000000e+00> : vector<256x128xf32>
    %69 = tpu.matmul %66, %68, %cst_68 {dimension_numbers = #tpu.dot_dimension_numbers<[1], [0], [0], [1], [0, 0, 1, 1], [], []>} : vector<256x128xbf16>, vector<128x128xbf16>, vector<256x128xf32> -> vector<256x128xf32>
    %70 = arith.addf %63, %69 : vector<256x128xf32>
    %c2_69 = arith.constant 2 : index
    %c1_70 = arith.constant 1 : index
    %c0_71 = arith.constant 0 : index
    %71 = vector.load %arg7[%c2_69, %c1_70, %c0_71] : memref<18x18x128xf32, #tpu.memory_space<vmem>>, vector<16x16x128xf32>
    %72 = arith.truncf %71 : vector<16x16x128xf32> to vector<16x16x128xbf16>
    %73 = vector.shape_cast %72 : vector<16x16x128xbf16> to vector<256x128xbf16>
    %c7 = arith.constant 7 : index
    %c0_72 = arith.constant 0 : index
    %c0_73 = arith.constant 0 : index
    %74 = vector.load %arg4[%c7, %c0_72, %c0_73] : memref<9x128x128xbf16, #tpu.memory_space<vmem>>, vector<1x128x128xbf16>
    %75 = vector.shape_cast %74 : vector<1x128x128xbf16> to vector<128x128xbf16>
    %cst_74 = arith.constant dense<0.000000e+00> : vector<256x128xf32>
    %76 = tpu.matmul %73, %75, %cst_74 {dimension_numbers = #tpu.dot_dimension_numbers<[1], [0], [0], [1], [0, 0, 1, 1], [], []>} : vector<256x128xbf16>, vector<128x128xbf16>, vector<256x128xf32> -> vector<256x128xf32>
    %77 = arith.addf %70, %76 : vector<256x128xf32>
    %c2_75 = arith.constant 2 : index
    %c2_76 = arith.constant 2 : index
    %c0_77 = arith.constant 0 : index
    %78 = vector.load %arg7[%c2_75, %c2_76, %c0_77] : memref<18x18x128xf32, #tpu.memory_space<vmem>>, vector<16x16x128xf32>
    %79 = arith.truncf %78 : vector<16x16x128xf32> to vector<16x16x128xbf16>
    %80 = vector.shape_cast %79 : vector<16x16x128xbf16> to vector<256x128xbf16>
    %c8 = arith.constant 8 : index
    %c0_78 = arith.constant 0 : index
    %c0_79 = arith.constant 0 : index
    %81 = vector.load %arg4[%c8, %c0_78, %c0_79] : memref<9x128x128xbf16, #tpu.memory_space<vmem>>, vector<1x128x128xbf16>
    %82 = vector.shape_cast %81 : vector<1x128x128xbf16> to vector<128x128xbf16>
    %cst_80 = arith.constant dense<0.000000e+00> : vector<256x128xf32>
    %83 = tpu.matmul %80, %82, %cst_80 {dimension_numbers = #tpu.dot_dimension_numbers<[1], [0], [0], [1], [0, 0, 1, 1], [], []>} : vector<256x128xbf16>, vector<128x128xbf16>, vector<256x128xf32> -> vector<256x128xf32>
    %84 = arith.addf %77, %83 : vector<256x128xf32>
    %85 = vector.shape_cast %84 : vector<256x128xf32> to vector<16x16x128xf32>
    %c0_81 = arith.constant 0 : index
    %c0_82 = arith.constant 0 : index
    %c0_83 = arith.constant 0 : index
    %c0_84 = arith.constant 0 : index
    %86 = vector.load %arg5[%c0_81, %c0_82, %c0_83, %c0_84] : memref<1x16x16x128xf32, #tpu.memory_space<vmem>>, vector<1x16x16x128xf32>
    %87 = vector.shape_cast %86 : vector<1x16x16x128xf32> to vector<16x16x128xf32>
    %88 = vector.shape_cast %85 : vector<16x16x128xf32> to vector<1x16x16x128xf32>
    tpu.vector_store %arg5[%c0_81, %c0_82, %c0_83, %c0_84], %88 {strides = array<i32>} : memref<1x16x16x128xf32, #tpu.memory_space<vmem>>, vector<1x16x16x128xf32>,
    %cst_85 = arith.constant dense<0.000000e+00> : vector<128xf32>
    %89 = vector.multi_reduction <add>, %84, %cst_85 [0] : vector<256x128xf32> to vector<128xf32>
    %90 = vector.shape_cast %89 : vector<128xf32> to vector<1x128xf32>
    %c0_86 = arith.constant 0 : index
    %c0_87 = arith.constant 0 : index
    %c0_88 = arith.constant 0 : index
    %91 = vector.load %arg6[%c0_86, %c0_87, %c0_88] : memref<1x1x128xf32, #tpu.memory_space<vmem>>, vector<1x1x128xf32>
    %92 = vector.shape_cast %91 : vector<1x1x128xf32> to vector<1x128xf32>
    %93 = vector.shape_cast %90 : vector<1x128xf32> to vector<1x1x128xf32>
    tpu.vector_store %arg6[%c0_86, %c0_87, %c0_88], %93 {strides = array<i32>} : memref<1x1x128xf32, #tpu.memory_space<vmem>>, vector<1x1x128xf32>,
    return
  }
  func.func @transform_0(%arg0: i32) -> (i32, i32, i32, i32) {
    %c0_i32 = arith.constant 0 : i32
    %c0_i32_0 = arith.constant 0 : i32
    %c0_i32_1 = arith.constant 0 : i32
    %c0_i32_2 = arith.constant 0 : i32
    return %arg0, %c0_i32, %c0_i32_0, %c0_i32_1 : i32, i32, i32, i32
  }
  func.func @transform_1(%arg0: i32) -> (i32, i32) {
    %c0_i32 = arith.constant 0 : i32
    %c0_i32_0 = arith.constant 0 : i32
    %c0_i32_1 = arith.constant 0 : i32
    return %c0_i32, %c0_i32_0 : i32, i32
  }
  func.func @transform_2(%arg0: i32) -> (i32, i32) {
    %c0_i32 = arith.constant 0 : i32
    %c0_i32_0 = arith.constant 0 : i32
    %c0_i32_1 = arith.constant 0 : i32
    return %c0_i32, %c0_i32_0 : i32, i32
  }
  func.func @transform_3(%arg0: i32) -> (i32, i32, i32) {
    %c0_i32 = arith.constant 0 : i32
    %c0_i32_0 = arith.constant 0 : i32
    %c0_i32_1 = arith.constant 0 : i32
    %c0_i32_2 = arith.constant 0 : i32
    return %c0_i32, %c0_i32_0, %c0_i32_1 : i32, i32, i32
  }
  func.func @transform_4(%arg0: i32) -> (i32, i32, i32, i32) {
    %c0_i32 = arith.constant 0 : i32
    %c0_i32_0 = arith.constant 0 : i32
    %c0_i32_1 = arith.constant 0 : i32
    %c0_i32_2 = arith.constant 0 : i32
    return %arg0, %c0_i32, %c0_i32_0, %c0_i32_1 : i32, i32, i32, i32
  }
  func.func @transform_5(%arg0: i32) -> (i32, i32, i32) {
    %c0_i32 = arith.constant 0 : i32
    %c0_i32_0 = arith.constant 0 : i32
    %c0_i32_1 = arith.constant 0 : i32
    return %arg0, %c0_i32, %c0_i32_0 : i32, i32, i32
  }
}

module attributes {stable_mosaic.version = 11 : i64} {
  func.func @bn_residual_relu_kernel(%arg0: i32, %arg1: memref<1x16x16x128xf32, #tpu.memory_space<vmem>>, %arg2: memref<1x128xf32, #tpu.memory_space<vmem>>, %arg3: memref<1x128xf32, #tpu.memory_space<vmem>>, %arg4: memref<1x16x16x128xf32, #tpu.memory_space<vmem>>, %arg5: memref<1x16x16x128xf32, #tpu.memory_space<vmem>>) attributes {dimension_semantics = [#tpu.dimension_semantics<parallel>], iteration_bounds = array<i64: 2>, scalar_prefetch = 0 : i64, scratch_operands = 0 : i64, tpu.core_type = #tpu.core_type<tc>, window_params = [{transform_indices = @transform_0, window_bounds = array<i64: 1, 16, 16, 128>}, {pipeline_mode = #tpu.pipeline_mode<synchronous>, transform_indices = @transform_1, window_bounds = array<i64: 1, 128>}, {pipeline_mode = #tpu.pipeline_mode<synchronous>, transform_indices = @transform_2, window_bounds = array<i64: 1, 128>}, {transform_indices = @transform_3, window_bounds = array<i64: 1, 16, 16, 128>}, {transform_indices = @transform_4, window_bounds = array<i64: 1, 16, 16, 128>}]} {
    %c0 = arith.constant 0 : index
    %c0_0 = arith.constant 0 : index
    %0 = vector.load %arg2[%c0, %c0_0] : memref<1x128xf32, #tpu.memory_space<vmem>>, vector<1x128xf32>
    %1 = vector.shape_cast %0 : vector<1x128xf32> to vector<1x1x128xf32>
    %c0_1 = arith.constant 0 : index
    %c0_2 = arith.constant 0 : index
    %2 = vector.load %arg3[%c0_1, %c0_2] : memref<1x128xf32, #tpu.memory_space<vmem>>, vector<1x128xf32>
    %3 = vector.shape_cast %2 : vector<1x128xf32> to vector<1x1x128xf32>
    %c0_3 = arith.constant 0 : index
    %c0_4 = arith.constant 0 : index
    %c0_5 = arith.constant 0 : index
    %c0_6 = arith.constant 0 : index
    %4 = vector.load %arg1[%c0_3, %c0_4, %c0_5, %c0_6] : memref<1x16x16x128xf32, #tpu.memory_space<vmem>>, vector<1x16x16x128xf32>
    %5 = vector.shape_cast %4 : vector<1x16x16x128xf32> to vector<16x16x128xf32>
    %6 = vector.broadcast %1 : vector<1x1x128xf32> to vector<16x16x128xf32>
    %7 = arith.mulf %5, %6 : vector<16x16x128xf32>
    %8 = vector.broadcast %3 : vector<1x1x128xf32> to vector<16x16x128xf32>
    %9 = arith.addf %7, %8 : vector<16x16x128xf32>
    %c0_7 = arith.constant 0 : index
    %c0_8 = arith.constant 0 : index
    %c0_9 = arith.constant 0 : index
    %c0_10 = arith.constant 0 : index
    %10 = vector.load %arg4[%c0_7, %c0_8, %c0_9, %c0_10] : memref<1x16x16x128xf32, #tpu.memory_space<vmem>>, vector<1x16x16x128xf32>
    %11 = vector.shape_cast %10 : vector<1x16x16x128xf32> to vector<16x16x128xf32>
    %12 = arith.addf %9, %11 : vector<16x16x128xf32>
    %cst = arith.constant 0.000000e+00 : f32
    %13 = vector.broadcast %cst : f32 to vector<16x16x128xf32>
    %14 = arith.maximumf %12, %13 : vector<16x16x128xf32>
    %c0_11 = arith.constant 0 : index
    %c0_12 = arith.constant 0 : index
    %c0_13 = arith.constant 0 : index
    %c0_14 = arith.constant 0 : index
    %15 = vector.load %arg5[%c0_11, %c0_12, %c0_13, %c0_14] : memref<1x16x16x128xf32, #tpu.memory_space<vmem>>, vector<1x16x16x128xf32>
    %16 = vector.shape_cast %15 : vector<1x16x16x128xf32> to vector<16x16x128xf32>
    %17 = vector.shape_cast %14 : vector<16x16x128xf32> to vector<1x16x16x128xf32>
    tpu.vector_store %arg5[%c0_11, %c0_12, %c0_13, %c0_14], %17 {strides = array<i32>} : memref<1x16x16x128xf32, #tpu.memory_space<vmem>>, vector<1x16x16x128xf32>,
    return
  }
  func.func @transform_0(%arg0: i32) -> (i32, i32, i32, i32) {
    %c0_i32 = arith.constant 0 : i32
    %c0_i32_0 = arith.constant 0 : i32
    %c0_i32_1 = arith.constant 0 : i32
    %c0_i32_2 = arith.constant 0 : i32
    return %arg0, %c0_i32, %c0_i32_0, %c0_i32_1 : i32, i32, i32, i32
  }
  func.func @transform_1(%arg0: i32) -> (i32, i32) {
    %c0_i32 = arith.constant 0 : i32
    %c0_i32_0 = arith.constant 0 : i32
    %c0_i32_1 = arith.constant 0 : i32
    return %c0_i32, %c0_i32_0 : i32, i32
  }
  func.func @transform_2(%arg0: i32) -> (i32, i32) {
    %c0_i32 = arith.constant 0 : i32
    %c0_i32_0 = arith.constant 0 : i32
    %c0_i32_1 = arith.constant 0 : i32
    return %c0_i32, %c0_i32_0 : i32, i32
  }
  func.func @transform_3(%arg0: i32) -> (i32, i32, i32, i32) {
    %c0_i32 = arith.constant 0 : i32
    %c0_i32_0 = arith.constant 0 : i32
    %c0_i32_1 = arith.constant 0 : i32
    %c0_i32_2 = arith.constant 0 : i32
    return %arg0, %c0_i32, %c0_i32_0, %c0_i32_1 : i32, i32, i32, i32
  }
  func.func @transform_4(%arg0: i32) -> (i32, i32, i32, i32) {
    %c0_i32 = arith.constant 0 : i32
    %c0_i32_0 = arith.constant 0 : i32
    %c0_i32_1 = arith.constant 0 : i32
    %c0_i32_2 = arith.constant 0 : i32
    return %arg0, %c0_i32, %c0_i32_0, %c0_i32_1 : i32, i32, i32, i32
  }
}

</mosaic_0001>

<bundles_post_ra>
// kernel: basic_block_large.4
= control target key start
LH: loop header
LB: loop body
LE: loop exit
PB: predicated region body
PF: predicated region fallthrough
CT: control target
= control target key end

     0   :  { %s869_s12 = smov 0   ;;  %s990_s0 = inlined_call_operand.vmem [shape: bf16[2,16,16,128], index: 0, kind: input, shape index: {}]   ;;  %s991_s1 = inlined_call_operand.vmem [shape: bf16[128,128], index: 1, kind: input, shape index: {}]   ;;  %s992_s2 = inlined_call_operand.vmem [shape: f32[2,16,16,128], index: 2, kind: output, shape index: {0}]   ;;  %s993_s3 = inlined_call_operand.vmem [shape: f32[2,1,128], index: 3, kind: output, shape index: {1}]  }
   0x1 LB: > { %s684_s13 = sadd.s32 4294967295, %s847_s12   ;;  %p688_p0 = scmp.ge.s32.totalorder %s847_s12, 1  ;;  %s847_s12 = sphi %s869_s12, %s14_s12  }
   0x2   : > { %p140_p1 = scmp.lt.s32.totalorder %s847_s12, 3 }
   0x4   : > { %p141_p2 = pnand %p688_p0, %p140_p1 }
   0x5   : > { %p167_p3 = scmp.lt.s32.totalorder (!%p141_p2), %s684_s13, 1 }
   0x6   : > { %144 = sbr.rel (%p141_p2) target bundleno = 318 (0x13e), region = 28 }
   0xb   : > { %v817_v0 = vld [vmem:[%s991_s1 + $0x38] sm:$0xff]   ;;  %v818_v1 = vld [vmem:[%s991_s1 + $0x30] sm:$0xff]   ;;  %s995_s13 = smov (!%p167_p3, %s684_s13), 1  ;;  %v819_v2 = vld [vmem:[%s991_s1 + $0x28] sm:$0xff]  }
   0xc   : > { %745 = vmatprep.subr.bf16.mxu0 %v817_v0  ;;  %793 = vmatprep.subr.bf16.mxu1 %v817_v0  ;;  %s719_s20 = sshll.u32 %s995_s13, 7  ;;  %v820_v3 = vld [vmem:[%s991_s1 + $0x20] sm:$0xff]   ;;  %v821_v5 = vld [vmem:[%s991_s1 + $0x18] sm:$0xff]   ;;  %v822_v6 = vld [vmem:[%s991_s1 + $0x10] sm:$0xff]   ;;  %s720_s7 = sshll.u32 %s995_s13, 8 }
   0xd   : > { %746 = vmatpush3.bf16.msra.mxu0 %v817_v0  ;;  %801 = vmatpush3.bf16.msra.mxu1 %v817_v0  ;;  %s892_s23 = scalar_lea.vmem %s990_s0, %s719_s20  ;;  %v823_v8 = vld [vmem:[%s991_s1 + $0x8] sm:$0xff]   ;;  %v824_v9 = vld [vmem:[%s991_s1] sm:$0xff]   ;;  %s929_s10 = scalar_lea.vmem %s992_s2, %s720_s7 }
   0xe   : > { %747 = vmatprep.subr.bf16.mxu0 %v818_v1  ;;  %794 = vmatprep.subr.bf16.mxu1 %v818_v1  ;;  %v825_v4 = vld [vmem:[%s892_s23] sm:$0xff]   ;;  %v826_v10 = vld [vmem:[%s892_s23 + $0x8] sm:$0xff]   ;;  %v827_v12 = vld [vmem:[%s892_s23 + $0x10] sm:$0xff]   ;;  %s179_s15 = scalar_lea.vmem %s993_s3, %s995_s13 }
   0xf   : > { %761 = vmatprep.mubr.bf16.mxu0 %v825_v4  ;;  %v833_v7 = vld [vmem:[%s892_s23 + $0x40] sm:$0xff]   ;;  %v834_v11 = vld [vmem:[%s892_s23 + $0x48] sm:$0xff]   ;;  %v835_v13 = vld [vmem:[%s892_s23 + $0x50] sm:$0xff]  }
  0x10   : > { %777 = vmatprep.mubr.bf16.mxu1 %v833_v7  ;;  %v828_v14 = vld [vmem:[%s892_s23 + $0x18] sm:$0xff]   ;;  %v829_v16 = vld [vmem:[%s892_s23 + $0x20] sm:$0xff]   ;;  %v830_v18 = vld [vmem:[%s892_s23 + $0x28] sm:$0xff]  }
  0x11   : > { %748 = vmatpush3.bf16.msra.mxu0 %v818_v1  ;;  %802 = vmatpush3.bf16.msra.mxu1 %v818_v1  ;;  %v836_v15 = vld [vmem:[%s892_s23 + $0x58] sm:$0xff]   ;;  %v837_v17 = vld [vmem:[%s892_s23 + $0x60] sm:$0xff]   ;;  %v838_v19 = vld [vmem:[%s892_s23 + $0x68] sm:$0xff]  }
  0x12   : > { %749 = vmatprep.subr.bf16.mxu0 %v819_v2  ;;  %795 = vmatprep.subr.bf16.mxu1 %v819_v2  ;;  %v831_v20 = vld [vmem:[%s892_s23 + $0x30] sm:$0xff]   ;;  %v832_v22 = vld [vmem:[%s892_s23 + $0x38] sm:$0xff]  }
  0x13   : > { %v839_v21 = vld [vmem:[%s892_s23 + $0x70] sm:$0xff]   ;;  %v840_v23 = vld [vmem:[%s892_s23 + $0x78] sm:$0xff]  }
  0x15   : > { %750 = vmatpush3.bf16.msra.mxu0 %v819_v2  ;;  %803 = vmatpush3.bf16.msra.mxu1 %v819_v2 }
  0x16   : > { %751 = vmatprep.subr.bf16.mxu0 %v820_v3  ;;  %796 = vmatprep.subr.bf16.mxu1 %v820_v3 }
  0x19   : > { %752 = vmatpush3.bf16.msra.mxu0 %v820_v3  ;;  %804 = vmatpush3.bf16.msra.mxu1 %v820_v3 }
  0x1a   : > { %753 = vmatprep.subr.bf16.mxu0 %v821_v5  ;;  %797 = vmatprep.subr.bf16.mxu1 %v821_v5 }
  0x1d   : > { %754 = vmatpush3.bf16.msra.mxu0 %v821_v5  ;;  %805 = vmatpush3.bf16.msra.mxu1 %v821_v5 }
  0x1e   : > { %755 = vmatprep.subr.bf16.mxu0 %v822_v6  ;;  %798 = vmatprep.subr.bf16.mxu1 %v822_v6 }
  0x21   : > { %756 = vmatpush3.bf16.msra.mxu0 %v822_v6  ;;  %806 = vmatpush3.bf16.msra.mxu1 %v822_v6 }
  0x22   : > { %757 = vmatprep.subr.bf16.mxu0 %v823_v8  ;;  %799 = vmatprep.subr.bf16.mxu1 %v823_v8 }
  0x25   : > { %758 = vmatpush3.bf16.msra.mxu0 %v823_v8  ;;  %807 = vmatpush3.bf16.msra.mxu1 %v823_v8 }
  0x26   : > { %759 = vmatprep.subr.bf16.mxu0 %v824_v9  ;;  %800 = vmatprep.subr.bf16.mxu1 %v824_v9 }
  0x29   : > { %760 = vmatpush3.bf16.msra.mxu0 %v824_v9  ;;  %808 = vmatpush3.bf16.msra.mxu1 %v824_v9 }
  0x2c   : > { %762 = vmatmul.mubr.bf16.vlgmr.msra.gmra.mxu0 %v826_v10  ;;  %778 = vmatmul.mubr.bf16.vlgmr.msra.gmra.mxu1 %v834_v11 }
  0x2d   : > { %765 = vmatprep.mubr.bf16.mxu0 %v827_v12  ;;  %781 = vmatprep.mubr.bf16.mxu1 %v835_v13 }
  0x34   : > { %766 = vmatmul.mubr.bf16.gmra.mxu0 %v828_v14  ;;  %782 = vmatmul.mubr.bf16.gmra.mxu1 %v836_v15 }
  0x35   : > { %769 = vmatprep.mubr.bf16.mxu0 %v829_v16  ;;  %785 = vmatprep.mubr.bf16.mxu1 %v837_v17 }
  0x3c   : > { %770 = vmatmul.mubr.bf16.gmra.mxu0 %v830_v18  ;;  %786 = vmatmul.mubr.bf16.gmra.mxu1 %v838_v19 }
  0x3d   : > { %773 = vmatprep.mubr.bf16.mxu0 %v831_v20  ;;  %789 = vmatprep.mubr.bf16.mxu1 %v839_v21 }
  0x44   : > { %774 = vmatmul.mubr.bf16.gmra.mxu0 %v832_v22  ;;  %790 = vmatmul.mubr.bf16.gmra.mxu1 %v840_v23 }
  0xec   : > { %v763_v24 = vpop.f32.mrf.mxu0  ;;  %v931_v25 = vpop.f32.mrf.mxu1 }
  0xed   : > { %536 = vst [vmem:[%s929_s10 + $0x10] sm:$0xff] %v763_v24  ;;  %552 = vst [vmem:[%s929_s10 + $0x90] sm:$0xff] %v931_v25 }
  0xee   : > { %v407_v26 = vpop.f32.mrf.mxu0  ;;  %v936_v27 = vpop.f32.mrf.mxu1 }
  0xef   : > { %534 = vst [vmem:[%s929_s10] sm:$0xff] %v407_v26  ;;  %550 = vst [vmem:[%s929_s10 + $0x80] sm:$0xff] %v936_v27 }
  0xf0   : > { %v764_v28 = vpop.f32.mrf.mxu0  ;;  %v941_v29 = vpop.f32.mrf.mxu1 }
  0xf1   : > { %537 = vst [vmem:[%s929_s10 + $0x18] sm:$0xff] %v764_v28  ;;  %553 = vst [vmem:[%s929_s10 + $0x98] sm:$0xff] %v941_v29 }
  0xf2   : > { %v410_v30 = vpop.f32.mrf.mxu0  ;;  %v946_v31 = vpop.f32.mrf.mxu1 }
  0xf3   : > { %535 = vst [vmem:[%s929_s10 + $0x8] sm:$0xff] %v410_v30  ;;  %v566_v32 = vadd.f32 %v410_v30, %v407_v26  ;;  %551 = vst [vmem:[%s929_s10 + $0x88] sm:$0xff] %v946_v31 }
  0xf4   : > { %v767_v33 = vpop.f32.mrf.mxu0  ;;  %v951_v34 = vpop.f32.mrf.mxu1 }
  0xf5   : > { %v567_v35 = vadd.f32 %v763_v24, %v566_v32  ;;  %540 = vst [vmem:[%s929_s10 + $0x30] sm:$0xff] %v767_v33  ;;  %556 = vst [vmem:[%s929_s10 + $0xb0] sm:$0xff] %v951_v34 }
  0xf6   : > { %v423_v36 = vpop.f32.mrf.mxu0  ;;  %v487_v37 = vpop.f32.mrf.mxu1 }
  0xf7   : > { %538 = vst [vmem:[%s929_s10 + $0x20] sm:$0xff] %v423_v36  ;;  %v568_v38 = vadd.f32 %v764_v28, %v567_v35  ;;  %554 = vst [vmem:[%s929_s10 + $0xa0] sm:$0xff] %v487_v37 }
  0xf8   : > { %v768_v39 = vpop.f32.mrf.mxu0  ;;  %v784_v40 = vpop.f32.mrf.mxu1 }
  0xf9   : > { %v569_v41 = vadd.f32 %v568_v38, %v423_v36  ;;  %541 = vst [vmem:[%s929_s10 + $0x38] sm:$0xff] %v768_v39  ;;  %557 = vst [vmem:[%s929_s10 + $0xb8] sm:$0xff] %v784_v40 }
  0xfa   : > { %v426_v42 = vpop.f32.mrf.mxu0  ;;  %v490_v43 = vpop.f32.mrf.mxu1 }
  0xfb   : > { %539 = vst [vmem:[%s929_s10 + $0x28] sm:$0xff] %v426_v42  ;;  %v570_v44 = vadd.f32 %v569_v41, %v426_v42  ;;  %555 = vst [vmem:[%s929_s10 + $0xa8] sm:$0xff] %v490_v43 }
  0xfc   : > { %v771_v45 = vpop.f32.mrf.mxu0  ;;  %v787_v46 = vpop.f32.mrf.mxu1 }
  0xfd   : > { %v571_v47 = vadd.f32 %v767_v33, %v570_v44  ;;  %544 = vst [vmem:[%s929_s10 + $0x50] sm:$0xff] %v771_v45  ;;  %560 = vst [vmem:[%s929_s10 + $0xd0] sm:$0xff] %v787_v46 }
  0xfe   : > { %v439_v48 = vpop.f32.mrf.mxu0  ;;  %v503_v49 = vpop.f32.mrf.mxu1 }
  0xff   : > { %542 = vst [vmem:[%s929_s10 + $0x40] sm:$0xff] %v439_v48  ;;  %v572_v50 = vadd.f32 %v768_v39, %v571_v47  ;;  %558 = vst [vmem:[%s929_s10 + $0xc0] sm:$0xff] %v503_v49 }
 0x100   : > { %v772_v51 = vpop.f32.mrf.mxu0  ;;  %v788_v52 = vpop.f32.mrf.mxu1 }
 0x101   : > { %v573_v53 = vadd.f32 %v572_v50, %v439_v48  ;;  %545 = vst [vmem:[%s929_s10 + $0x58] sm:$0xff] %v772_v51  ;;  %561 = vst [vmem:[%s929_s10 + $0xd8] sm:$0xff] %v788_v52 }
 0x102   : > { %v442_v54 = vpop.f32.mrf.mxu0  ;;  %v506_v55 = vpop.f32.mrf.mxu1 }
 0x103   : > { %543 = vst [vmem:[%s929_s10 + $0x48] sm:$0xff] %v442_v54  ;;  %v574_v56 = vadd.f32 %v573_v53, %v442_v54  ;;  %559 = vst [vmem:[%s929_s10 + $0xc8] sm:$0xff] %v506_v55 }
 0x104   : > { %v775_v57 = vpop.f32.mrf.mxu0  ;;  %v791_v58 = vpop.f32.mrf.mxu1 }
 0x105   : > { %v575_v59 = vadd.f32 %v771_v45, %v574_v56  ;;  %548 = vst [vmem:[%s929_s10 + $0x70] sm:$0xff] %v775_v57  ;;  %564 = vst [vmem:[%s929_s10 + $0xf0] sm:$0xff] %v791_v58 }
 0x106   : > { %v455_v60 = vpop.f32.mrf.mxu0  ;;  %v519_v61 = vpop.f32.mrf.mxu1 }
 0x107   : > { %546 = vst [vmem:[%s929_s10 + $0x60] sm:$0xff] %v455_v60  ;;  %v576_v62 = vadd.f32 %v772_v51, %v575_v59  ;;  %562 = vst [vmem:[%s929_s10 + $0xe0] sm:$0xff] %v519_v61 }
 0x108   : > { %v776_v63 = vpop.f32.mrf.mxu0  ;;  %v792_v0 = vpop.f32.mrf.mxu1 }
 0x109   : > { %v577_v1 = vadd.f32 %v576_v62, %v455_v60  ;;  %549 = vst [vmem:[%s929_s10 + $0x78] sm:$0xff] %v776_v63  ;;  %565 = vst [vmem:[%s929_s10 + $0xf8] sm:$0xff] %v792_v0 }
 0x10a   : > { %v458_v2 = vpop.f32.mrf.mxu0  ;;  %v522_v3 = vpop.f32.mrf.mxu1 }
 0x10b   : > { %547 = vst [vmem:[%s929_s10 + $0x68] sm:$0xff] %v458_v2  ;;  %v578_v4 = vadd.f32 %v577_v1, %v458_v2  ;;  %563 = vst [vmem:[%s929_s10 + $0xe8] sm:$0xff] %v522_v3 }
 0x10d   : > { %v579_v5 = vadd.f32 %v775_v57, %v578_v4 }
 0x10f   : > { %v580_v6 = vadd.f32 %v776_v63, %v579_v5 }
 0x111   : > { %v581_v7 = vadd.f32 %v580_v6, %v936_v27 }
 0x113   : > { %v582_v8 = vadd.f32 %v581_v7, %v946_v31 }
 0x115   : > { %v583_v9 = vadd.f32 %v931_v25, %v582_v8 }
 0x117   : > { %v584_v10 = vadd.f32 %v941_v29, %v583_v9 }
 0x119   : > { %v585_v11 = vadd.f32 %v584_v10, %v487_v37 }
 0x11b   : > { %v586_v12 = vadd.f32 %v585_v11, %v490_v43 }
 0x11d   : > { %v587_v13 = vadd.f32 %v951_v34, %v586_v12 }
 0x11f   : > { %v588_v14 = vadd.f32 %v784_v40, %v587_v13 }
 0x121   : > { %v589_v15 = vadd.f32 %v588_v14, %v503_v49 }
 0x123   : > { %v590_v16 = vadd.f32 %v589_v15, %v506_v55 }
 0x125   : > { %v591_v17 = vadd.f32 %v787_v46, %v590_v16 }
 0x127   : > { %v592_v18 = vadd.f32 %v788_v52, %v591_v17 }
 0x129   : > { %v593_v19 = vadd.f32 %v592_v18, %v519_v61 }
 0x12b   : > { %v594_v20 = vadd.f32 %v593_v19, %v522_v3 }
 0x12d   : > { %v595_v21 = vadd.f32 %v791_v58, %v594_v20 }
 0x12f   : > { %v596_v22 = vadd.f32 %v792_v0, %v595_v21 }
 0x131   : > { %v597_v23 = vrot.slane %v596_v22, 4 }
 0x133   : > { %v598_v24 = vadd.f32 %v597_v23, %v596_v22 }
 0x135   : > { %v599_v26 = vrot.slane %v598_v24, 2 }
 0x137   : > { %v600_v25 = vadd.f32 %v599_v26, %v598_v24 }
 0x139   : > { %v601_v27 = vrot.slane %v600_v25, 1 }
 0x13b   : > { %v602_v28 = vadd.f32 %v601_v27, %v600_v25 }
 0x13d   : > { %603 = vst [vmem:[%s179_s15] sm:$0x1] %v602_v28 }
 0x13e PF: > { %s14_s12 = sadd.s32 1, %s847_s12  }
 0x13f   : > { %p11_p4 = scmp.ge.s32.totalorder %s14_s12, 4  }
 0x141   :  { %13 = sbr.rel (!%p11_p4) target bundleno = 1 (0x1), region = 70 }

// kernel: basic_block_large.7
= control target key start
LH: loop header
LB: loop body
LE: loop exit
PB: predicated region body
PF: predicated region fallthrough
CT: control target
= control target key end

     0   :  { %s582_s15 = smov 0   ;;  %s783_s0 = inlined_call_operand.vmem [shape: f32[2,16,16,128], index: 0, kind: input, shape index: {}]   ;;  %s784_s1 = inlined_call_operand.vmem [shape: f32[1,128], index: 1, kind: input, shape index: {}]   ;;  %s785_s2 = inlined_call_operand.vmem [shape: f32[1,128], index: 2, kind: input, shape index: {}]   ;;  %s786_s3 = inlined_call_operand.vmem [shape: f32[2,16,16,128], index: 3, kind: input, shape index: {}]   ;;  %s787_s4 = inlined_call_operand.vmem [shape: f32[2,16,16,128], index: 4, kind: output, shape index: {}]  }
   0x1 LB: > { %s523_s16 = sadd.s32 4294967295, %s555_s15   ;;  %p527_p0 = scmp.ge.s32.totalorder %s555_s15, 1  ;;  %s555_s15 = sphi %s582_s15, %s14_s15  }
   0x2   : > { %p172_p1 = scmp.lt.s32.totalorder %s555_s15, 3 }
   0x4   : > { %p173_p2 = pnand %p527_p0, %p172_p1 }
   0x5   : > { %p203_p3 = scmp.lt.s32.totalorder (!%p173_p2), %s523_s16, 1 }
   0x6   : > { %176 = sbr.rel (%p173_p2) target bundleno = 53 (0x35), region = 36 }
   0xb   : > { %s789_s16 = smov (!%p203_p3, %s523_s16), 1  ;;  %v595_v0 = vld [vmem:[%s784_s1] ss:$0 sm:$0xff] }
   0xc   : > { %s590_s17 = sshll.u32 %s789_s16, 8  ;;  %v612_v1 = vld [vmem:[%s785_s2] ss:$0 sm:$0xff] }
   0xd   : > { %s601_s22 = scalar_lea.vmem %s783_s0, %s590_s17  ;;  %s607_s25 = scalar_lea.vmem %s786_s3, %s590_s17 }
   0xe   : > { %v220_v2 = vld [vmem:[%s601_s22] sm:$0xff]  ;;  %v221_v3 = vld [vmem:[%s601_s22 + $0x8] sm:$0xff]  ;;  %v222_v7 = vld [vmem:[%s601_s22 + $0x10] sm:$0xff]  ;;  %s643_s30 = scalar_lea.vmem %s787_s4, %s590_s17 }
   0xf   : > { %v258_v4 = vmul.f32 %v595_v0, %v220_v2  ;;  %v328_v5 = vld [vmem:[%s607_s25] sm:$0xff]  ;;  %v259_v6 = vmul.f32 %v595_v0, %v221_v3  ;;  %v329_v8 = vld [vmem:[%s607_s25 + $0x8] sm:$0xff]  ;;  %v260_v9 = vmul.f32 %v595_v0, %v222_v7  ;;  %v223_v10 = vld [vmem:[%s601_s22 + $0x18] sm:$0xff] }
  0x10   : > { %v224_v11 = vld [vmem:[%s601_s22 + $0x20] sm:$0xff]  ;;  %v330_v14 = vld [vmem:[%s607_s25 + $0x10] sm:$0xff]  ;;  %v261_v15 = vmul.f32 %v595_v0, %v223_v10  ;;  %v331_v16 = vld [vmem:[%s607_s25 + $0x18] sm:$0xff] }
  0x11   : > { %v296_v12 = vadd.f32 %v612_v1, %v258_v4  ;;  %v297_v13 = vadd.f32 %v612_v1, %v259_v6  ;;  %v262_v17 = vmul.f32 %v595_v0, %v224_v11  ;;  %v225_v18 = vld [vmem:[%s601_s22 + $0x28] sm:$0xff]  ;;  %v298_v19 = vadd.f32 %v612_v1, %v260_v9  ;;  %v332_v20 = vld [vmem:[%s607_s25 + $0x20] sm:$0xff]  ;;  %v226_v22 = vld [vmem:[%s601_s22 + $0x30] sm:$0xff] }
  0x12   : > { %v263_v21 = vmul.f32 %v595_v0, %v225_v18  ;;  %v227_v23 = vld [vmem:[%s601_s22 + $0x38] sm:$0xff]  ;;  %v299_v26 = vadd.f32 %v612_v1, %v261_v15  ;;  %v333_v28 = vld [vmem:[%s607_s25 + $0x28] sm:$0xff]  ;;  %v264_v31 = vmul.f32 %v595_v0, %v226_v22  ;;  %v228_v33 = vld [vmem:[%s601_s22 + $0x40] sm:$0xff] }
  0x13   : > { %v360_v24 = vadd.f32 %v328_v5, %v296_v12  ;;  %v361_v25 = vadd.f32 %v329_v8, %v297_v13  ;;  %v300_v27 = vadd.f32 %v612_v1, %v262_v17  ;;  %v362_v29 = vadd.f32 %v330_v14, %v298_v19  ;;  %v229_v34 = vld [vmem:[%s601_s22 + $0x48] sm:$0xff]  ;;  %v334_v39 = vld [vmem:[%s607_s25 + $0x30] sm:$0xff]  ;;  %v335_v40 = vld [vmem:[%s607_s25 + $0x38] sm:$0xff] }
  0x14   : > { %v301_v30 = vadd.f32 %v612_v1, %v263_v21  ;;  %v265_v32 = vmul.f32 %v595_v0, %v227_v23  ;;  %v363_v37 = vadd.f32 %v331_v16, %v299_v26  ;;  %v230_v41 = vld [vmem:[%s601_s22 + $0x50] sm:$0xff]  ;;  %v302_v44 = vadd.f32 %v612_v1, %v264_v31  ;;  %v231_v46 = vld [vmem:[%s601_s22 + $0x58] sm:$0xff]  ;;  %v232_v47 = vld [vmem:[%s601_s22 + $0x60] sm:$0xff] }
  0x15   : > { %v392_v35 = vmax.f32 %v360_v24, 0.0  ;;  %v393_v36 = vmax.f32 %v361_v25, 0.0  ;;  %v364_v38 = vadd.f32 %v332_v20, %v300_v27  ;;  %v394_v42 = vmax.f32 %v362_v29, 0.0  ;;  %v233_v52 = vld [vmem:[%s601_s22 + $0x68] sm:$0xff]  ;;  %v336_v56 = vld [vmem:[%s607_s25 + $0x40] sm:$0xff]  ;;  %v338_v61 = vld [vmem:[%s607_s25 + $0x50] sm:$0xff] }
  0x16   : > { %v365_v43 = vadd.f32 %v333_v28, %v301_v30  ;;  %v303_v45 = vadd.f32 %v612_v1, %v265_v32  ;;  %v395_v48 = vmax.f32 %v363_v37, 0.0  ;;  %v266_v50 = vmul.f32 %v595_v0, %v228_v33  ;;  %v337_v57 = vld [vmem:[%s607_s25 + $0x48] sm:$0xff]  ;;  %v234_v2 = vld [vmem:[%s601_s22 + $0x70] sm:$0xff]  ;;  %v235_v3 = vld [vmem:[%s601_s22 + $0x78] sm:$0xff] }
  0x17   : > { %424 = vst [vmem:[%s643_s30] sm:$0xff] %v392_v35  ;;  %425 = vst [vmem:[%s643_s30 + $0x8] sm:$0xff] %v393_v36  ;;  %v396_v49 = vmax.f32 %v364_v38, 0.0  ;;  %v267_v51 = vmul.f32 %v595_v0, %v229_v34  ;;  %v366_v54 = vadd.f32 %v334_v39, %v302_v44  ;;  %v268_v58 = vmul.f32 %v595_v0, %v230_v41  ;;  %v339_v7 = vld [vmem:[%s607_s25 + $0x58] sm:$0xff]  ;;  %v340_v8 = vld [vmem:[%s607_s25 + $0x60] sm:$0xff] }
  0x18   : > { %426 = vst [vmem:[%s643_s30 + $0x10] sm:$0xff] %v394_v42  ;;  %v397_v53 = vmax.f32 %v365_v43, 0.0  ;;  %v367_v55 = vadd.f32 %v335_v40, %v303_v45  ;;  %427 = vst [vmem:[%s643_s30 + $0x18] sm:$0xff] %v395_v48  ;;  %v304_v59 = vadd.f32 %v612_v1, %v266_v50  ;;  %v269_v62 = vmul.f32 %v595_v0, %v231_v46  ;;  %v341_v14 = vld [vmem:[%s607_s25 + $0x68] sm:$0xff]  ;;  %v236_v19 = vld [vmem:[%s601_s22 + $0x80] sm:$0xff] }
  0x19   : > { %428 = vst [vmem:[%s643_s30 + $0x20] sm:$0xff] %v396_v49  ;;  %v305_v60 = vadd.f32 %v612_v1, %v267_v51  ;;  %v270_v63 = vmul.f32 %v595_v0, %v232_v47  ;;  %v398_v4 = vmax.f32 %v366_v54, 0.0  ;;  %v306_v6 = vadd.f32 %v612_v1, %v268_v58  ;;  %v237_v20 = vld [vmem:[%s601_s22 + $0x88] sm:$0xff]  ;;  %v342_v25 = vld [vmem:[%s607_s25 + $0x70] sm:$0xff]  ;;  %v343_v26 = vld [vmem:[%s607_s25 + $0x78] sm:$0xff] }
  0x1a   : > { %429 = vst [vmem:[%s643_s30 + $0x28] sm:$0xff] %v397_v53  ;;  %v399_v5 = vmax.f32 %v367_v55, 0.0  ;;  %v271_v9 = vmul.f32 %v595_v0, %v233_v52  ;;  %v368_v10 = vadd.f32 %v336_v56, %v304_v59  ;;  %v307_v12 = vadd.f32 %v612_v1, %v269_v62  ;;  %v238_v27 = vld [vmem:[%s601_s22 + $0x90] sm:$0xff]  ;;  %v239_v32 = vld [vmem:[%s601_s22 + $0x98] sm:$0xff]  ;;  %v240_v33 = vld [vmem:[%s601_s22 + $0xa0] sm:$0xff] }
  0x1b   : > { %v369_v11 = vadd.f32 %v337_v57, %v305_v60  ;;  %v308_v13 = vadd.f32 %v612_v1, %v270_v63  ;;  %430 = vst [vmem:[%s643_s30 + $0x30] sm:$0xff] %v398_v4  ;;  %v370_v15 = vadd.f32 %v338_v61, %v306_v6  ;;  %v272_v17 = vmul.f32 %v595_v0, %v234_v2  ;;  %v241_v38 = vld [vmem:[%s601_s22 + $0xa8] sm:$0xff]  ;;  %v344_v42 = vld [vmem:[%s607_s25 + $0x80] sm:$0xff]  ;;  %v346_v47 = vld [vmem:[%s607_s25 + $0x90] sm:$0xff] }
  0x1c   : > { %431 = vst [vmem:[%s643_s30 + $0x38] sm:$0xff] %v399_v5  ;;  %v309_v16 = vadd.f32 %v612_v1, %v271_v9  ;;  %v273_v18 = vmul.f32 %v595_v0, %v235_v3  ;;  %v400_v21 = vmax.f32 %v368_v10, 0.0  ;;  %v371_v23 = vadd.f32 %v339_v7, %v307_v12  ;;  %v345_v43 = vld [vmem:[%s607_s25 + $0x88] sm:$0xff]  ;;  %v242_v50 = vld [vmem:[%s601_s22 + $0xb0] sm:$0xff]  ;;  %v243_v51 = vld [vmem:[%s601_s22 + $0xb8] sm:$0xff] }
  0x1d   : > { %v401_v22 = vmax.f32 %v369_v11, 0.0  ;;  %v372_v24 = vadd.f32 %v340_v8, %v308_v13  ;;  %v402_v28 = vmax.f32 %v370_v15, 0.0  ;;  %v310_v30 = vadd.f32 %v612_v1, %v272_v17  ;;  %v347_v55 = vld [vmem:[%s607_s25 + $0x98] sm:$0xff]  ;;  %v348_v56 = vld [vmem:[%s607_s25 + $0xa0] sm:$0xff]  ;;  %v349_v62 = vld [vmem:[%s607_s25 + $0xa8] sm:$0xff] }
  0x1e   : > { %v373_v29 = vadd.f32 %v341_v14, %v309_v16  ;;  %v311_v31 = vadd.f32 %v612_v1, %v273_v18  ;;  %432 = vst [vmem:[%s643_s30 + $0x40] sm:$0xff] %v400_v21  ;;  %v403_v34 = vmax.f32 %v371_v23, 0.0  ;;  %v274_v36 = vmul.f32 %v595_v0, %v236_v19  ;;  %v244_v5 = vld [vmem:[%s601_s22 + $0xc0] sm:$0xff]  ;;  %v245_v6 = vld [vmem:[%s601_s22 + $0xc8] sm:$0xff]  ;;  %v350_v11 = vld [vmem:[%s607_s25 + $0xb0] sm:$0xff] }
  0x1f   : > { %433 = vst [vmem:[%s643_s30 + $0x48] sm:$0xff] %v401_v22  ;;  %v404_v35 = vmax.f32 %v372_v24, 0.0  ;;  %v275_v37 = vmul.f32 %v595_v0, %v237_v20  ;;  %434 = vst [vmem:[%s643_s30 + $0x50] sm:$0xff] %v402_v28  ;;  %v374_v40 = vadd.f32 %v342_v25, %v310_v30  ;;  %v276_v44 = vmul.f32 %v595_v0, %v238_v27  ;;  %v351_v12 = vld [vmem:[%s607_s25 + $0xb8] sm:$0xff]  ;;  %v246_v13 = vld [vmem:[%s601_s22 + $0xd0] sm:$0xff] }
  0x20   : > { %v405_v39 = vmax.f32 %v373_v29, 0.0  ;;  %v375_v41 = vadd.f32 %v343_v26, %v311_v31  ;;  %435 = vst [vmem:[%s643_s30 + $0x58] sm:$0xff] %v403_v34  ;;  %v312_v45 = vadd.f32 %v612_v1, %v274_v36  ;;  %v277_v48 = vmul.f32 %v595_v0, %v239_v32  ;;  %v247_v18 = vld [vmem:[%s601_s22 + $0xd8] sm:$0xff]  ;;  %v248_v19 = vld [vmem:[%s601_s22 + $0xe0] sm:$0xff]  ;;  %v249_v24 = vld [vmem:[%s601_s22 + $0xe8] sm:$0xff] }
  0x21   : > { %436 = vst [vmem:[%s643_s30 + $0x60] sm:$0xff] %v404_v35  ;;  %v313_v46 = vadd.f32 %v612_v1, %v275_v37  ;;  %v278_v49 = vmul.f32 %v595_v0, %v240_v33  ;;  %v406_v52 = vmax.f32 %v374_v40, 0.0  ;;  %v314_v54 = vadd.f32 %v612_v1, %v276_v44  ;;  %v352_v28 = vld [vmem:[%s607_s25 + $0xc0] sm:$0xff]  ;;  %v353_v29 = vld [vmem:[%s607_s25 + $0xc8] sm:$0xff]  ;;  %v354_v33 = vld [vmem:[%s607_s25 + $0xd0] sm:$0xff] }
  0x22   : > { %437 = vst [vmem:[%s643_s30 + $0x68] sm:$0xff] %v405_v39  ;;  %v407_v53 = vmax.f32 %v375_v41, 0.0  ;;  %v279_v57 = vmul.f32 %v595_v0, %v241_v38  ;;  %v376_v58 = vadd.f32 %v344_v42, %v312_v45  ;;  %v315_v60 = vadd.f32 %v612_v1, %v277_v48  ;;  %v250_v36 = vld [vmem:[%s601_s22 + $0xf0] sm:$0xff]  ;;  %v251_v37 = vld [vmem:[%s601_s22 + $0xf8] sm:$0xff]  ;;  %v356_v42 = vld [vmem:[%s607_s25 + $0xe0] sm:$0xff] }
  0x23   : > { %v377_v59 = vadd.f32 %v345_v43, %v313_v46  ;;  %v316_v61 = vadd.f32 %v612_v1, %v278_v49  ;;  %438 = vst [vmem:[%s643_s30 + $0x70] sm:$0xff] %v406_v52  ;;  %v378_v63 = vadd.f32 %v346_v47, %v314_v54  ;;  %v280_v3 = vmul.f32 %v595_v0, %v242_v50  ;;  %v355_v41 = vld [vmem:[%s607_s25 + $0xd8] sm:$0xff]  ;;  %v357_v48 = vld [vmem:[%s607_s25 + $0xe8] sm:$0xff] }
  0x24   : > { %439 = vst [vmem:[%s643_s30 + $0x78] sm:$0xff] %v407_v53  ;;  %v317_v2 = vadd.f32 %v612_v1, %v279_v57  ;;  %v281_v4 = vmul.f32 %v595_v0, %v243_v51  ;;  %v408_v7 = vmax.f32 %v376_v58, 0.0  ;;  %v379_v9 = vadd.f32 %v347_v55, %v315_v60  ;;  %v358_v57 = vld [vmem:[%s607_s25 + $0xf0] sm:$0xff]  ;;  %v359_v58 = vld [vmem:[%s607_s25 + $0xf8] sm:$0xff] }
  0x25   : > { %v409_v8 = vmax.f32 %v377_v59, 0.0  ;;  %v380_v10 = vadd.f32 %v348_v56, %v316_v61  ;;  %v410_v14 = vmax.f32 %v378_v63, 0.0  ;;  %v318_v16 = vadd.f32 %v612_v1, %v280_v3 }
  0x26   : > { %v381_v15 = vadd.f32 %v349_v62, %v317_v2  ;;  %v319_v17 = vadd.f32 %v612_v1, %v281_v4  ;;  %440 = vst [vmem:[%s643_s30 + $0x80] sm:$0xff] %v408_v7  ;;  %v411_v20 = vmax.f32 %v379_v9, 0.0  ;;  %v282_v22 = vmul.f32 %v595_v0, %v244_v5 }
  0x27   : > { %441 = vst [vmem:[%s643_s30 + $0x88] sm:$0xff] %v409_v8  ;;  %v412_v21 = vmax.f32 %v380_v10, 0.0  ;;  %v283_v23 = vmul.f32 %v595_v0, %v245_v6  ;;  %442 = vst [vmem:[%s643_s30 + $0x90] sm:$0xff] %v410_v14  ;;  %v382_v26 = vadd.f32 %v350_v11, %v318_v16  ;;  %v284_v30 = vmul.f32 %v595_v0, %v246_v13 }
  0x28   : > { %v413_v25 = vmax.f32 %v381_v15, 0.0  ;;  %v383_v27 = vadd.f32 %v351_v12, %v319_v17  ;;  %443 = vst [vmem:[%s643_s30 + $0x98] sm:$0xff] %v411_v20  ;;  %v320_v31 = vadd.f32 %v612_v1, %v282_v22  ;;  %v285_v34 = vmul.f32 %v595_v0, %v247_v18 }
  0x29   : > { %444 = vst [vmem:[%s643_s30 + $0xa0] sm:$0xff] %v412_v21  ;;  %v321_v32 = vadd.f32 %v612_v1, %v283_v23  ;;  %v286_v35 = vmul.f32 %v595_v0, %v248_v19  ;;  %v414_v38 = vmax.f32 %v382_v26, 0.0  ;;  %v322_v40 = vadd.f32 %v612_v1, %v284_v30 }
  0x2a   : > { %445 = vst [vmem:[%s643_s30 + $0xa8] sm:$0xff] %v413_v25  ;;  %v415_v39 = vmax.f32 %v383_v27, 0.0  ;;  %v287_v43 = vmul.f32 %v595_v0, %v249_v24  ;;  %v384_v44 = vadd.f32 %v352_v28, %v320_v31  ;;  %v323_v46 = vadd.f32 %v612_v1, %v285_v34 }
  0x2b   : > { %v385_v45 = vadd.f32 %v353_v29, %v321_v32  ;;  %v324_v47 = vadd.f32 %v612_v1, %v286_v35  ;;  %446 = vst [vmem:[%s643_s30 + $0xb0] sm:$0xff] %v414_v38  ;;  %v386_v49 = vadd.f32 %v354_v33, %v322_v40  ;;  %v288_v51 = vmul.f32 %v595_v0, %v250_v36 }
  0x2c   : > { %447 = vst [vmem:[%s643_s30 + $0xb8] sm:$0xff] %v415_v39  ;;  %v325_v50 = vadd.f32 %v612_v1, %v287_v43  ;;  %v289_v52 = vmul.f32 %v595_v0, %v251_v37  ;;  %v416_v53 = vmax.f32 %v384_v44, 0.0  ;;  %v387_v55 = vadd.f32 %v355_v41, %v323_v46 }
  0x2d   : > { %v417_v54 = vmax.f32 %v385_v45, 0.0  ;;  %v388_v56 = vadd.f32 %v356_v42, %v324_v47  ;;  %v418_v59 = vmax.f32 %v386_v49, 0.0  ;;  %v326_v61 = vadd.f32 %v612_v1, %v288_v51 }
  0x2e   : > { %v389_v60 = vadd.f32 %v357_v48, %v325_v50  ;;  %v327_v62 = vadd.f32 %v612_v1, %v289_v52  ;;  %448 = vst [vmem:[%s643_s30 + $0xc0] sm:$0xff] %v416_v53  ;;  %v419_v0 = vmax.f32 %v387_v55, 0.0 }
  0x2f   : > { %449 = vst [vmem:[%s643_s30 + $0xc8] sm:$0xff] %v417_v54  ;;  %v420_v63 = vmax.f32 %v388_v56, 0.0  ;;  %450 = vst [vmem:[%s643_s30 + $0xd0] sm:$0xff] %v418_v59  ;;  %v390_v3 = vadd.f32 %v358_v57, %v326_v61 }
  0x30   : > { %v421_v2 = vmax.f32 %v389_v60, 0.0  ;;  %v391_v4 = vadd.f32 %v359_v58, %v327_v62  ;;  %451 = vst [vmem:[%s643_s30 + $0xd8] sm:$0xff] %v419_v0 }
  0x31   : > { %452 = vst [vmem:[%s643_s30 + $0xe0] sm:$0xff] %v420_v63  ;;  %v422_v5 = vmax.f32 %v390_v3, 0.0 }
  0x32   : > { %453 = vst [vmem:[%s643_s30 + $0xe8] sm:$0xff] %v421_v2  ;;  %v423_v6 = vmax.f32 %v391_v4, 0.0 }
  0x33   : > { %454 = vst [vmem:[%s643_s30 + $0xf0] sm:$0xff] %v422_v5 }
  0x34   : > { %455 = vst [vmem:[%s643_s30 + $0xf8] sm:$0xff] %v423_v6 }
  0x35 PF: > { %s14_s15 = sadd.s32 1, %s555_s15  }
  0x36   : > { %p11_p4 = scmp.ge.s32.totalorder %s14_s15, 4  }
  0x38   :  { %13 = sbr.rel (!%p11_p4) target bundleno = 1 (0x1), region = 69 }

// kernel: basic_block_large.5
= control target key start
LH: loop header
LB: loop body
LE: loop exit
PB: predicated region body
PF: predicated region fallthrough
CT: control target
= control target key end

     0   :  { %s4293_s18 = smov 0   ;;  %s5572_s0 = inlined_call_operand.vmem [shape: f32[2,16,16,128], index: 0, kind: input, shape index: {}]   ;;  %s5573_s1 = inlined_call_operand.vmem [shape: f32[1,128], index: 1, kind: input, shape index: {}]   ;;  %s5574_s2 = inlined_call_operand.vmem [shape: f32[1,128], index: 2, kind: input, shape index: {}]   ;;  %s5575_s3 = inlined_call_operand.vmem [shape: bf16[9,128,128], index: 3, kind: input, shape index: {}]   ;;  %s5576_s4 = inlined_call_operand.vmem [shape: f32[2,16,16,128], index: 4, kind: output, shape index: {0}]   ;;  %s5577_s5 = inlined_call_operand.vmem [shape: f32[2,1,128], index: 5, kind: output, shape index: {1}]  }
   0x1 LB: > { %s3293_s19 = sadd.s32 4294967295, %s4260_s18   ;;  %p3297_p0 = scmp.ge.s32.totalorder %s4260_s18, 1  ;;  %s4260_s18 = sphi %s4293_s18, %s16_s18  }
   0x2   : > { %p190_p1 = scmp.lt.s32.totalorder %s4260_s18, 3 }
   0x4   : > { %p191_p2 = pnand %p3297_p0, %p190_p1 }
   0x6   : > { %194 = sbr.rel (%p191_p2) target bundleno = 546 (0x222), region = 36 }
   0xb   : > { %v4181_v0 = vld [vmem:[%s5575_s3 + $0x78] sm:$0xff]   ;;  %v4182_v1 = vld [vmem:[%s5575_s3 + $0x70] sm:$0xff]   ;;  %v4262_v2 = vmov 0.0   ;;  %p221_p3 = scmp.lt.s32.totalorder %s3293_s19, 1  ;;  %v4183_v3 = vld [vmem:[%s5575_s3 + $0x68] sm:$0xff]  }
   0xc   : > { %377 = vst [vmem:[#allocation2] sm:$0xff] %v4262_v2  ;;  %378 = vst [vmem:[#allocation2 + $0x8] sm:$0xff] %v4262_v2  ;;  %3724 = vmatprep.subr.bf16.mxu0 %v4181_v0  ;;  %4156 = vmatprep.subr.bf16.mxu1 %v4181_v0  ;;  %v4184_v4 = vld [vmem:[%s5575_s3 + $0x60] sm:$0xff]   ;;  %v4185_v21 = vld [vmem:[%s5575_s3 + $0x58] sm:$0xff]  }
   0xd   : > { %379 = vst [vmem:[#allocation2 + $0x10] sm:$0x3] %v4262_v2  ;;  %381 = vst [vmem:[#allocation2 + $0x198] sm:$0xff] %v4262_v2  ;;  %3725 = vmatpush3.bf16.msra.mxu0 %v4181_v0  ;;  %4164 = vmatpush3.bf16.msra.mxu1 %v4181_v0  ;;  %s5661_s19 = smov (!%p221_p3, %s3293_s19), 1  ;;  %v4372_v7 = vld [vmem:[%s5573_s1] ss:$0 sm:$0xff] }
   0xe   : > { %382 = vst [vmem:[#allocation2 + $0x1a0] sm:$0xff] %v4262_v2  ;;  %383 = vst [vmem:[#allocation2 + $0x1a8] sm:$0x3] %v4262_v2  ;;  %3726 = vmatprep.subr.bf16.mxu0 %v4182_v1  ;;  %4157 = vmatprep.subr.bf16.mxu1 %v4182_v1  ;;  %s3506_s26 = sshll.u32 %s5661_s19, 8  ;;  %v4377_v9 = vld [vmem:[%s5574_s2] ss:$0 sm:$0xff] }
   0xf   : > { %385 = vst [vmem:[#allocation2 + $0x18] sm:$0x1] %v4262_v2  ;;  %386 = vst [vmem:[#allocation2 + $0x30] sm:$0x1] %v4262_v2  ;;  %s4364_s29 = scalar_lea.vmem %s5572_s0, %s3506_s26  ;;  %v4186_v28 = vld [vmem:[%s5575_s3 + $0x50] sm:$0xff]   ;;  %v4187_v55 = vld [vmem:[%s5575_s3 + $0x48] sm:$0xff]   ;;  %s5445_s22 = scalar_lea.vmem %s5576_s4, %s3506_s26 }
  0x10   : > { %387 = vst [vmem:[#allocation2 + $0x48] sm:$0x1] %v4262_v2  ;;  %388 = vst [vmem:[#allocation2 + $0x60] sm:$0x1] %v4262_v2  ;;  %v251_v10 = vld [vmem:[%s4364_s29 + $0x70] sm:$0xff]  ;;  %v252_v11 = vld [vmem:[%s4364_s29 + $0x78] sm:$0xff] }
  0x11   : > { %389 = vst [vmem:[#allocation2 + $0x78] sm:$0x1] %v4262_v2  ;;  %390 = vst [vmem:[#allocation2 + $0x90] sm:$0x1] %v4262_v2  ;;  %3727 = vmatpush3.bf16.msra.mxu0 %v4182_v1  ;;  %4165 = vmatpush3.bf16.msra.mxu1 %v4182_v1  ;;  %v289_v12 = vmul.f32 %v4372_v7, %v251_v10  ;;  %v290_v13 = vmul.f32 %v4372_v7, %v252_v11  ;;  %v237_v14 = vld [vmem:[%s4364_s29] sm:$0xff]  ;;  %v238_v15 = vld [vmem:[%s4364_s29 + $0x8] sm:$0xff] }
  0x12   : > { %391 = vst [vmem:[#allocation2 + $0xa8] sm:$0x1] %v4262_v2  ;;  %392 = vst [vmem:[#allocation2 + $0xc0] sm:$0x1] %v4262_v2  ;;  %3728 = vmatprep.subr.bf16.mxu0 %v4183_v3  ;;  %4158 = vmatprep.subr.bf16.mxu1 %v4183_v3  ;;  %v253_v16 = vld [vmem:[%s4364_s29 + $0x80] sm:$0xff]  ;;  %v275_v17 = vmul.f32 %v4372_v7, %v237_v14  ;;  %v276_v18 = vmul.f32 %v4372_v7, %v238_v15  ;;  %v254_v19 = vld [vmem:[%s4364_s29 + $0x88] sm:$0xff] }
  0x13   : > { %393 = vst [vmem:[#allocation2 + $0xd8] sm:$0x1] %v4262_v2  ;;  %394 = vst [vmem:[#allocation2 + $0xf0] sm:$0x1] %v4262_v2  ;;  %v517_v5 = vld [vmem:[#allocation2 + $0x1] sm:$0xff]  ;;  %v291_v20 = vmul.f32 %v4372_v7, %v253_v16  ;;  %v327_v22 = vadd.f32 %v4377_v9, %v289_v12  ;;  %v328_v23 = vadd.f32 %v4377_v9, %v290_v13  ;;  %v239_v35 = vld [vmem:[%s4364_s29 + $0x10] sm:$0xff] }
  0x14   : > { %395 = vst [vmem:[#allocation2 + $0x108] sm:$0x1] %v4262_v2  ;;  %396 = vst [vmem:[#allocation2 + $0x120] sm:$0x1] %v4262_v2  ;;  %v518_v6 = vld [vmem:[#allocation2 + $0x9] sm:$0xff]  ;;  %v292_v24 = vmul.f32 %v4372_v7, %v254_v19  ;;  %v4397_v25 = vadd.f32 %v4377_v9, %v275_v17  ;;  %v4400_v26 = vadd.f32 %v4377_v9, %v276_v18  ;;  %v240_v38 = vld [vmem:[%s4364_s29 + $0x18] sm:$0xff] }
  0x15   : > { %397 = vst [vmem:[#allocation2 + $0x138] sm:$0x1] %v4262_v2  ;;  %398 = vst [vmem:[#allocation2 + $0x150] sm:$0x1] %v4262_v2  ;;  %v549_v8 = vpack.c.bf16 %v518_v6, %v517_v5  ;;  %3729 = vmatpush3.bf16.msra.mxu0 %v4183_v3  ;;  %4166 = vmatpush3.bf16.msra.mxu1 %v4183_v3  ;;  %v4403_v27 = vadd.f32 %v4377_v9, %v291_v20  ;;  %v359_v29 = vmax.f32 %v327_v22, 0.0  ;;  %v255_v40 = vld [vmem:[%s4364_s29 + $0x90] sm:$0xff] }
  0x16   : > { %399 = vst [vmem:[#allocation2 + $0x168] sm:$0x1] %v4262_v2  ;;  %400 = vst [vmem:[#allocation2 + $0x180] sm:$0x1] %v4262_v2  ;;  %3730 = vmatprep.subr.bf16.mxu0 %v4184_v4  ;;  %4159 = vmatprep.subr.bf16.mxu1 %v4184_v4  ;;  %v360_v30 = vmax.f32 %v328_v23, 0.0  ;;  %v4409_v31 = vadd.f32 %v4377_v9, %v292_v24  ;;  %v345_v32 = vmax.f32 %v4397_v25, 0.0 }
  0x17   : > { %403 = vst [vmem:[#allocation2 + $0x29] sm:$0x1] %v4262_v2  ;;  %404 = vst [vmem:[#allocation2 + $0x41] sm:$0x1] %v4262_v2  ;;  %3740 = vmatprep.mubr.bf16.mxu0 %v549_v8  ;;  %v346_v33 = vmax.f32 %v4400_v26, 0.0  ;;  %v361_v34 = vmax.f32 %v4403_v27, 0.0  ;;  %v277_v39 = vmul.f32 %v4372_v7, %v239_v35  ;;  %v278_v42 = vmul.f32 %v4372_v7, %v240_v38 }
  0x18   : > { %405 = vst [vmem:[#allocation2 + $0x59] sm:$0x1] %v4262_v2  ;;  %406 = vst [vmem:[#allocation2 + $0x71] sm:$0x1] %v4262_v2  ;;  %v557_v36 = vpack.c.bf16 %v360_v30, %v359_v29  ;;  %v362_v37 = vmax.f32 %v4409_v31, 0.0  ;;  %v256_v41 = vld [vmem:[%s4364_s29 + $0x98] sm:$0xff]  ;;  %v293_v43 = vmul.f32 %v4372_v7, %v255_v40 }
  0x19   : > { %407 = vst [vmem:[#allocation2 + $0x89] sm:$0x1] %v4262_v2  ;;  %408 = vst [vmem:[#allocation2 + $0xa1] sm:$0x1] %v4262_v2  ;;  %3731 = vmatpush3.bf16.msra.mxu0 %v4184_v4  ;;  %4167 = vmatpush3.bf16.msra.mxu1 %v4184_v4  ;;  %v294_v44 = vmul.f32 %v4372_v7, %v256_v41  ;;  %v241_v45 = vld [vmem:[%s4364_s29 + $0x20] sm:$0xff]  ;;  %v242_v46 = vld [vmem:[%s4364_s29 + $0x28] sm:$0xff]  ;;  %v4435_v48 = vadd.f32 %v4377_v9, %v277_v39 }
  0x1a   : > { %409 = vst [vmem:[#allocation2 + $0xb9] sm:$0x1] %v4262_v2  ;;  %410 = vst [vmem:[#allocation2 + $0xd1] sm:$0x1] %v4262_v2  ;;  %3732 = vmatprep.subr.bf16.mxu0 %v4185_v21  ;;  %4160 = vmatprep.subr.bf16.mxu1 %v4185_v21  ;;  %v257_v47 = vld [vmem:[%s4364_s29 + $0xa0] sm:$0xff]  ;;  %v279_v49 = vmul.f32 %v4372_v7, %v241_v45  ;;  %v280_v50 = vmul.f32 %v4372_v7, %v242_v46  ;;  %v258_v51 = vld [vmem:[%s4364_s29 + $0xa8] sm:$0xff] }
  0x1b   : > { %411 = vst [vmem:[#allocation2 + $0xe9] sm:$0x1] %v4262_v2  ;;  %412 = vst [vmem:[#allocation2 + $0x101] sm:$0x1] %v4262_v2  ;;  %3756 = vmatprep.mubr.bf16.mxu1 %v557_v36  ;;  %v4441_v52 = vadd.f32 %v4377_v9, %v278_v42  ;;  %v4444_v53 = vadd.f32 %v4377_v9, %v293_v43  ;;  %v4447_v54 = vadd.f32 %v4377_v9, %v294_v44  ;;  %v4467_v0 = vld [vmem:[%s5575_s3 + $0x40] sm:$0xff]   ;;  %v243_v5 = vld [vmem:[%s4364_s29 + $0x30] sm:$0xff] }
  0x1c   : > { %413 = vst [vmem:[#allocation2 + $0x119] sm:$0x1] %v4262_v2  ;;  %414 = vst [vmem:[#allocation2 + $0x131] sm:$0x1] %v4262_v2  ;;  %v347_v56 = vmax.f32 %v4435_v48, 0.0  ;;  %v4454_v57 = vadd.f32 %v4377_v9, %v279_v49  ;;  %v4457_v58 = vadd.f32 %v4377_v9, %v280_v50  ;;  %v295_v59 = vmul.f32 %v4372_v7, %v257_v47  ;;  %v244_v8 = vld [vmem:[%s4364_s29 + $0x38] sm:$0xff] }
  0x1d   : > { %415 = vst [vmem:[#allocation2 + $0x149] sm:$0x1] %v4262_v2  ;;  %416 = vst [vmem:[#allocation2 + $0x161] sm:$0x1] %v4262_v2  ;;  %3733 = vmatpush3.bf16.msra.mxu0 %v4185_v21  ;;  %4168 = vmatpush3.bf16.msra.mxu1 %v4185_v21  ;;  %v348_v60 = vmax.f32 %v4441_v52, 0.0  ;;  %v363_v61 = vmax.f32 %v4444_v53, 0.0  ;;  %v296_v63 = vmul.f32 %v4372_v7, %v258_v51 }
  0x1e   : > { %417 = vst [vmem:[#allocation2 + $0x179] sm:$0x1] %v4262_v2  ;;  %418 = vst [vmem:[#allocation2 + $0x191] sm:$0x1] %v4262_v2  ;;  %3734 = vmatprep.subr.bf16.mxu0 %v4186_v28  ;;  %4161 = vmatprep.subr.bf16.mxu1 %v4186_v28  ;;  %v364_v62 = vmax.f32 %v4447_v54, 0.0  ;;  %v349_v1 = vmax.f32 %v4454_v57, 0.0  ;;  %v4474_v4 = vadd.f32 %v4377_v9, %v295_v59 }
  0x1f   : > { %402 = vst [vmem:[#allocation2 + $0x11] sm:$0x1] %v4262_v2  ;;  %384 = vst [vmem:[#allocation2] sm:$0x1] %v4262_v2  ;;  %v350_v3 = vmax.f32 %v4457_v58, 0.0  ;;  %v4484_v6 = vadd.f32 %v4377_v9, %v296_v63  ;;  %v259_v10 = vld [vmem:[%s4364_s29 + $0xb0] sm:$0xff]  ;;  %v281_v13 = vmul.f32 %v4372_v7, %v243_v5  ;;  %v282_v14 = vmul.f32 %v4372_v7, %v244_v8 }
  0x20   : > { %401 = vst [vmem:[#allocation2 + $0x198] sm:$0x1] %v4262_v2  ;;  %419 = vst [vmem:[#allocation2 + $0x1a9] sm:$0x1] %v4262_v2  ;;  %v260_v11 = vld [vmem:[%s4364_s29 + $0xb8] sm:$0xff]  ;;  %v365_v12 = vmax.f32 %v4474_v4, 0.0  ;;  %v297_v19 = vmul.f32 %v4372_v7, %v259_v10  ;;  %v558_v46 = vpack.c.bf16 %v362_v37, %v361_v34 }
  0x21   : > { %435 = vst [vmem:[#allocation2 + $0xc1] sm:$0xff] %v359_v29  ;;  %436 = vst [vmem:[#allocation2 + $0xc9] sm:$0xff] %v360_v30  ;;  %3735 = vmatpush3.bf16.msra.mxu0 %v4186_v28  ;;  %4169 = vmatpush3.bf16.msra.mxu1 %v4186_v28  ;;  %v245_v15 = vld [vmem:[%s4364_s29 + $0x40] sm:$0xff]  ;;  %v246_v16 = vld [vmem:[%s4364_s29 + $0x48] sm:$0xff]  ;;  %v366_v18 = vmax.f32 %v4484_v6, 0.0  ;;  %v298_v20 = vmul.f32 %v4372_v7, %v260_v11  ;;  %v4506_v22 = vadd.f32 %v4377_v9, %v281_v13 }
  0x22   : > { %421 = vst [vmem:[#allocation2 + $0x19] sm:$0xff] %v345_v32  ;;  %422 = vst [vmem:[#allocation2 + $0x21] sm:$0xff] %v346_v33  ;;  %3736 = vmatprep.subr.bf16.mxu0 %v4187_v55  ;;  %4162 = vmatprep.subr.bf16.mxu1 %v4187_v55  ;;  %v261_v17 = vld [vmem:[%s4364_s29 + $0xc0] sm:$0xff]  ;;  %v283_v21 = vmul.f32 %v4372_v7, %v245_v15  ;;  %v4509_v23 = vadd.f32 %v4377_v9, %v282_v14  ;;  %v262_v28 = vld [vmem:[%s4364_s29 + $0xc8] sm:$0xff] }
  0x23   : > { %437 = vst [vmem:[#allocation2 + $0xd9] sm:$0xff] %v361_v34  ;;  %438 = vst [vmem:[#allocation2 + $0xe1] sm:$0xff] %v362_v37  ;;  %v284_v24 = vmul.f32 %v4372_v7, %v246_v16  ;;  %v299_v29 = vmul.f32 %v4372_v7, %v261_v17  ;;  %v4518_v30 = vpack.c.bf16 %v346_v33, %v345_v32  ;;  %v4189_v25 = vld [vmem:[%s5575_s3 + $0x38] sm:$0xff]   ;;  %v351_v32 = vmax.f32 %v4506_v22, 0.0  ;;  %v247_v44 = vld [vmem:[%s4364_s29 + $0x50] sm:$0xff] }
  0x24   : > { %423 = vst [vmem:[#allocation2 + $0x31] sm:$0xff] %v347_v56  ;;  %424 = vst [vmem:[#allocation2 + $0x39] sm:$0xff] %v348_v60  ;;  %v4523_v35 = vadd.f32 %v4377_v9, %v297_v19  ;;  %v4526_v36 = vadd.f32 %v4377_v9, %v298_v20  ;;  %v4190_v26 = vld [vmem:[%s5575_s3 + $0xb8] sm:$0xff]   ;;  %v352_v33 = vmax.f32 %v4509_v23, 0.0  ;;  %v4539_v38 = vadd.f32 %v4377_v9, %v283_v21  ;;  %v263_v51 = vld [vmem:[%s4364_s29 + $0xd0] sm:$0xff] }
  0x25   : > { %439 = vst [vmem:[#allocation2 + $0xf1] sm:$0xff] %v363_v61  ;;  %440 = vst [vmem:[#allocation2 + $0xf9] sm:$0xff] %v364_v62  ;;  %3737 = vmatpush3.bf16.msra.mxu0 %v4187_v55  ;;  %4170 = vmatpush3.bf16.msra.mxu1 %v4187_v55  ;;  %v4542_v39 = vadd.f32 %v4377_v9, %v284_v24  ;;  %v300_v42 = vmul.f32 %v4372_v7, %v262_v28  ;;  %v248_v45 = vld [vmem:[%s4364_s29 + $0x58] sm:$0xff]  ;;  %v249_v27 = vld [vmem:[%s4364_s29 + $0x60] sm:$0xff] }
  0x26   : > { %425 = vst [vmem:[#allocation2 + $0x49] sm:$0xff] %v349_v1  ;;  %426 = vst [vmem:[#allocation2 + $0x51] sm:$0xff] %v350_v3  ;;  %3738 = vmatprep.subr.bf16.mxu0 %v4467_v0  ;;  %4163 = vmatprep.subr.bf16.mxu1 %v4467_v0  ;;  %v367_v40 = vmax.f32 %v4523_v35, 0.0  ;;  %v368_v41 = vmax.f32 %v4526_v36, 0.0  ;;  %v4548_v43 = vadd.f32 %v4377_v9, %v299_v29  ;;  %v353_v47 = vmax.f32 %v4539_v38, 0.0  ;;  %v264_v55 = vld [vmem:[%s4364_s29 + $0xd8] sm:$0xff] }
  0x27   : > { %441 = vst [vmem:[#allocation2 + $0x109] sm:$0xff] %v365_v12  ;;  %442 = vst [vmem:[#allocation2 + $0x111] sm:$0xff] %v366_v18  ;;  %v354_v49 = vmax.f32 %v4542_v39, 0.0  ;;  %v285_v50 = vmul.f32 %v4372_v7, %v247_v44  ;;  %v4191_v31 = vld [vmem:[%s5575_s3 + $0x30] sm:$0xff]   ;;  %v4575_v34 = vpack.c.bf16 %v348_v60, %v347_v56  ;;  %v4582_v37 = vadd.f32 %v4377_v9, %v300_v42  ;;  %v265_v48 = vld [vmem:[%s4364_s29 + $0xe0] sm:$0xff] }
  0x28   : > { %427 = vst [vmem:[#allocation2 + $0x61] sm:$0xff] %v351_v32  ;;  %428 = vst [vmem:[#allocation2 + $0x69] sm:$0xff] %v352_v33  ;;  %v369_v59 = vmax.f32 %v4548_v43, 0.0  ;;  %v286_v63 = vmul.f32 %v4372_v7, %v248_v45  ;;  %v4192_v52 = vld [vmem:[%s5575_s3 + $0xb0] sm:$0xff]   ;;  %v559_v56 = vpack.c.bf16 %v364_v62, %v363_v61  ;;  %v301_v5 = vmul.f32 %v4372_v7, %v263_v51  ;;  %v266_v62 = vld [vmem:[%s4364_s29 + $0xe8] sm:$0xff] }
  0x29   : > { %3739 = vmatpush3.bf16.msra.mxu0 %v4467_v0  ;;  %4171 = vmatpush3.bf16.msra.mxu1 %v4467_v0  ;;  %443 = vst [vmem:[#allocation2 + $0x121] sm:$0xff] %v367_v40  ;;  %444 = vst [vmem:[#allocation2 + $0x129] sm:$0xff] %v368_v41  ;;  %v250_v0 = vld [vmem:[%s4364_s29 + $0x68] sm:$0xff]  ;;  %v4600_v60 = vadd.f32 %v4377_v9, %v285_v50  ;;  %v370_v8 = vmax.f32 %v4582_v37, 0.0  ;;  %v302_v54 = vmul.f32 %v4372_v7, %v264_v55  ;;  %v4195_v57 = vld [vmem:[%s5575_s3 + $0x20] sm:$0xff]  }
  0x2a   : > { %3772 = vmatprep.subr.bf16.mxu1 %v4189_v25  ;;  %3820 = vmatprep.subr.bf16.mxu0 %v4190_v26  ;;  %429 = vst [vmem:[#allocation2 + $0x79] sm:$0xff] %v353_v47  ;;  %430 = vst [vmem:[#allocation2 + $0x81] sm:$0xff] %v354_v49  ;;  %v4607_v53 = vadd.f32 %v4377_v9, %v286_v63  ;;  %v287_v61 = vmul.f32 %v4372_v7, %v249_v27  ;;  %v4193_v19 = vld [vmem:[%s5575_s3 + $0x28] sm:$0xff]   ;;  %v4196_v58 = vld [vmem:[%s5575_s3 + $0xa0] sm:$0xff]  }
  0x2b   : > { %445 = vst [vmem:[#allocation2 + $0x139] sm:$0xff] %v369_v59  ;;  %v355_v10 = vmax.f32 %v4600_v60, 0.0  ;;  %v4615_v11 = vadd.f32 %v4377_v9, %v301_v5  ;;  %v288_v13 = vmul.f32 %v4372_v7, %v250_v0  ;;  %v303_v14 = vmul.f32 %v4372_v7, %v265_v48  ;;  %446 = vst [vmem:[#allocation2 + $0x141] sm:$0xff] %v370_v8  ;;  %v4194_v20 = vld [vmem:[%s5575_s3 + $0xa8] sm:$0xff]   ;;  %v4197_v6 = vld [vmem:[%s5575_s3 + $0x18] sm:$0xff]  }
  0x2c   : > { %3741 = vmatmul.mubr.bf16.vlgmr.msra.gmra.mxu0 %v4518_v30  ;;  %3757 = vmatmul.mubr.bf16.vlgmr.msra.gmra.mxu1 %v558_v46  ;;  %v356_v15 = vmax.f32 %v4607_v53, 0.0  ;;  %v340_v16 = vadd.f32 %v4377_v9, %v302_v54  ;;  %v4624_v17 = vadd.f32 %v4377_v9, %v287_v61  ;;  %v304_v28 = vmul.f32 %v4372_v7, %v266_v62  ;;  %v4199_v23 = vld [vmem:[%s5575_s3 + $0x10] sm:$0xff]   ;;  %v4202_v38 = vld [vmem:[%s5575_s3 + $0x88] sm:$0xff]   ;;  %v4204_v51 = vld [vmem:[%s5575_s3 + $0x80] sm:$0xff]  }
  0x2d   : > { %3773 = vmatpush3.bf16.msra.mxu1 %v4189_v25  ;;  %3821 = vmatpush3.bf16.msra.mxu0 %v4190_v26  ;;  %431 = vst [vmem:[#allocation2 + $0x91] sm:$0xff] %v355_v10  ;;  %v371_v21 = vmax.f32 %v4615_v11, 0.0  ;;  %v326_v24 = vadd.f32 %v4377_v9, %v288_v13  ;;  %v341_v29 = vadd.f32 %v4377_v9, %v303_v14  ;;  %v4200_v35 = vld [vmem:[%s5575_s3 + $0x90] sm:$0xff]   ;;  %v1000_v43 = vld [vmem:[#allocation2 + $0x2] sm:$0xff]  ;;  %v4205_v0 = vld [vmem:[%s5575_s3 + $0xf8] sm:$0xff]  }
  0x2e   : > { %3774 = vmatprep.subr.bf16.mxu1 %v4191_v31  ;;  %3822 = vmatprep.subr.bf16.mxu0 %v4192_v52  ;;  %v4641_v25 = vpack.c.bf16 %v350_v3, %v349_v1  ;;  %432 = vst [vmem:[#allocation2 + $0x99] sm:$0xff] %v356_v15  ;;  %v372_v26 = vmax.f32 %v340_v16, 0.0  ;;  %v357_v42 = vmax.f32 %v4624_v17, 0.0  ;;  %v560_v44 = vpack.c.bf16 %v366_v18, %v365_v12  ;;  %v4198_v12 = vld [vmem:[%s5575_s3 + $0x98] sm:$0xff]   ;;  %v456_v37 = vld [vmem:[#allocation2 + $0x20] sm:$0xff]  ;;  %v457_v48 = vld [vmem:[#allocation2 + $0x30] sm:$0xff] }
  0x2f   : > { %3744 = vmatprep.mubr.bf16.mxu0 %v4575_v34  ;;  %3760 = vmatprep.mubr.bf16.mxu1 %v559_v56  ;;  %447 = vst [vmem:[#allocation2 + $0x151] sm:$0xff] %v371_v21  ;;  %v358_v45 = vmax.f32 %v326_v24, 0.0  ;;  %v342_v46 = vadd.f32 %v4377_v9, %v304_v28  ;;  %v373_v50 = vmax.f32 %v341_v29, 0.0  ;;  %v4659_v3 = vpack.c.bf16 %v352_v33, %v351_v32  ;;  %v4201_v33 = vld [vmem:[%s5575_s3 + $0x8] sm:$0xff]   ;;  %v1004_v56 = vld [vmem:[#allocation2 + $0x32] sm:$0xff]  ;;  %v1005_v60 = vld [vmem:[#allocation2 + $0x3a] sm:$0xff] }
  0x30   : > { %448 = vst [vmem:[#allocation2 + $0x159] sm:$0xff] %v372_v26  ;;  %433 = vst [vmem:[#allocation2 + $0xa9] sm:$0xff] %v357_v42  ;;  %v4665_v4 = vpack.c.bf16 %v368_v41, %v367_v40  ;;  %v4680_v18 = vpack.c.bf16 %v354_v49, %v353_v47  ;;  %v4686_v22 = vpack.c.bf16 %v370_v8, %v369_v59  ;;  %v453_v41 = vld [vmem:[#allocation2] sm:$0xff]  ;;  %v1001_v47 = vld [vmem:[#allocation2 + $0xa] sm:$0xff] }
  0x31   : > { %3775 = vmatpush3.bf16.msra.mxu1 %v4191_v31  ;;  %3823 = vmatpush3.bf16.msra.mxu0 %v4192_v52  ;;  %434 = vst [vmem:[#allocation2 + $0xb1] sm:$0xff] %v358_v45  ;;  %v374_v1 = vmax.f32 %v342_v46, 0.0  ;;  %449 = vst [vmem:[#allocation2 + $0x169] sm:$0xff] %v373_v50  ;;  %v4694_v36 = vpack.c.bf16 %v356_v15, %v355_v10  ;;  %v4696_v32 = vpack.c.bf16 %v372_v26, %v371_v21  ;;  %v4203_v49 = vld [vmem:[%s5575_s3] sm:$0xff]   ;;  %v455_v31 = vld [vmem:[#allocation2 + $0x18] sm:$0xff] }
  0x32   : > { %3776 = vmatprep.subr.bf16.mxu1 %v4193_v19  ;;  %3824 = vmatprep.subr.bf16.mxu0 %v4194_v20  ;;  %v4708_v39 = vpack.c.bf16 %v358_v45, %v357_v42  ;;  %v485_v55 = vpack.c.bf16 %v4262_v2, %v453_v41  ;;  %v1032_v27 = vpack.c.bf16 %v1001_v47, %v1000_v43  ;;  %v1002_v59 = vld [vmem:[#allocation2 + $0x1a] sm:$0xff]  ;;  %v1003_v63 = vld [vmem:[#allocation2 + $0x22] sm:$0xff]  ;;  %v460_v62 = vld [vmem:[#allocation2 + $0x50] sm:$0xff] }
  0x33   : > { %450 = vst [vmem:[#allocation2 + $0x171] sm:$0xff] %v374_v1  ;;  %v4710_v40 = vpack.c.bf16 %v374_v1, %v373_v50  ;;  %v4206_v2 = vld [vmem:[%s5575_s3 + $0x138] sm:$0xff]   ;;  %v4727_v5 = vpack.c.bf16 %v456_v37, %v455_v31  ;;  %v4729_v8 = vpack.c.bf16 %v1003_v63, %v1002_v59  ;;  %v4733_v54 = vpack.c.bf16 %v1005_v60, %v1004_v56  ;;  %v459_v61 = vld [vmem:[#allocation2 + $0x48] sm:$0xff]  ;;  %v4207_v13 = vld [vmem:[%s5575_s3 + $0xf0] sm:$0xff]  }
  0x34   : > { %3745 = vmatmul.mubr.bf16.gmra.mxu0 %v4641_v25  ;;  %3761 = vmatmul.mubr.bf16.gmra.mxu1 %v560_v44  ;;  %v458_v52 = vld [vmem:[#allocation2 + $0x38] sm:$0xff]  ;;  %v1006_v10 = vld [vmem:[#allocation2 + $0x4a] sm:$0xff]  ;;  %v461_v15 = vld [vmem:[#allocation2 + $0x60] sm:$0xff]  ;;  %v4751_v24 = vpack.c.bf16 %v460_v62, %v459_v61 }
  0x35   : > { %3777 = vmatpush3.bf16.msra.mxu1 %v4193_v19  ;;  %3825 = vmatpush3.bf16.msra.mxu0 %v4194_v20  ;;  %v4731_v53 = vpack.c.bf16 %v458_v52, %v457_v48  ;;  %v1007_v11 = vld [vmem:[#allocation2 + $0x52] sm:$0xff]  ;;  %v462_v16 = vld [vmem:[#allocation2 + $0x68] sm:$0xff]  ;;  %v4211_v42 = vld [vmem:[%s5575_s3 + $0xe0] sm:$0xff]  }
  0x36   : > { %3778 = vmatprep.subr.bf16.mxu1 %v4195_v57  ;;  %3826 = vmatprep.subr.bf16.mxu0 %v4196_v58  ;;  %v4208_v14 = vld [vmem:[%s5575_s3 + $0x130] sm:$0xff]   ;;  %v1008_v17 = vld [vmem:[#allocation2 + $0x62] sm:$0xff]  ;;  %v4753_v28 = vpack.c.bf16 %v1007_v11, %v1006_v10  ;;  %v4755_v29 = vpack.c.bf16 %v462_v16, %v461_v15  ;;  %v463_v44 = vld [vmem:[#allocation2 + $0x78] sm:$0xff] }
  0x37   : > { %3748 = vmatprep.mubr.bf16.mxu0 %v4659_v3  ;;  %3764 = vmatprep.mubr.bf16.mxu1 %v4665_v4  ;;  %v1009_v19 = vld [vmem:[#allocation2 + $0x6a] sm:$0xff]  ;;  %v464_v45 = vld [vmem:[#allocation2 + $0x80] sm:$0xff]  ;;  %v466_v1 = vld [vmem:[#allocation2 + $0x98] sm:$0xff] }
  0x38   : > { %v4209_v20 = vld [vmem:[%s5575_s3 + $0xe8] sm:$0xff]   ;;  %v4757_v26 = vpack.c.bf16 %v1009_v19, %v1008_v17  ;;  %v1010_v46 = vld [vmem:[#allocation2 + $0x7a] sm:$0xff]  ;;  %v1015_v31 = vld [vmem:[#allocation2 + $0xb2] sm:$0xff] }
  0x39   : > { %3779 = vmatpush3.bf16.msra.mxu1 %v4195_v57  ;;  %3827 = vmatpush3.bf16.msra.mxu0 %v4196_v58  ;;  %v4210_v21 = vld [vmem:[%s5575_s3 + $0x128] sm:$0xff]   ;;  %v4212_v57 = vld [vmem:[%s5575_s3 + $0x120] sm:$0xff]   ;;  %v465_v58 = vld [vmem:[#allocation2 + $0x90] sm:$0xff] }
  0x3a   : > { %3780 = vmatprep.subr.bf16.mxu1 %v4197_v6  ;;  %3828 = vmatprep.subr.bf16.mxu0 %v4198_v12  ;;  %v1011_v50 = vld [vmem:[#allocation2 + $0x82] sm:$0xff]  ;;  %v4779_v41 = vpack.c.bf16 %v466_v1, %v465_v58  ;;  %v471_v10 = vld [vmem:[#allocation2 + $0xd8] sm:$0xff]  ;;  %v267_v16 = vld [vmem:[%s4364_s29 + $0xf0] sm:$0xff] }
  0x3b   : > { %v467_v47 = vld [vmem:[#allocation2 + $0xa8] sm:$0xff]  ;;  %v469_v37 = vld [vmem:[#allocation2 + $0xc0] sm:$0xff]  ;;  %v473_v17 = vld [vmem:[#allocation2 + $0xf0] sm:$0xff] }
  0x3c   : > { %3749 = vmatmul.mubr.bf16.gmra.mxu0 %v4680_v18  ;;  %3765 = vmatmul.mubr.bf16.gmra.mxu1 %v4686_v22  ;;  %v470_v59 = vld [vmem:[#allocation2 + $0xc8] sm:$0xff]  ;;  %v4219_v62 = vld [vmem:[%s5575_s3 + $0xc0] sm:$0xff]   ;;  %v474_v19 = vld [vmem:[#allocation2 + $0xf8] sm:$0xff] }
  0x3d   : > { %3781 = vmatpush3.bf16.msra.mxu1 %v4197_v6  ;;  %3829 = vmatpush3.bf16.msra.mxu0 %v4198_v12  ;;  %v1012_v6 = vld [vmem:[#allocation2 + $0x92] sm:$0xff]  ;;  %v1013_v12 = vld [vmem:[#allocation2 + $0x9a] sm:$0xff]  ;;  %v1016_v63 = vld [vmem:[#allocation2 + $0xc2] sm:$0xff]  ;;  %v4803_v60 = vpack.c.bf16 %v470_v59, %v469_v37 }
  0x3e   : > { %3782 = vmatprep.subr.bf16.mxu1 %v4199_v23  ;;  %3830 = vmatprep.subr.bf16.mxu0 %v4200_v35  ;;  %v4781_v43 = vpack.c.bf16 %v1013_v12, %v1012_v6  ;;  %v4218_v48 = vld [vmem:[%s5575_s3 + $0x108] sm:$0xff]   ;;  %v472_v11 = vld [vmem:[#allocation2 + $0xe0] sm:$0xff]  ;;  %v4837_v12 = vpack.c.bf16 %v474_v19, %v473_v17 }
  0x3f   : > { %3752 = vmatprep.mubr.bf16.mxu0 %v4694_v36  ;;  %3768 = vmatprep.mubr.bf16.mxu1 %v4696_v32  ;;  %v4220_v15 = vld [vmem:[%s5575_s3 + $0x100] sm:$0xff]   ;;  %v4833_v1 = vpack.c.bf16 %v472_v11, %v471_v10  ;;  %v1025_v59 = vld [vmem:[#allocation2 + $0x12a] sm:$0xff] }
  0x40   : > { %v1024_v37 = vld [vmem:[#allocation2 + $0x122] sm:$0xff]  ;;  %v1026_v11 = vld [vmem:[#allocation2 + $0x13a] sm:$0xff] }
  0x41   : > { %3783 = vmatpush3.bf16.msra.mxu1 %v4199_v23  ;;  %3831 = vmatpush3.bf16.msra.mxu0 %v4200_v35  ;;  %v4213_v23 = vld [vmem:[%s5575_s3 + $0xd8] sm:$0xff]   ;;  %v480_v10 = vld [vmem:[#allocation2 + $0x140] sm:$0xff] }
  0x42   : > { %3784 = vmatprep.subr.bf16.mxu1 %v4201_v33  ;;  %3832 = vmatprep.subr.bf16.mxu0 %v4202_v38  ;;  %v4214_v35 = vld [vmem:[%s5575_s3 + $0x118] sm:$0xff]  }
  0x43   : > { %v1029_v17 = vld [vmem:[#allocation2 + $0x15a] sm:$0xff] }
  0x44   : > { %3753 = vmatmul.mubr.bf16.gmra.mxu0 %v4708_v39  ;;  %3769 = vmatmul.mubr.bf16.gmra.mxu1 %v4710_v40 }
  0x45   : > { %3785 = vmatpush3.bf16.msra.mxu1 %v4201_v33  ;;  %3833 = vmatpush3.bf16.msra.mxu0 %v4202_v38  ;;  %v4775_v33 = vpack.c.bf16 %v464_v45, %v463_v44  ;;  %v4777_v38 = vpack.c.bf16 %v1011_v50, %v1010_v46  ;;  %v1021_v44 = vld [vmem:[#allocation2 + $0xfa] sm:$0xff] }
  0x46   : > { %3786 = vmatprep.subr.bf16.mxu1 %v4203_v49  ;;  %3834 = vmatprep.subr.bf16.mxu0 %v4204_v51  ;;  %v4824_v46 = vld [vmem:[%s5575_s3 + $0x178] sm:$0xff]  }
  0x47   : > { %3788 = vmatprep.mubr.bf16.mxu1 %v485_v55  ;;  %3836 = vmatprep.mubr.bf16.mxu0 %v1032_v27  ;;  %v4215_v55 = vld [vmem:[%s5575_s3 + $0xd0] sm:$0xff]  }
  0x48   : > { %v4216_v27 = vld [vmem:[%s5575_s3 + $0x110] sm:$0xff]  }
  0x49   : > { %3787 = vmatpush3.bf16.msra.mxu1 %v4203_v49  ;;  %3835 = vmatpush3.bf16.msra.mxu0 %v4204_v51  ;;  %v468_v49 = vld [vmem:[#allocation2 + $0xb0] sm:$0xff] }
  0x4a   : > { %3868 = vmatprep.subr.bf16.mxu1 %v4205_v0  ;;  %3916 = vmatprep.subr.bf16.mxu0 %v4206_v2  ;;  %v1014_v51 = vld [vmem:[#allocation2 + $0xaa] sm:$0xff]  ;;  %v4799_v52 = vpack.c.bf16 %v468_v49, %v467_v47 }
  0x4b   : > { %v4801_v56 = vpack.c.bf16 %v1015_v31, %v1014_v51  ;;  %v475_v47 = vld [vmem:[#allocation2 + $0x108] sm:$0xff]  ;;  %v476_v49 = vld [vmem:[#allocation2 + $0x110] sm:$0xff] }
  0x4c   : > { %3789 = vmatmul.mubr.bf16.vlgmr.msra.gmra.mxu1 %v4727_v5  ;;  %3837 = vmatmul.mubr.bf16.vlgmr.msra.gmra.mxu0 %v4729_v8  ;;  %v1022_v51 = vld [vmem:[#allocation2 + $0x10a] sm:$0xff] }
  0x4d   : > { %3869 = vmatpush3.bf16.msra.mxu1 %v4205_v0  ;;  %3917 = vmatpush3.bf16.msra.mxu0 %v4206_v2  ;;  %v1017_v0 = vld [vmem:[#allocation2 + $0xca] sm:$0xff] }
  0x4e   : > { %3792 = vmatprep.mubr.bf16.mxu1 %v4731_v53  ;;  %3840 = vmatprep.mubr.bf16.mxu0 %v4733_v54  ;;  %v4217_v2 = vld [vmem:[%s5575_s3 + $0xc8] sm:$0xff]   ;;  %v4805_v61 = vpack.c.bf16 %v1017_v0, %v1016_v63  ;;  %v4849_v63 = vpack.c.bf16 %v476_v49, %v475_v47  ;;  %v4223_v47 = vld [vmem:[%s5575_s3 + $0x170] sm:$0xff]  }
  0x4f   : > { %3870 = vmatprep.subr.bf16.mxu1 %v4207_v13  ;;  %3918 = vmatprep.subr.bf16.mxu0 %v4208_v14  ;;  %v478_v31 = vld [vmem:[#allocation2 + $0x128] sm:$0xff]  ;;  %v4224_v49 = vld [vmem:[%s5575_s3 + $0x1b0] sm:$0xff]  }
  0x51   : > { %3871 = vmatpush3.bf16.msra.mxu1 %v4207_v13  ;;  %3919 = vmatpush3.bf16.msra.mxu0 %v4208_v14  ;;  %v1018_v13 = vld [vmem:[#allocation2 + $0xda] sm:$0xff]  ;;  %v1019_v14 = vld [vmem:[#allocation2 + $0xe2] sm:$0xff] }
  0x52   : > { %3872 = vmatprep.subr.bf16.mxu1 %v4209_v20  ;;  %3920 = vmatprep.subr.bf16.mxu0 %v4210_v21 }
  0x54   : > { %3793 = vmatmul.mubr.bf16.gmra.mxu1 %v4751_v24  ;;  %3841 = vmatmul.mubr.bf16.gmra.mxu0 %v4753_v28 }
  0x55   : > { %3796 = vmatprep.mubr.bf16.mxu1 %v4755_v29  ;;  %3844 = vmatprep.mubr.bf16.mxu0 %v4757_v26 }
  0x56   : > { %3873 = vmatpush3.bf16.msra.mxu1 %v4209_v20  ;;  %3921 = vmatpush3.bf16.msra.mxu0 %v4210_v21  ;;  %v1020_v20 = vld [vmem:[#allocation2 + $0xf2] sm:$0xff] }
  0x57   : > { %3874 = vmatprep.subr.bf16.mxu1 %v4211_v42  ;;  %3922 = vmatprep.subr.bf16.mxu0 %v4212_v57  ;;  %v268_v21 = vld [vmem:[%s4364_s29 + $0xf8] sm:$0xff]  ;;  %s233_s29 = scalar_lea.vmem %s5577_s5, %s5661_s19 }
  0x58   : > { %v306_v45 = vmul.f32 %v4372_v7, %v268_v21 }
  0x5a   : > { %3875 = vmatpush3.bf16.msra.mxu1 %v4211_v42  ;;  %3923 = vmatpush3.bf16.msra.mxu0 %v4212_v57  ;;  %v305_v42 = vmul.f32 %v4372_v7, %v267_v16  ;;  %v4830_v57 = vld [vmem:[%s5575_s3 + $0x1b8] sm:$0xff]   ;;  %v344_v58 = vadd.f32 %v4377_v9, %v306_v45  ;;  %v4835_v7 = vpack.c.bf16 %v1019_v14, %v1018_v13  ;;  %v1027_v13 = vld [vmem:[#allocation2 + $0x142] sm:$0xff]  ;;  %v481_v14 = vld [vmem:[#allocation2 + $0x150] sm:$0xff] }
  0x5b   : > { %3876 = vmatprep.subr.bf16.mxu1 %v4213_v23  ;;  %3924 = vmatprep.subr.bf16.mxu0 %v4214_v35  ;;  %v1028_v16 = vld [vmem:[#allocation2 + $0x152] sm:$0xff] }
  0x5c   : > { %3797 = vmatmul.mubr.bf16.gmra.mxu1 %v4775_v33  ;;  %3845 = vmatmul.mubr.bf16.gmra.mxu0 %v4777_v38  ;;  %v343_v50 = vadd.f32 %v4377_v9, %v305_v42  ;;  %v4867_v42 = vpack.c.bf16 %v1029_v17, %v1028_v16  ;;  %v484_v45 = vld [vmem:[#allocation2 + $0x170] sm:$0xff]  ;;  %v4237_v16 = vld [vmem:[%s5575_s3 + $0x1f8] sm:$0xff]  }
  0x5d   : > { %3800 = vmatprep.mubr.bf16.mxu1 %v4779_v41  ;;  %3848 = vmatprep.mubr.bf16.mxu0 %v4781_v43  ;;  %v4238_v17 = vld [vmem:[%s5575_s3 + $0x238] sm:$0xff]  }
  0x5e   : > { %3877 = vmatpush3.bf16.msra.mxu1 %v4213_v23  ;;  %3925 = vmatpush3.bf16.msra.mxu0 %v4214_v35  ;;  %v375_v6 = vmax.f32 %v343_v50, 0.0  ;;  %v4839_v23 = vpack.c.bf16 %v1021_v44, %v1020_v20  ;;  %v376_v35 = vmax.f32 %v344_v58, 0.0  ;;  %v4863_v20 = vpack.c.bf16 %v1027_v13, %v1026_v11  ;;  %v483_v44 = vld [vmem:[#allocation2 + $0x168] sm:$0xff]  ;;  %v1031_v58 = vld [vmem:[#allocation2 + $0x172] sm:$0xff] }
  0x5f   : > { %3878 = vmatprep.subr.bf16.mxu1 %v4215_v55  ;;  %3926 = vmatprep.subr.bf16.mxu0 %v4216_v27  ;;  %v1030_v50 = vld [vmem:[#allocation2 + $0x16a] sm:$0xff]  ;;  %v1631_v13 = vld [vmem:[#allocation2 + $0xf9] sm:$0xff] }
  0x60   : > { %451 = vst [vmem:[#allocation2 + $0x181] sm:$0xff] %v375_v6  ;;  %452 = vst [vmem:[#allocation2 + $0x189] sm:$0xff] %v376_v35  ;;  %v4843_v9 = vpack.c.bf16 %v376_v35, %v375_v6  ;;  %v4873_v6 = vpack.c.bf16 %v484_v45, %v483_v44  ;;  %v4875_v35 = vpack.c.bf16 %v1031_v58, %v1030_v50  ;;  %v1630_v11 = vld [vmem:[#allocation2 + $0xf1] sm:$0xff] }
  0x61   : > { %v4951_v44 = vpack.c.bf16 %v1631_v13, %v1630_v11 }
  0x62   : > { %3879 = vmatpush3.bf16.msra.mxu1 %v4215_v55  ;;  %3927 = vmatpush3.bf16.msra.mxu0 %v4216_v27  ;;  %v1023_v55 = vld [vmem:[#allocation2 + $0x112] sm:$0xff]  ;;  %v477_v27 = vld [vmem:[#allocation2 + $0x120] sm:$0xff] }
  0x63   : > { %3880 = vmatprep.subr.bf16.mxu1 %v4217_v2  ;;  %3928 = vmatprep.subr.bf16.mxu0 %v4218_v48  ;;  %v4851_v0 = vpack.c.bf16 %v1023_v55, %v1022_v51  ;;  %v1626_v51 = vld [vmem:[#allocation2 + $0xc1] sm:$0xff]  ;;  %v1627_v55 = vld [vmem:[#allocation2 + $0xc9] sm:$0xff] }
  0x64   : > { %3801 = vmatmul.mubr.bf16.gmra.mxu1 %v4799_v52  ;;  %3849 = vmatmul.mubr.bf16.gmra.mxu0 %v4801_v56 }
  0x65   : > { %3804 = vmatprep.mubr.bf16.mxu1 %v4803_v60  ;;  %3852 = vmatprep.mubr.bf16.mxu0 %v4805_v61 }
  0x66   : > { %3881 = vmatpush3.bf16.msra.mxu1 %v4217_v2  ;;  %3929 = vmatpush3.bf16.msra.mxu0 %v4218_v48  ;;  %v4853_v2 = vpack.c.bf16 %v478_v31, %v477_v27  ;;  %v4855_v48 = vpack.c.bf16 %v1025_v59, %v1024_v37  ;;  %v1628_v27 = vld [vmem:[#allocation2 + $0xd9] sm:$0xff]  ;;  %v1629_v31 = vld [vmem:[#allocation2 + $0xe1] sm:$0xff]  ;;  %v4931_v59 = vpack.c.bf16 %v1627_v55, %v1626_v51 }
  0x67   : > { %3882 = vmatprep.subr.bf16.mxu1 %v4219_v62  ;;  %3930 = vmatprep.subr.bf16.mxu0 %v4220_v15  ;;  %v4233_v37 = vld [vmem:[%s5575_s3 + $0x148] sm:$0xff]   ;;  %v1336_v50 = vld [vmem:[#allocation2 + $0x180] sm:$0xff]  ;;  %v2837_v51 = vld [vmem:[#allocation2 + $0x32] sm:$0xff] }
  0x68   : > { %v1337_v58 = vld [vmem:[#allocation2 + $0x188] sm:$0xff]  ;;  %v2838_v55 = vld [vmem:[#allocation2 + $0x3a] sm:$0xff] }
  0x6a   : > { %3883 = vmatpush3.bf16.msra.mxu1 %v4219_v62  ;;  %3931 = vmatpush3.bf16.msra.mxu0 %v4220_v15  ;;  %v479_v62 = vld [vmem:[#allocation2 + $0x138] sm:$0xff] }
  0x6b   : > { %3964 = vmatprep.subr.bf16.mxu1 %v4824_v46  ;;  %4012 = vmatprep.subr.bf16.mxu0 %v4830_v57  ;;  %v482_v15 = vld [vmem:[#allocation2 + $0x158] sm:$0xff]  ;;  %v4861_v19 = vpack.c.bf16 %v480_v10, %v479_v62  ;;  %v4933_v62 = vpack.c.bf16 %v1629_v31, %v1628_v27  ;;  %v4236_v10 = vld [vmem:[%s5575_s3 + $0x180] sm:$0xff]   ;;  %v4253_v31 = vld [vmem:[#allocation2 + $0x8] sm:$0xff] }
  0x6c   : > { %3805 = vmatmul.mubr.bf16.gmra.mxu1 %v4833_v1  ;;  %3853 = vmatmul.mubr.bf16.gmra.mxu0 %v4835_v7  ;;  %v4865_v21 = vpack.c.bf16 %v482_v15, %v481_v14  ;;  %v1632_v14 = vld [vmem:[#allocation2 + $0x109] sm:$0xff]  ;;  %v1633_v15 = vld [vmem:[#allocation2 + $0x111] sm:$0xff] }
  0x6d   : > { %3808 = vmatprep.mubr.bf16.mxu1 %v4837_v12  ;;  %3856 = vmatprep.mubr.bf16.mxu0 %v4839_v23  ;;  %v4953_v45 = vpack.c.bf16 %v1633_v15, %v1632_v14  ;;  %v2533_v14 = vld [vmem:[#allocation2 + $0x49] sm:$0xff]  ;;  %v2534_v15 = vld [vmem:[#allocation2 + $0x51] sm:$0xff] }
  0x74   : > { %3809 = vmatmul.mubr.bf16.gmra.mxu1 %v4849_v63  ;;  %3857 = vmatmul.mubr.bf16.gmra.mxu0 %v4851_v0 }
  0x75   : > { %3812 = vmatprep.mubr.bf16.mxu1 %v4853_v2  ;;  %3860 = vmatprep.mubr.bf16.mxu0 %v4855_v48 }
  0x7c   : > { %3813 = vmatmul.mubr.bf16.gmra.mxu1 %v4861_v19  ;;  %3861 = vmatmul.mubr.bf16.gmra.mxu0 %v4863_v20 }
  0x7d   : > { %3816 = vmatprep.mubr.bf16.mxu1 %v4865_v21  ;;  %3864 = vmatprep.mubr.bf16.mxu0 %v4867_v42 }
  0x84   : > { %3817 = vmatmul.mubr.bf16.gmra.mxu1 %v4873_v6  ;;  %3865 = vmatmul.mubr.bf16.gmra.mxu0 %v4875_v35 }
  0x85   : > { %3884 = vmatprep.mubr.bf16.mxu1 %v4727_v5  ;;  %3932 = vmatprep.mubr.bf16.mxu0 %v4518_v30  ;;  %v4225_v30 = vld [vmem:[%s5575_s3 + $0x168] sm:$0xff]  }
  0x86   : > { %v4226_v5 = vld [vmem:[%s5575_s3 + $0x1a8] sm:$0xff]  }
  0x8c   : > { %3885 = vmatmul.mubr.bf16.vlgmr.msra.gmra.mxu1 %v4731_v53  ;;  %3933 = vmatmul.mubr.bf16.vlgmr.msra.gmra.mxu0 %v4575_v34  ;;  %v4227_v34 = vld [vmem:[%s5575_s3 + $0x160] sm:$0xff]  }
  0x8d   : > { %3965 = vmatpush3.bf16.msra.mxu1 %v4824_v46  ;;  %4013 = vmatpush3.bf16.msra.mxu0 %v4830_v57  ;;  %v4229_v46 = vld [vmem:[%s5575_s3 + $0x158] sm:$0xff]  }
  0x8e   : > { %3888 = vmatprep.mubr.bf16.mxu1 %v4751_v24  ;;  %3936 = vmatprep.mubr.bf16.mxu0 %v4641_v25  ;;  %v4228_v25 = vld [vmem:[%s5575_s3 + $0x1a0] sm:$0xff]   ;;  %v4230_v57 = vld [vmem:[%s5575_s3 + $0x198] sm:$0xff]  }
  0x8f   : > { %3966 = vmatprep.subr.bf16.mxu1 %v4223_v47  ;;  %4014 = vmatprep.subr.bf16.mxu0 %v4224_v49 }
  0x91   : > { %3967 = vmatpush3.bf16.msra.mxu1 %v4223_v47  ;;  %4015 = vmatpush3.bf16.msra.mxu0 %v4224_v49  ;;  %v4967_v47 = vpack.c.bf16 %v1337_v58, %v1336_v50  ;;  %v2535_v50 = vld [vmem:[#allocation2 + $0x61] sm:$0xff] }
  0x92   : > { %3968 = vmatprep.subr.bf16.mxu1 %v4225_v30  ;;  %4016 = vmatprep.subr.bf16.mxu0 %v4226_v5 }
  0x94   : > { %3889 = vmatmul.mubr.bf16.gmra.mxu1 %v4755_v29  ;;  %3937 = vmatmul.mubr.bf16.gmra.mxu0 %v4659_v3  ;;  %v4231_v3 = vld [vmem:[%s5575_s3 + $0x150] sm:$0xff]  }
  0x95   : > { %3892 = vmatprep.mubr.bf16.mxu1 %v4775_v33  ;;  %3940 = vmatprep.mubr.bf16.mxu0 %v4680_v18  ;;  %v4232_v18 = vld [vmem:[%s5575_s3 + $0x190] sm:$0xff]  }
  0x96   : > { %3969 = vmatpush3.bf16.msra.mxu1 %v4225_v30  ;;  %4017 = vmatpush3.bf16.msra.mxu0 %v4226_v5 }
  0x97   : > { %3970 = vmatprep.subr.bf16.mxu1 %v4227_v34  ;;  %4018 = vmatprep.subr.bf16.mxu0 %v4228_v25 }
  0x9a   : > { %3971 = vmatpush3.bf16.msra.mxu1 %v4227_v34  ;;  %4019 = vmatpush3.bf16.msra.mxu0 %v4228_v25 }
  0x9b   : > { %3972 = vmatprep.subr.bf16.mxu1 %v4229_v46  ;;  %4020 = vmatprep.subr.bf16.mxu0 %v4230_v57 }
  0x9c   : > { %3893 = vmatmul.mubr.bf16.gmra.mxu1 %v4779_v41  ;;  %3941 = vmatmul.mubr.bf16.gmra.mxu0 %v4694_v36  ;;  %v4234_v36 = vld [vmem:[%s5575_s3 + $0x188] sm:$0xff]  }
  0x9d   : > { %3896 = vmatprep.mubr.bf16.mxu1 %v4799_v52  ;;  %3944 = vmatprep.mubr.bf16.mxu0 %v4708_v39  ;;  %v4235_v39 = vld [vmem:[%s5575_s3 + $0x140] sm:$0xff]  }
  0x9e   : > { %3973 = vmatpush3.bf16.msra.mxu1 %v4229_v46  ;;  %4021 = vmatpush3.bf16.msra.mxu0 %v4230_v57  ;;  %v2531_v46 = vld [vmem:[#allocation2 + $0x31] sm:$0xff] }
  0x9f   : > { %3974 = vmatprep.subr.bf16.mxu1 %v4231_v3  ;;  %4022 = vmatprep.subr.bf16.mxu0 %v4232_v18 }
  0xa2   : > { %3975 = vmatpush3.bf16.msra.mxu1 %v4231_v3  ;;  %4023 = vmatpush3.bf16.msra.mxu0 %v4232_v18  ;;  %v2532_v18 = vld [vmem:[#allocation2 + $0x39] sm:$0xff] }
  0xa3   : > { %3976 = vmatprep.subr.bf16.mxu1 %v4233_v37  ;;  %4024 = vmatprep.subr.bf16.mxu0 %v4234_v36 }
  0xa4   : > { %3897 = vmatmul.mubr.bf16.gmra.mxu1 %v4803_v60  ;;  %3945 = vmatmul.mubr.bf16.gmra.mxu0 %v4931_v59 }
  0xa5   : > { %3900 = vmatprep.mubr.bf16.mxu1 %v4833_v1  ;;  %3948 = vmatprep.mubr.bf16.mxu0 %v4933_v62 }
  0xa6   : > { %3977 = vmatpush3.bf16.msra.mxu1 %v4233_v37  ;;  %4025 = vmatpush3.bf16.msra.mxu0 %v4234_v36  ;;  %v2563_v37 = vpack.c.bf16 %v2532_v18, %v2531_v46  ;;  %v2869_v36 = vpack.c.bf16 %v2838_v55, %v2837_v51  ;;  %v2844_v46 = vld [vmem:[#allocation2 + $0x82] sm:$0xff]  ;;  %v2539_v18 = vld [vmem:[#allocation2 + $0x91] sm:$0xff] }
  0xa7   : > { %3978 = vmatprep.subr.bf16.mxu1 %v4235_v39  ;;  %4026 = vmatprep.subr.bf16.mxu0 %v4236_v10 }
  0xaa   : > { %3979 = vmatpush3.bf16.msra.mxu1 %v4235_v39  ;;  %4027 = vmatpush3.bf16.msra.mxu0 %v4236_v10 }
  0xab   : > { %4060 = vmatprep.subr.bf16.mxu1 %v4237_v16  ;;  %4108 = vmatprep.subr.bf16.mxu0 %v4238_v17 }
  0xac   : > { %3901 = vmatmul.mubr.bf16.gmra.mxu1 %v4837_v12  ;;  %3949 = vmatmul.mubr.bf16.gmra.mxu0 %v4951_v44 }
  0xad   : > { %3904 = vmatprep.mubr.bf16.mxu1 %v4849_v63  ;;  %3952 = vmatprep.mubr.bf16.mxu0 %v4953_v45 }
  0xb4   : > { %3905 = vmatmul.mubr.bf16.gmra.mxu1 %v4853_v2  ;;  %3953 = vmatmul.mubr.bf16.gmra.mxu0 %v4665_v4  ;;  %v4239_v4 = vld [vmem:[%s5575_s3 + $0x1f0] sm:$0xff]  }
  0xb5   : > { %3908 = vmatprep.mubr.bf16.mxu1 %v4861_v19  ;;  %3956 = vmatprep.mubr.bf16.mxu0 %v4686_v22  ;;  %v4240_v22 = vld [vmem:[%s5575_s3 + $0x230] sm:$0xff]  }
  0xbc   : > { %3909 = vmatmul.mubr.bf16.gmra.mxu1 %v4865_v21  ;;  %3957 = vmatmul.mubr.bf16.gmra.mxu0 %v4696_v32  ;;  %v4241_v32 = vld [vmem:[%s5575_s3 + $0x1e8] sm:$0xff]  }
  0xbd   : > { %3912 = vmatprep.mubr.bf16.mxu1 %v4873_v6  ;;  %3960 = vmatprep.mubr.bf16.mxu0 %v4710_v40  ;;  %v4242_v40 = vld [vmem:[%s5575_s3 + $0x228] sm:$0xff]  }
  0xc4   : > { %3913 = vmatmul.mubr.bf16.gmra.mxu1 %v4967_v47  ;;  %3961 = vmatmul.mubr.bf16.gmra.mxu0 %v4843_v9 }
  0xc5   : > { %3980 = vmatprep.mubr.bf16.mxu1 %v4729_v8  ;;  %4028 = vmatprep.mubr.bf16.mxu0 %v4731_v53  ;;  %v4243_v8 = vld [vmem:[%s5575_s3 + $0x1e0] sm:$0xff]  }
  0xc6   : > { %v4244_v53 = vld [vmem:[%s5575_s3 + $0x220] sm:$0xff]  }
  0xcc   : > { %3981 = vmatmul.mubr.bf16.vlgmr.msra.gmra.mxu1 %v4733_v54  ;;  %4029 = vmatmul.mubr.bf16.vlgmr.msra.gmra.mxu0 %v4751_v24  ;;  %v4245_v54 = vld [vmem:[%s5575_s3 + $0x1d8] sm:$0xff]  }
  0xcd   : > { %4061 = vmatpush3.bf16.msra.mxu1 %v4237_v16  ;;  %4109 = vmatpush3.bf16.msra.mxu0 %v4238_v17  ;;  %v4246_v24 = vld [vmem:[%s5575_s3 + $0x218] sm:$0xff]   ;;  %v2839_v16 = vld [vmem:[#allocation2 + $0x4a] sm:$0xff] }
  0xce   : > { %3984 = vmatprep.mubr.bf16.mxu1 %v4753_v28  ;;  %4032 = vmatprep.mubr.bf16.mxu0 %v4755_v29  ;;  %v4247_v28 = vld [vmem:[%s5575_s3 + $0x1d0] sm:$0xff]  }
  0xcf   : > { %4062 = vmatprep.subr.bf16.mxu1 %v4239_v4  ;;  %4110 = vmatprep.subr.bf16.mxu0 %v4240_v22  ;;  %v4248_v29 = vld [vmem:[%s5575_s3 + $0x210] sm:$0xff]  }
  0xd0   : > { %v2840_v17 = vld [vmem:[#allocation2 + $0x52] sm:$0xff] }
  0xd1   : > { %4063 = vmatpush3.bf16.msra.mxu1 %v4239_v4  ;;  %4111 = vmatpush3.bf16.msra.mxu0 %v4240_v22  ;;  %v2536_v4 = vld [vmem:[#allocation2 + $0x69] sm:$0xff] }
  0xd2   : > { %4064 = vmatprep.subr.bf16.mxu1 %v4241_v32  ;;  %4112 = vmatprep.subr.bf16.mxu0 %v4242_v40  ;;  %v2841_v22 = vld [vmem:[#allocation2 + $0x62] sm:$0xff] }
  0xd4   : > { %3985 = vmatmul.mubr.bf16.gmra.mxu1 %v4757_v26  ;;  %4033 = vmatmul.mubr.bf16.gmra.mxu0 %v4775_v33  ;;  %v4249_v26 = vld [vmem:[%s5575_s3 + $0x1c8] sm:$0xff]  }
  0xd5   : > { %3988 = vmatprep.mubr.bf16.mxu1 %v4777_v38  ;;  %4036 = vmatprep.mubr.bf16.mxu0 %v4779_v41  ;;  %v4250_v33 = vld [vmem:[%s5575_s3 + $0x208] sm:$0xff]   ;;  %v4251_v38 = vld [vmem:[%s5575_s3 + $0x1c0] sm:$0xff]  }
  0xd6   : > { %4065 = vmatpush3.bf16.msra.mxu1 %v4241_v32  ;;  %4113 = vmatpush3.bf16.msra.mxu0 %v4242_v40  ;;  %v4252_v41 = vld [vmem:[%s5575_s3 + $0x200] sm:$0xff]   ;;  %v2842_v32 = vld [vmem:[#allocation2 + $0x6a] sm:$0xff] }
  0xd7   : > { %4066 = vmatprep.subr.bf16.mxu1 %v4243_v8  ;;  %4114 = vmatprep.subr.bf16.mxu0 %v4244_v53 }
  0xda   : > { %4067 = vmatpush3.bf16.msra.mxu1 %v4243_v8  ;;  %4115 = vmatpush3.bf16.msra.mxu0 %v4244_v53  ;;  %v2564_v53 = vpack.c.bf16 %v2534_v15, %v2533_v14 }
  0xdb   : > { %4068 = vmatprep.subr.bf16.mxu1 %v4245_v54  ;;  %4116 = vmatprep.subr.bf16.mxu0 %v4246_v24 }
  0xdc   : > { %3989 = vmatmul.mubr.bf16.gmra.mxu1 %v4781_v43  ;;  %4037 = vmatmul.mubr.bf16.gmra.mxu0 %v4799_v52 }
  0xdd   : > { %3992 = vmatprep.mubr.bf16.mxu1 %v4801_v56  ;;  %4040 = vmatprep.mubr.bf16.mxu0 %v4803_v60 }
  0xde   : > { %4069 = vmatpush3.bf16.msra.mxu1 %v4245_v54  ;;  %4117 = vmatpush3.bf16.msra.mxu0 %v4246_v24  ;;  %v2870_v54 = vpack.c.bf16 %v2840_v17, %v2839_v16  ;;  %v2565_v24 = vpack.c.bf16 %v2536_v4, %v2535_v50 }
  0xdf   : > { %4070 = vmatprep.subr.bf16.mxu1 %v4247_v28  ;;  %4118 = vmatprep.subr.bf16.mxu0 %v4248_v29 }
  0xe2   : > { %4071 = vmatpush3.bf16.msra.mxu1 %v4247_v28  ;;  %4119 = vmatpush3.bf16.msra.mxu0 %v4248_v29  ;;  %v2871_v28 = vpack.c.bf16 %v2842_v32, %v2841_v22 }
  0xe3   : > { %4072 = vmatprep.subr.bf16.mxu1 %v4249_v26  ;;  %4120 = vmatprep.subr.bf16.mxu0 %v4250_v33 }
  0xe4   : > { %3993 = vmatmul.mubr.bf16.gmra.mxu1 %v4805_v61  ;;  %4041 = vmatmul.mubr.bf16.gmra.mxu0 %v4833_v1 }
  0xe5   : > { %3996 = vmatprep.mubr.bf16.mxu1 %v4835_v7  ;;  %4044 = vmatprep.mubr.bf16.mxu0 %v4837_v12 }
  0xe6   : > { %4073 = vmatpush3.bf16.msra.mxu1 %v4249_v26  ;;  %4121 = vmatpush3.bf16.msra.mxu0 %v4250_v33 }
  0xe7   : > { %4074 = vmatprep.subr.bf16.mxu1 %v4251_v38  ;;  %4122 = vmatprep.subr.bf16.mxu0 %v4252_v41 }
  0xea   : > { %4075 = vmatpush3.bf16.msra.mxu1 %v4251_v38  ;;  %4123 = vmatpush3.bf16.msra.mxu0 %v4252_v41  ;;  %v2537_v41 = vld [vmem:[#allocation2 + $0x79] sm:$0xff] }
  0xec   : > { %v5031_v43 = vpop.f32.mrf.mxu0  ;;  %v5033_v52 = vpop.f32.mrf.mxu1  ;;  %3997 = vmatmul.mubr.bf16.gmra.mxu1 %v4839_v23  ;;  %4045 = vmatmul.mubr.bf16.gmra.mxu0 %v4849_v63 }
  0xed   : > { %4000 = vmatprep.mubr.bf16.mxu1 %v4851_v0  ;;  %4048 = vmatprep.mubr.bf16.mxu0 %v4853_v2 }
  0xee   : > { %v5039_v56 = vpop.f32.mrf.mxu0  ;;  %v5041_v60 = vpop.f32.mrf.mxu1 }
  0xf0   : > { %v5043_v61 = vpop.f32.mrf.mxu0  ;;  %v5045_v1 = vpop.f32.mrf.mxu1 }
  0xf2   : > { %v5047_v7 = vpop.f32.mrf.mxu0  ;;  %v5049_v12 = vpop.f32.mrf.mxu1 }
  0xf4   : > { %v5051_v49 = vpop.f32.mrf.mxu0  ;;  %v5053_v23 = vpop.f32.mrf.mxu1  ;;  %4001 = vmatmul.mubr.bf16.gmra.mxu1 %v4855_v48  ;;  %4049 = vmatmul.mubr.bf16.gmra.mxu0 %v4861_v19  ;;  %v1948_v19 = vld [vmem:[#allocation2 + $0x182] sm:$0xff] }
  0xf5   : > { %4004 = vmatprep.mubr.bf16.mxu1 %v4863_v20  ;;  %4052 = vmatprep.mubr.bf16.mxu0 %v4865_v21  ;;  %v1949_v20 = vld [vmem:[#allocation2 + $0x18a] sm:$0xff]  ;;  %v2255_v21 = vld [vmem:[#allocation2 + $0x198] sm:$0xff] }
  0xf6   : > { %v5059_v63 = vpop.f32.mrf.mxu0  ;;  %v5061_v0 = vpop.f32.mrf.mxu1 }
  0xf8   : > { %v5063_v2 = vpop.f32.mrf.mxu0  ;;  %v5065_v30 = vpop.f32.mrf.mxu1 }
  0xfa   : > { %v5067_v5 = vpop.f32.mrf.mxu0  ;;  %v5069_v34 = vpop.f32.mrf.mxu1 }
  0xfc   : > { %v5071_v25 = vpop.f32.mrf.mxu0  ;;  %v5073_v48 = vpop.f32.mrf.mxu1  ;;  %4005 = vmatmul.mubr.bf16.gmra.mxu1 %v4867_v42  ;;  %4053 = vmatmul.mubr.bf16.gmra.mxu0 %v4873_v6  ;;  %v5087_v6 = vpack.c.bf16 %v1949_v20, %v1948_v19  ;;  %v2538_v19 = vld [vmem:[#allocation2 + $0x81] sm:$0xff] }
  0xfd   : > { %4008 = vmatprep.mubr.bf16.mxu1 %v4875_v35  ;;  %4056 = vmatprep.mubr.bf16.mxu0 %v4967_v47  ;;  %v2272_v35 = vpack.c.bf16 %v4253_v31, %v2255_v21  ;;  %v2843_v21 = vld [vmem:[#allocation2 + $0x7a] sm:$0xff]  ;;  %v2566_v17 = vpack.c.bf16 %v2538_v19, %v2537_v41  ;;  %v2847_v19 = vld [vmem:[#allocation2 + $0xaa] sm:$0xff] }
  0xfe   : > { %v5079_v57 = vpop.f32.mrf.mxu0  ;;  %v5081_v3 = vpop.f32.mrf.mxu1  ;;  %v2540_v31 = vld [vmem:[#allocation2 + $0x99] sm:$0xff]  ;;  %v2872_v50 = vpack.c.bf16 %v2844_v46, %v2843_v21 }
  0xff   : > { %v2567_v22 = vpack.c.bf16 %v2540_v31, %v2539_v18  ;;  %v2848_v21 = vld [vmem:[#allocation2 + $0xb2] sm:$0xff] }
 0x100   : > { %v5083_v27 = vpop.f32.mrf.mxu0  ;;  %v5085_v42 = vpop.f32.mrf.mxu1 }
 0x102   : > { %v5089_v39 = vpop.f32.mrf.mxu0  ;;  %v5091_v10 = vpop.f32.mrf.mxu1 }
 0x104   : > { %v5093_v11 = vpop.f32.mrf.mxu0  ;;  %v5095_v13 = vpop.f32.mrf.mxu1  ;;  %4009 = vmatmul.mubr.bf16.gmra.mxu1 %v5087_v6  ;;  %4057 = vmatmul.mubr.bf16.gmra.mxu0 %v2272_v35  ;;  %v2845_v35 = vld [vmem:[#allocation2 + $0x92] sm:$0xff] }
 0x105   : > { %4076 = vmatprep.mubr.bf16.mxu1 %v2563_v37  ;;  %4124 = vmatprep.mubr.bf16.mxu0 %v2869_v36  ;;  %v2846_v37 = vld [vmem:[#allocation2 + $0x9a] sm:$0xff] }
 0x106   : > { %v5098_v58 = vpop.f32.mrf.mxu0  ;;  %v5100_v47 = vpop.f32.mrf.mxu1  ;;  %v2873_v32 = vpack.c.bf16 %v2846_v37, %v2845_v35 }
 0x108   : > { %v5102_v40 = vpop.f32.mrf.mxu0  ;;  %v5104_v8 = vpop.f32.mrf.mxu1 }
 0x10a   : > { %v5106_v29 = vpop.f32.mrf.mxu0  ;;  %v5108_v26 = vpop.f32.mrf.mxu1 }
 0x10c   : > { %v3790_v33 = vpop.f32.mrf.mxu1  ;;  %v3838_v38 = vpop.f32.mrf.mxu0  ;;  %4077 = vmatmul.mubr.bf16.vlgmr.msra.gmra.mxu1 %v2564_v53  ;;  %4125 = vmatmul.mubr.bf16.vlgmr.msra.gmra.mxu0 %v2870_v54 }
 0x10d   : > { %v882_v20 = vadd.f32 %v3790_v33, %v5031_v43  ;;  %4080 = vmatprep.mubr.bf16.mxu1 %v2565_v24  ;;  %4128 = vmatprep.mubr.bf16.mxu0 %v2871_v28 }
 0x10e   : > { %v873_v51 = vpop.f32.mrf.mxu1  ;;  %v1147_v55 = vpop.f32.mrf.mxu0 }
 0x10f   : > { %v5111_v36 = vadd.f32 %v3838_v38, %v882_v20  ;;  %v874_v14 = vadd.f32 %v873_v51, %v5039_v56  ;;  %v2541_v56 = vld [vmem:[#allocation2 + $0xa9] sm:$0xff] }
 0x110   : > { %v3791_v15 = vpop.f32.mrf.mxu1  ;;  %v3839_v16 = vpop.f32.mrf.mxu0  ;;  %v2849_v51 = vld [vmem:[#allocation2 + $0xc2] sm:$0xff] }
 0x111   : > { %v5114_v4 = vadd.f32 %v1147_v55, %v874_v14  ;;  %v885_v43 = vadd.f32 %v3791_v15, %v5043_v61  ;;  %v2542_v61 = vld [vmem:[#allocation2 + $0xb1] sm:$0xff]  ;;  %v2874_v15 = vpack.c.bf16 %v2848_v21, %v2847_v19 }
 0x112   : > { %v876_v53 = vpop.f32.mrf.mxu1  ;;  %v1150_v54 = vpop.f32.mrf.mxu0  ;;  %v2850_v55 = vld [vmem:[#allocation2 + $0xca] sm:$0xff]  ;;  %v2568_v14 = vpack.c.bf16 %v2542_v61, %v2541_v56  ;;  %v2854_v61 = vld [vmem:[#allocation2 + $0xfa] sm:$0xff] }
 0x113   : > { %v5117_v24 = vadd.f32 %v3839_v16, %v885_v43  ;;  %v877_v28 = vadd.f32 %v876_v53, %v5047_v7 }
 0x114   : > { %v3794_v33 = vpop.f32.mrf.mxu1  ;;  %v3842_v38 = vpop.f32.mrf.mxu0  ;;  %4081 = vmatmul.mubr.bf16.gmra.mxu1 %v2566_v17  ;;  %4129 = vmatmul.mubr.bf16.gmra.mxu0 %v2872_v50  ;;  %v2875_v17 = vpack.c.bf16 %v2850_v55, %v2849_v51 }
 0x115   : > { %v5120_v20 = vadd.f32 %v1150_v54, %v877_v28  ;;  %v898_v41 = vadd.f32 %v3794_v33, %v5051_v49  ;;  %4084 = vmatprep.mubr.bf16.mxu1 %v2567_v22  ;;  %4132 = vmatprep.mubr.bf16.mxu0 %v2873_v32  ;;  %v2851_v33 = vld [vmem:[#allocation2 + $0xda] sm:$0xff] }
 0x116   : > { %v889_v46 = vpop.f32.mrf.mxu1  ;;  %v1163_v18 = vpop.f32.mrf.mxu0 }
 0x117   : > { %v5123_v31 = vadd.f32 %v3842_v38, %v898_v41  ;;  %v890_v7 = vadd.f32 %v889_v46, %v5059_v63  ;;  %v2853_v41 = vld [vmem:[#allocation2 + $0xf2] sm:$0xff] }
 0x118   : > { %v3795_v35 = vpop.f32.mrf.mxu1  ;;  %v3843_v37 = vpop.f32.mrf.mxu0  ;;  %v2877_v55 = vpack.c.bf16 %v2854_v61, %v2853_v41 }
 0x119   : > { %v5126_v16 = vadd.f32 %v1163_v18, %v890_v7  ;;  %v901_v49 = vadd.f32 %v3795_v35, %v5063_v2  ;;  %v2852_v2 = vld [vmem:[#allocation2 + $0xe2] sm:$0xff] }
 0x11a   : > { %v892_v50 = vpop.f32.mrf.mxu1  ;;  %v1166_v43 = vpop.f32.mrf.mxu0  ;;  %v2876_v18 = vpack.c.bf16 %v2852_v2, %v2851_v33 }
 0x11b   : > { %v5129_v22 = vadd.f32 %v3843_v37, %v901_v49  ;;  %v893_v32 = vadd.f32 %v892_v50, %v5067_v5  ;;  %v2551_v50 = vld [vmem:[#allocation2 + $0x121] sm:$0xff] }
 0x11c   : > { %v3798_v53 = vpop.f32.mrf.mxu1  ;;  %v3846_v54 = vpop.f32.mrf.mxu0  ;;  %4085 = vmatmul.mubr.bf16.gmra.mxu1 %v2568_v14  ;;  %4133 = vmatmul.mubr.bf16.gmra.mxu0 %v2874_v15 }
 0x11d   : > { %v5132_v63 = vadd.f32 %v1166_v43, %v893_v32  ;;  %v914_v28 = vadd.f32 %v3798_v53, %v5071_v25  ;;  %4088 = vmatprep.mubr.bf16.mxu1 %v4931_v59  ;;  %4136 = vmatprep.mubr.bf16.mxu0 %v2875_v17  ;;  %v2856_v17 = vld [vmem:[#allocation2 + $0x112] sm:$0xff]  ;;  %v2552_v53 = vld [vmem:[#allocation2 + $0x129] sm:$0xff] }
 0x11e   : > { %v905_v38 = vpop.f32.mrf.mxu1  ;;  %v1179_v56 = vpop.f32.mrf.mxu0 }
 0x11f   : > { %v5136_v19 = vadd.f32 %v3846_v54, %v914_v28  ;;  %v906_v5 = vadd.f32 %v905_v38, %v5079_v57  ;;  %v2857_v54 = vld [vmem:[#allocation2 + $0x122] sm:$0xff] }
 0x120   : > { %v3799_v21 = vpop.f32.mrf.mxu1  ;;  %v3847_v46 = vpop.f32.mrf.mxu0 }
 0x121   : > { %v5139_v51 = vadd.f32 %v1179_v56, %v906_v5  ;;  %v917_v25 = vadd.f32 %v3799_v21, %v5083_v27  ;;  %v2855_v27 = vld [vmem:[#allocation2 + $0x10a] sm:$0xff] }
 0x122   : > { %v908_v59 = vpop.f32.mrf.mxu1  ;;  %v1182_v7 = vpop.f32.mrf.mxu0  ;;  %v2878_v38 = vpack.c.bf16 %v2856_v17, %v2855_v27  ;;  %v2556_v27 = vld [vmem:[#allocation2 + $0x159] sm:$0xff] }
 0x123   : > { %v5142_v35 = vadd.f32 %v3847_v46, %v917_v25  ;;  %v909_v37 = vadd.f32 %v908_v59, %v5089_v39  ;;  %v2858_v39 = vld [vmem:[#allocation2 + $0x12a] sm:$0xff]  ;;  %v2862_v17 = vld [vmem:[#allocation2 + $0x15a] sm:$0xff] }
 0x124   : > { %v3802_v14 = vpop.f32.mrf.mxu1  ;;  %v3850_v15 = vpop.f32.mrf.mxu0  ;;  %4089 = vmatmul.mubr.bf16.gmra.mxu1 %v4933_v62  ;;  %4137 = vmatmul.mubr.bf16.gmra.mxu0 %v2876_v18  ;;  %v2879_v41 = vpack.c.bf16 %v2858_v39, %v2857_v54 }
 0x125   : > { %v5146_v57 = vadd.f32 %v1182_v7, %v909_v37  ;;  %v930_v49 = vadd.f32 %v3802_v14, %v5093_v11  ;;  %4092 = vmatprep.mubr.bf16.mxu1 %v4951_v44  ;;  %4140 = vmatprep.mubr.bf16.mxu0 %v2877_v55  ;;  %v2573_v11 = vpack.c.bf16 %v2552_v53, %v2551_v50  ;;  %v2554_v55 = vld [vmem:[#allocation2 + $0x141] sm:$0xff]  ;;  %v2555_v14 = vld [vmem:[#allocation2 + $0x151] sm:$0xff] }
 0x126   : > { %v921_v43 = vpop.f32.mrf.mxu1  ;;  %v1195_v32 = vpop.f32.mrf.mxu0  ;;  %v2860_v37 = vld [vmem:[#allocation2 + $0x142] sm:$0xff] }
 0x127   : > { %v5150_v28 = vadd.f32 %v3850_v15, %v930_v49  ;;  %v922_v62 = vadd.f32 %v921_v43, %v5098_v58  ;;  %v2553_v58 = vld [vmem:[#allocation2 + $0x139] sm:$0xff] }
 0x128   : > { %v3803_v33 = vpop.f32.mrf.mxu1  ;;  %v3851_v2 = vpop.f32.mrf.mxu0  ;;  %v2574_v53 = vpack.c.bf16 %v2554_v55, %v2553_v58 }
 0x129   : > { %v5153_v56 = vadd.f32 %v1195_v32, %v922_v62  ;;  %v933_v44 = vadd.f32 %v3803_v33, %v5102_v40  ;;  %v2859_v40 = vld [vmem:[#allocation2 + $0x13a] sm:$0xff]  ;;  %v2575_v62 = vpack.c.bf16 %v2556_v27, %v2555_v14 }
 0x12a   : > { %v924_v61 = vpop.f32.mrf.mxu1  ;;  %v1198_v5 = vpop.f32.mrf.mxu0  ;;  %v2880_v54 = vpack.c.bf16 %v2860_v37, %v2859_v40 }
 0x12b   : > { %v5156_v21 = vadd.f32 %v3851_v2, %v933_v44  ;;  %v925_v46 = vadd.f32 %v924_v61, %v5106_v29  ;;  %v2861_v29 = vld [vmem:[#allocation2 + $0x152] sm:$0xff] }
 0x12c   : > { %v3806_v18 = vpop.f32.mrf.mxu1  ;;  %v3854_v25 = vpop.f32.mrf.mxu0  ;;  %4093 = vmatmul.mubr.bf16.gmra.mxu1 %v4953_v45  ;;  %4141 = vmatmul.mubr.bf16.gmra.mxu0 %v2878_v38  ;;  %v2881_v33 = vpack.c.bf16 %v2862_v17, %v2861_v29 }
 0x12d   : > { %v5160_v59 = vadd.f32 %v1198_v5, %v925_v46  ;;  %v946_v7 = vadd.f32 %v3806_v18, %v5033_v52  ;;  %4096 = vmatprep.mubr.bf16.mxu1 %v2573_v11  ;;  %4144 = vmatprep.mubr.bf16.mxu0 %v2879_v41  ;;  %v2863_v18 = vld [vmem:[#allocation2 + $0x16a] sm:$0xff] }
 0x12e   : > { %v937_v15 = vpop.f32.mrf.mxu1  ;;  %v1211_v49 = vpop.f32.mrf.mxu0 }
 0x12f   : > { %v5163_v50 = vadd.f32 %v3854_v25, %v946_v7  ;;  %v938_v45 = vadd.f32 %v937_v15, %v5041_v60  ;;  %v2557_v60 = vld [vmem:[#allocation2 + $0x169] sm:$0xff]  ;;  %v2864_v25 = vld [vmem:[#allocation2 + $0x172] sm:$0xff] }
 0x130   : > { %v3807_v43 = vpop.f32.mrf.mxu1  ;;  %v3855_v32 = vpop.f32.mrf.mxu0  ;;  %v2882_v15 = vpack.c.bf16 %v2864_v25, %v2863_v18 }
 0x131   : > { %v5166_v39 = vadd.f32 %v1211_v49, %v938_v45  ;;  %v949_v52 = vadd.f32 %v3807_v43, %v5045_v1  ;;  %v2558_v1 = vld [vmem:[#allocation2 + $0x171] sm:$0xff] }
 0x132   : > { %v940_v2 = vpop.f32.mrf.mxu1  ;;  %v1214_v38 = vpop.f32.mrf.mxu0  ;;  %v2576_v14 = vpack.c.bf16 %v2558_v1, %v2557_v60 }
 0x133   : > { %v5169_v44 = vadd.f32 %v3855_v32, %v949_v52  ;;  %v941_v11 = vadd.f32 %v940_v2, %v5049_v12  ;;  %v2867_v52 = vld [vmem:[#allocation2 + $0x19a] sm:$0xff] }
 0x134   : > { %v3810_v41 = vpop.f32.mrf.mxu1  ;;  %v3858_v61 = vpop.f32.mrf.mxu0  ;;  %4097 = vmatmul.mubr.bf16.gmra.mxu1 %v2574_v53  ;;  %4145 = vmatmul.mubr.bf16.gmra.mxu0 %v2880_v54  ;;  %v2561_v53 = vld [vmem:[#allocation2 + $0x199] sm:$0xff] }
 0x135   : > { %v5172_v5 = vadd.f32 %v1214_v38, %v941_v11  ;;  %v962_v46 = vadd.f32 %v3810_v41, %v5053_v23  ;;  %4100 = vmatprep.mubr.bf16.mxu1 %v2575_v62  ;;  %4148 = vmatprep.mubr.bf16.mxu0 %v2881_v33  ;;  %v2868_v62 = vld [vmem:[#allocation2 + $0x1a2] sm:$0xff] }
 0x136   : > { %v953_v58 = vpop.f32.mrf.mxu1  ;;  %v1227_v55 = vpop.f32.mrf.mxu0  ;;  %v2884_v60 = vpack.c.bf16 %v2868_v62, %v2867_v52 }
 0x137   : > { %v5175_v7 = vadd.f32 %v3858_v61, %v962_v46  ;;  %v954_v12 = vadd.f32 %v953_v58, %v5061_v0 }
 0x138   : > { %v3811_v40 = vpop.f32.mrf.mxu1  ;;  %v3859_v37 = vpop.f32.mrf.mxu0 }
 0x139   : > { %v5178_v49 = vadd.f32 %v1227_v55, %v954_v12  ;;  %v965_v27 = vadd.f32 %v3811_v40, %v5065_v30  ;;  %v2562_v30 = vld [vmem:[#allocation2 + $0x1a1] sm:$0xff] }
 0x13a   : > { %v956_v23 = vpop.f32.mrf.mxu1  ;;  %v1230_v29 = vpop.f32.mrf.mxu0  ;;  %v2578_v61 = vpack.c.bf16 %v2562_v30, %v2561_v53 }
 0x13b   : > { %v5181_v17 = vadd.f32 %v3859_v37, %v965_v27  ;;  %v957_v45 = vadd.f32 %v956_v23, %v5069_v34 }
 0x13c   : > { %v3814_v43 = vpop.f32.mrf.mxu1  ;;  %v3862_v32 = vpop.f32.mrf.mxu0  ;;  %4101 = vmatmul.mubr.bf16.gmra.mxu1 %v2576_v14  ;;  %4149 = vmatmul.mubr.bf16.gmra.mxu0 %v2882_v15 }
 0x13d   : > { %v5184_v0 = vadd.f32 %v1230_v29, %v957_v45  ;;  %v978_v54 = vadd.f32 %v3814_v43, %v5073_v48  ;;  %4104 = vmatprep.mubr.bf16.mxu1 %v4843_v9  ;;  %4152 = vmatprep.mubr.bf16.mxu0 %v5087_v6 }
 0x13e   : > { %v969_v33 = vpop.f32.mrf.mxu1  ;;  %v1243_v2 = vpop.f32.mrf.mxu0 }
 0x13f   : > { %v5189_v38 = vadd.f32 %v3862_v32, %v978_v54  ;;  %v970_v34 = vadd.f32 %v969_v33, %v5081_v3 }
 0x140   : > { %v3815_v11 = vpop.f32.mrf.mxu1  ;;  %v3863_v41 = vpop.f32.mrf.mxu0 }
 0x141   : > { %v5192_v46 = vadd.f32 %v1243_v2, %v970_v34  ;;  %v981_v48 = vadd.f32 %v3815_v11, %v5085_v42 }
 0x142   : > { %v972_v9 = vpop.f32.mrf.mxu1  ;;  %v1246_v1 = vpop.f32.mrf.mxu0 }
 0x143   : > { %v5195_v6 = vadd.f32 %v3863_v41, %v981_v48  ;;  %v973_v18 = vadd.f32 %v972_v9, %v5091_v10 }
 0x144   : > { %v3818_v25 = vpop.f32.mrf.mxu1  ;;  %v3866_v58 = vpop.f32.mrf.mxu0  ;;  %4105 = vmatmul.mubr.bf16.gmra.mxu1 %v2578_v61  ;;  %4153 = vmatmul.mubr.bf16.gmra.mxu0 %v2884_v60 }
 0x145   : > { %v5198_v55 = vadd.f32 %v1246_v1, %v973_v18  ;;  %v994_v3 = vadd.f32 %v3818_v25, %v5095_v13 }
 0x146   : > { %v985_v12 = vpop.f32.mrf.mxu1  ;;  %v1259_v40 = vpop.f32.mrf.mxu0 }
 0x147   : > { %v5201_v37 = vadd.f32 %v3866_v58, %v994_v3  ;;  %v986_v42 = vadd.f32 %v985_v12, %v5100_v47 }
 0x148   : > { %v3819_v14 = vpop.f32.mrf.mxu1  ;;  %v3867_v15 = vpop.f32.mrf.mxu0 }
 0x149   : > { %v5204_v27 = vadd.f32 %v1259_v40, %v986_v42  ;;  %v997_v10 = vadd.f32 %v3819_v14, %v5104_v8 }
 0x14a   : > { %v988_v23 = vpop.f32.mrf.mxu1  ;;  %v1262_v29 = vpop.f32.mrf.mxu0 }
 0x14b   : > { %v5207_v45 = vadd.f32 %v3867_v15, %v997_v10  ;;  %v989_v43 = vadd.f32 %v988_v23, %v5108_v26 }
 0x14c   : > { %v3886_v32 = vpop.f32.mrf.mxu1  ;;  %v3934_v13 = vpop.f32.mrf.mxu0 }
 0x14d   : > { %v5210_v53 = vadd.f32 %v1262_v29, %v989_v43  ;;  %v1582_v54 = vadd.f32 %v3886_v32, %v5111_v36 }
 0x14e   : > { %v1453_v30 = vpop.f32.mrf.mxu1  ;;  %v1759_v47 = vpop.f32.mrf.mxu0 }
 0x14f   : > { %v5213_v52 = vadd.f32 %v3934_v13, %v1582_v54  ;;  %v1580_v62 = vadd.f32 %v1453_v30, %v5114_v4 }
 0x150   : > { %v3887_v33 = vpop.f32.mrf.mxu1  ;;  %v3935_v8 = vpop.f32.mrf.mxu0 }
 0x151   : > { %v5216_v2 = vadd.f32 %v1759_v47, %v1580_v62  ;;  %v1583_v34 = vadd.f32 %v3887_v33, %v5117_v24 }
 0x152   : > { %v1456_v11 = vpop.f32.mrf.mxu1  ;;  %v1762_v26 = vpop.f32.mrf.mxu0 }
 0x153   : > { %v5219_v41 = vadd.f32 %v3935_v8, %v1583_v34  ;;  %v1581_v61 = vadd.f32 %v1456_v11, %v5120_v20 }
 0x154   : > { %v3890_v60 = vpop.f32.mrf.mxu1  ;;  %v3938_v36 = vpop.f32.mrf.mxu0 }
 0x155   : > { %v5222_v48 = vadd.f32 %v1762_v26, %v1581_v61  ;;  %v1586_v9 = vadd.f32 %v3890_v60, %v5123_v31 }
 0x156   : > { %v1469_v1 = vpop.f32.mrf.mxu1  ;;  %v1775_v4 = vpop.f32.mrf.mxu0 }
 0x157   : > { %v5225_v18 = vadd.f32 %v3938_v36, %v1586_v9  ;;  %v1584_v25 = vadd.f32 %v1469_v1, %v5126_v16 }
 0x158   : > { %v3891_v58 = vpop.f32.mrf.mxu1  ;;  %v3939_v24 = vpop.f32.mrf.mxu0 }
 0x159   : > { %v5228_v3 = vadd.f32 %v1775_v4, %v1584_v25  ;;  %v1587_v12 = vadd.f32 %v3891_v58, %v5129_v22 }
 0x15a   : > { %v1472_v40 = vpop.f32.mrf.mxu1  ;;  %v1778_v20 = vpop.f32.mrf.mxu0 }
 0x15b   : > { %v5231_v42 = vadd.f32 %v3939_v24, %v1587_v12  ;;  %v1585_v14 = vadd.f32 %v1472_v40, %v5132_v63 }
 0x15c   : > { %v3894_v15 = vpop.f32.mrf.mxu1  ;;  %v3942_v31 = vpop.f32.mrf.mxu0 }
 0x15d   : > { %v5234_v10 = vadd.f32 %v1778_v20, %v1585_v14  ;;  %v1590_v23 = vadd.f32 %v3894_v15, %v5136_v19 }
 0x15e   : > { %v1485_v29 = vpop.f32.mrf.mxu1  ;;  %v1791_v16 = vpop.f32.mrf.mxu0 }
 0x15f   : > { %v5237_v43 = vadd.f32 %v3942_v31, %v1590_v23  ;;  %v1588_v32 = vadd.f32 %v1485_v29, %v5139_v51 }
 0x160   : > { %v3895_v13 = vpop.f32.mrf.mxu1  ;;  %v3943_v22 = vpop.f32.mrf.mxu0 }
 0x161   : > { %v5240_v54 = vadd.f32 %v1791_v16, %v1588_v32  ;;  %v1591_v30 = vadd.f32 %v3895_v13, %v5142_v35 }
 0x162   : > { %v1488_v47 = vpop.f32.mrf.mxu1  ;;  %v1794_v63 = vpop.f32.mrf.mxu0 }
 0x163   : > { %v5243_v62 = vadd.f32 %v3943_v22, %v1591_v30  ;;  %v1589_v33 = vadd.f32 %v1488_v47, %v5146_v57 }
 0x164   : > { %v3898_v8 = vpop.f32.mrf.mxu1  ;;  %v3946_v19 = vpop.f32.mrf.mxu0 }
 0x165   : > { %v5246_v34 = vadd.f32 %v1794_v63, %v1589_v33  ;;  %v1594_v11 = vadd.f32 %v3898_v8, %v5150_v28 }
 0x166   : > { %v1501_v26 = vpop.f32.mrf.mxu1  ;;  %v1807_v51 = vpop.f32.mrf.mxu0 }
 0x167   : > { %v5249_v61 = vadd.f32 %v3946_v19, %v1594_v11  ;;  %v1592_v60 = vadd.f32 %v1501_v26, %v5153_v56 }
 0x168   : > { %v3899_v36 = vpop.f32.mrf.mxu1  ;;  %v3947_v35 = vpop.f32.mrf.mxu0 }
 0x169   : > { %v5252_v9 = vadd.f32 %v1807_v51, %v1592_v60  ;;  %v1595_v1 = vadd.f32 %v3899_v36, %v5156_v21 }
 0x16a   : > { %v1504_v4 = vpop.f32.mrf.mxu1  ;;  %v1810_v57 = vpop.f32.mrf.mxu0 }
 0x16b   : > { %v5255_v25 = vadd.f32 %v3947_v35, %v1595_v1  ;;  %v1593_v58 = vadd.f32 %v1504_v4, %v5160_v59 }
 0x16c   : > { %v3902_v24 = vpop.f32.mrf.mxu1  ;;  %v3950_v28 = vpop.f32.mrf.mxu0 }
 0x16d   : > { %v5258_v12 = vadd.f32 %v1810_v57, %v1593_v58  ;;  %v1598_v40 = vadd.f32 %v3902_v24, %v5163_v50 }
 0x16e   : > { %v1517_v20 = vpop.f32.mrf.mxu1  ;;  %v1823_v56 = vpop.f32.mrf.mxu0 }
 0x16f   : > { %v5261_v14 = vadd.f32 %v3950_v28, %v1598_v40  ;;  %v1596_v15 = vadd.f32 %v1517_v20, %v5166_v39 }
 0x170   : > { %v3903_v31 = vpop.f32.mrf.mxu1  ;;  %v3951_v21 = vpop.f32.mrf.mxu0 }
 0x171   : > { %v5264_v23 = vadd.f32 %v1823_v56, %v1596_v15  ;;  %v1599_v29 = vadd.f32 %v3903_v31, %v5169_v44 }
 0x172   : > { %v1520_v16 = vpop.f32.mrf.mxu1  ;;  %v1826_v59 = vpop.f32.mrf.mxu0 }
 0x173   : > { %v5267_v32 = vadd.f32 %v3951_v21, %v1599_v29  ;;  %v1597_v13 = vadd.f32 %v1520_v16, %v5172_v5 }
 0x174   : > { %v3906_v22 = vpop.f32.mrf.mxu1  ;;  %v3954_v50 = vpop.f32.mrf.mxu0 }
 0x175   : > { %5578 = vst [vmem:[#allocation3_spill] sm:$0xff] %v5267_v32  ;;  %v5270_v30 = vadd.f32 %v1826_v59, %v1597_v13  ;;  %v1602_v47 = vadd.f32 %v3906_v22, %v5175_v7 }
 0x176   : > { %v1533_v63 = vpop.f32.mrf.mxu1  ;;  %v1839_v39 = vpop.f32.mrf.mxu0 }
 0x177   : > { %5579 = vst [vmem:[#allocation4_spill] sm:$0xff] %v5270_v30  ;;  %v5273_v33 = vadd.f32 %v3954_v50, %v1602_v47  ;;  %v1600_v8 = vadd.f32 %v1533_v63, %v5178_v49 }
 0x178   : > { %v3907_v19 = vpop.f32.mrf.mxu1  ;;  %v3955_v44 = vpop.f32.mrf.mxu0 }
 0x179   : > { %5580 = vst [vmem:[#allocation5_spill] sm:$0xff] %v5273_v33  ;;  %v5276_v11 = vadd.f32 %v1839_v39, %v1600_v8  ;;  %v1603_v26 = vadd.f32 %v3907_v19, %v5181_v17 }
 0x17a   : > { %v1536_v51 = vpop.f32.mrf.mxu1  ;;  %v1842_v5 = vpop.f32.mrf.mxu0 }
 0x17b   : > { %5581 = vst [vmem:[#allocation6_spill] sm:$0xff] %v5276_v11  ;;  %v5279_v60 = vadd.f32 %v3955_v44, %v1603_v26  ;;  %v1601_v36 = vadd.f32 %v1536_v51, %v5184_v0 }
 0x17c   : > { %v3910_v35 = vpop.f32.mrf.mxu1  ;;  %v3958_v7 = vpop.f32.mrf.mxu0 }
 0x17d   : > { %5582 = vst [vmem:[#allocation7_spill] sm:$0xff] %v5279_v60  ;;  %v5282_v1 = vadd.f32 %v1842_v5, %v1601_v36  ;;  %v1606_v4 = vadd.f32 %v3910_v35, %v5189_v38 }
 0x17e   : > { %v1549_v57 = vpop.f32.mrf.mxu1  ;;  %v1855_v49 = vpop.f32.mrf.mxu0 }
 0x17f   : > { %5583 = vst [vmem:[#allocation8_spill] sm:$0xff] %v5282_v1  ;;  %v5285_v58 = vadd.f32 %v3958_v7, %v1606_v4  ;;  %v1604_v24 = vadd.f32 %v1549_v57, %v5192_v46 }
 0x180   : > { %v3911_v28 = vpop.f32.mrf.mxu1  ;;  %v3959_v17 = vpop.f32.mrf.mxu0 }
 0x181   : > { %5584 = vst [vmem:[#allocation9_spill] sm:$0xff] %v5285_v58  ;;  %v5288_v40 = vadd.f32 %v1855_v49, %v1604_v24  ;;  %v1607_v20 = vadd.f32 %v3911_v28, %v5195_v6 }
 0x182   : > { %v1552_v56 = vpop.f32.mrf.mxu1  ;;  %v1858_v0 = vpop.f32.mrf.mxu0 }
 0x183   : > { %5585 = vst [vmem:[#allocation10_spill] sm:$0xff] %v5288_v40  ;;  %v5291_v15 = vadd.f32 %v3959_v17, %v1607_v20  ;;  %v1605_v31 = vadd.f32 %v1552_v56, %v5198_v55 }
 0x184   : > { %v3914_v21 = vpop.f32.mrf.mxu1  ;;  %v3962_v38 = vpop.f32.mrf.mxu0 }
 0x185   : > { %5586 = vst [vmem:[#allocation11_spill] sm:$0xff] %v5291_v15  ;;  %v5294_v29 = vadd.f32 %v1858_v0, %v1605_v31  ;;  %v1610_v16 = vadd.f32 %v3914_v21, %v5201_v37 }
 0x186   : > { %v1565_v59 = vpop.f32.mrf.mxu1  ;;  %v1871_v46 = vpop.f32.mrf.mxu0 }
 0x187   : > { %5587 = vst [vmem:[#allocation12_spill] sm:$0xff] %v5294_v29  ;;  %v5297_v13 = vadd.f32 %v3962_v38, %v1610_v16  ;;  %v1608_v22 = vadd.f32 %v1565_v59, %v5204_v27 }
 0x188   : > { %v3915_v50 = vpop.f32.mrf.mxu1  ;;  %v3963_v6 = vpop.f32.mrf.mxu0 }
 0x189   : > { %5588 = vst [vmem:[#allocation13_spill] sm:$0xff] %v5297_v13  ;;  %v5300_v47 = vadd.f32 %v1871_v46, %v1608_v22  ;;  %v1611_v63 = vadd.f32 %v3915_v50, %v5207_v45 }
 0x18a   : > { %v1568_v39 = vpop.f32.mrf.mxu1  ;;  %v1874_v55 = vpop.f32.mrf.mxu0 }
 0x18b   : > { %5589 = vst [vmem:[#allocation14_spill] sm:$0xff] %v5300_v47  ;;  %v5303_v8 = vadd.f32 %v3963_v6, %v1611_v63  ;;  %v1609_v19 = vadd.f32 %v1568_v39, %v5210_v53 }
 0x18c   : > { %v3982_v44 = vpop.f32.mrf.mxu1  ;;  %v5306_v37 = vpop.f32.mrf.mxu0 }
 0x18d   : > { %5590 = vst [vmem:[#allocation15_spill] sm:$0xff] %v5303_v8  ;;  %v5308_v26 = vadd.f32 %v1874_v55, %v1609_v19 }
 0x18e   : > { %v2065_v51 = vpop.f32.mrf.mxu1  ;;  %v5310_v5 = vpop.f32.mrf.mxu0 }
 0x18f   : > { %5591 = vst [vmem:[#allocation16_spill] sm:$0xff] %v5308_v26 }
 0x190   : > { %v5312_v27 = vpop.f32.mrf.mxu1  ;;  %v5314_v36 = vpop.f32.mrf.mxu0 }
 0x192   : > { %v5316_v35 = vpop.f32.mrf.mxu1  ;;  %v5318_v45 = vpop.f32.mrf.mxu0 }
 0x194   : > { %v5320_v7 = vpop.f32.mrf.mxu1  ;;  %v5322_v4 = vpop.f32.mrf.mxu0 }
 0x196   : > { %v5324_v53 = vpop.f32.mrf.mxu1  ;;  %v5326_v57 = vpop.f32.mrf.mxu0 }
 0x198   : > { %v5328_v49 = vpop.f32.mrf.mxu1  ;;  %v5330_v24 = vpop.f32.mrf.mxu0 }
 0x19a   : > { %v5332_v28 = vpop.f32.mrf.mxu1  ;;  %v5334_v17 = vpop.f32.mrf.mxu0 }
 0x19c   : > { %v5336_v20 = vpop.f32.mrf.mxu1  ;;  %v5338_v56 = vpop.f32.mrf.mxu0 }
 0x19e   : > { %v5340_v0 = vpop.f32.mrf.mxu1  ;;  %v5342_v31 = vpop.f32.mrf.mxu0 }
 0x1a0   : > { %v5344_v21 = vpop.f32.mrf.mxu1  ;;  %v5346_v38 = vpop.f32.mrf.mxu0 }
 0x1a2   : > { %v5348_v16 = vpop.f32.mrf.mxu1  ;;  %v5350_v59 = vpop.f32.mrf.mxu0 }
 0x1a4   : > { %v5352_v46 = vpop.f32.mrf.mxu1  ;;  %v5354_v22 = vpop.f32.mrf.mxu0 }
 0x1a6   : > { %v5356_v50 = vpop.f32.mrf.mxu1  ;;  %v5358_v6 = vpop.f32.mrf.mxu0 }
 0x1a8   : > { %v5360_v63 = vpop.f32.mrf.mxu1  ;;  %v5362_v39 = vpop.f32.mrf.mxu0 }
 0x1aa   : > { %v5364_v55 = vpop.f32.mrf.mxu1  ;;  %v5366_v19 = vpop.f32.mrf.mxu0 }
 0x1ac   : > { %v5368_v26 = vpop.f32.mrf.mxu1  ;;  %v5370_v8 = vpop.f32.mrf.mxu0 }
 0x1ae   : > { %v5372_v47 = vpop.f32.mrf.mxu1  ;;  %v5374_v13 = vpop.f32.mrf.mxu0 }
 0x1af   : > { %5592 = vst [vmem:[#allocation17_spill] sm:$0xff] %v5374_v13 }
 0x1b0   : > { %v5376_v29 = vpop.f32.mrf.mxu1  ;;  %v5378_v15 = vpop.f32.mrf.mxu0 }
 0x1b1   : > { %5593 = vst [vmem:[#allocation18_spill] sm:$0xff] %v5376_v29  ;;  %5594 = vst [vmem:[#allocation19_spill] sm:$0xff] %v5378_v15 }
 0x1b2   : > { %v5380_v40 = vpop.f32.mrf.mxu1  ;;  %v5382_v58 = vpop.f32.mrf.mxu0 }
 0x1b3   : > { %5595 = vst [vmem:[#allocation20_spill] sm:$0xff] %v5380_v40  ;;  %5596 = vst [vmem:[#allocation21_spill] sm:$0xff] %v5382_v58 }
 0x1b4   : > { %v5384_v1 = vpop.f32.mrf.mxu1  ;;  %v5386_v60 = vpop.f32.mrf.mxu0 }
 0x1b5   : > { %5597 = vst [vmem:[#allocation22_spill] sm:$0xff] %v5384_v1  ;;  %5598 = vst [vmem:[#allocation23_spill] sm:$0xff] %v5386_v60 }
 0x1b6   : > { %v5388_v11 = vpop.f32.mrf.mxu1  ;;  %v5390_v33 = vpop.f32.mrf.mxu0 }
 0x1b7   : > { %5599 = vst [vmem:[#allocation24_spill] sm:$0xff] %v5388_v11  ;;  %5600 = vst [vmem:[#allocation25_spill] sm:$0xff] %v5390_v33 }
 0x1b8   : > { %v5392_v30 = vpop.f32.mrf.mxu1  ;;  %v5394_v32 = vpop.f32.mrf.mxu0 }
 0x1b9   : > { %5601 = vst [vmem:[#allocation26_spill] sm:$0xff] %v5392_v30  ;;  %5602 = vst [vmem:[#allocation27_spill] sm:$0xff] %v5394_v32 }
 0x1ba   : > { %v5396_v13 = vpop.f32.mrf.mxu1  ;;  %v5398_v29 = vpop.f32.mrf.mxu0 }
 0x1bb   : > { %5603 = vst [vmem:[#allocation28_spill] sm:$0xff] %v5396_v13  ;;  %5604 = vst [vmem:[#allocation29_spill] sm:$0xff] %v5398_v29 }
 0x1bc   : > { %v5400_v15 = vpop.f32.mrf.mxu1  ;;  %v5402_v40 = vpop.f32.mrf.mxu0 }
 0x1bd   : > { %5605 = vst [vmem:[#allocation30_spill] sm:$0xff] %v5400_v15  ;;  %5606 = vst [vmem:[#allocation31_spill] sm:$0xff] %v5402_v40 }
 0x1be   : > { %v5404_v58 = vpop.f32.mrf.mxu1  ;;  %v5406_v1 = vpop.f32.mrf.mxu0 }
 0x1bf   : > { %5607 = vst [vmem:[#allocation32_spill] sm:$0xff] %v5404_v58  ;;  %5608 = vst [vmem:[#allocation33_spill] sm:$0xff] %v5406_v1  ;;  %v2194_v58 = vadd.f32 %v3982_v44, %v5213_v52  ;;  %v2193_v52 = vadd.f32 %v5316_v35, %v5222_v48 }
 0x1c0   : > { %v5408_v60 = vpop.f32.mrf.mxu1  ;;  %v5410_v11 = vpop.f32.mrf.mxu0 }
 0x1c1   : > { %5609 = vst [vmem:[#allocation34_spill] sm:$0xff] %v5408_v60  ;;  %5610 = vst [vmem:[#allocation35_spill] sm:$0xff] %v5410_v11  ;;  %v2192_v11 = vadd.f32 %v2065_v51, %v5216_v2 }
 0x1c2   : > { %v5412_v33 = vpop.f32.mrf.mxu1  ;;  %v5414_v30 = vpop.f32.mrf.mxu0 }
 0x1c3   : > { %5611 = vst [vmem:[#allocation36_spill] sm:$0xff] %v5412_v33  ;;  %5612 = vst [vmem:[#allocation37_spill] sm:$0xff] %v5414_v30 }
 0x1c4   : > { %v5416_v32 = vpop.f32.mrf.mxu1  ;;  %v5418_v13 = vpop.f32.mrf.mxu0 }
 0x1c5   : > { %5613 = vst [vmem:[#allocation38_spill] sm:$0xff] %v5416_v32  ;;  %5614 = vst [vmem:[#allocation39_spill] sm:$0xff] %v5418_v13  ;;  %v2501_v32 = vadd.f32 %v5306_v37, %v2194_v58  ;;  %v2195_v13 = vadd.f32 %v5312_v27, %v5219_v41  ;;  %v2198_v37 = vadd.f32 %v5320_v7, %v5225_v18 }
 0x1c6   : > { %v5420_v29 = vpop.f32.mrf.mxu1  ;;  %v5422_v40 = vpop.f32.mrf.mxu0  ;;  %v2199_v18 = vadd.f32 %v5328_v49, %v5231_v42 }
 0x1c7   : > { %5615 = vst [vmem:[#allocation40_spill] sm:$0xff] %v5420_v29  ;;  %5616 = vst [vmem:[#allocation41_spill] sm:$0xff] %v5422_v40  ;;  %v2499_v40 = vadd.f32 %v5310_v5, %v2192_v11  ;;  %v2502_v41 = vadd.f32 %v5314_v36, %v2195_v13  ;;  %v2505_v13 = vadd.f32 %v5322_v4, %v2198_v37 }
 0x1c8   : > { %v5425_v1 = vpop.f32.mrf.mxu1  ;;  %v5427_v60 = vpop.f32.mrf.mxu0  ;;  %v2202_v4 = vadd.f32 %v5336_v20, %v5237_v43  ;;  %v2506_v42 = vadd.f32 %v5330_v24, %v2199_v18 }
 0x1c9   : > { %5617 = vst [vmem:[#allocation42_spill] sm:$0xff] %v5427_v60 }
 0x1ca   : > { %v5430_v33 = vpop.f32.mrf.mxu1  ;;  %v5432_v30 = vpop.f32.mrf.mxu0  ;;  %v2509_v37 = vadd.f32 %v5338_v56, %v2202_v4 }
 0x1cb   : > { %5618 = vst [vmem:[#allocation43_spill] sm:$0xff] %v5432_v30 }
 0x1cc   : > { %v4078_v29 = vpop.f32.mrf.mxu1  ;;  %v4126_v15 = vpop.f32.mrf.mxu0 }
 0x1cd   : > { %v2807_v44 = vadd.f32 %v4078_v29, %v2501_v32  ;;  %v2500_v32 = vadd.f32 %v5318_v45, %v2193_v52  ;;  %v2196_v29 = vadd.f32 %v5324_v53, %v5228_v3  ;;  %v2197_v3 = vadd.f32 %v5332_v28, %v5234_v10 }
 0x1ce   : > { %v2678_v2 = vpop.f32.mrf.mxu1  ;;  %v2984_v58 = vpop.f32.mrf.mxu0 }
 0x1cf   : > { %v3113_v11 = vadd.f32 %v4126_v15, %v2807_v44  ;;  %v2805_v51 = vadd.f32 %v2678_v2, %v2499_v40  ;;  %v2503_v7 = vadd.f32 %v5326_v57, %v2196_v29  ;;  %v2200_v57 = vadd.f32 %v5340_v0, %v5240_v54 }
 0x1d0   : > { %v4079_v5 = vpop.f32.mrf.mxu1  ;;  %v4127_v48 = vpop.f32.mrf.mxu0  ;;  %v2201_v29 = vadd.f32 %v5348_v16, %v5246_v34  ;;  %v2204_v34 = vadd.f32 %v5356_v50, %v5252_v9 }
 0x1d1   : > { %3145 = vst [vmem:[%s5445_s22 + $0x10] sm:$0xff] %v3113_v11  ;;  %v3111_v27 = vadd.f32 %v2984_v58, %v2805_v51  ;;  %v2808_v35 = vadd.f32 %v4079_v5, %v2502_v41  ;;  %v2203_v5 = vadd.f32 %v5344_v21, %v5243_v62  ;;  %v2206_v62 = vadd.f32 %v5352_v46, %v5249_v61 }
 0x1d2   : > { %v2681_v30 = vpop.f32.mrf.mxu1  ;;  %v2987_v60 = vpop.f32.mrf.mxu0 }
 0x1d3   : > { %3143 = vst [vmem:[%s5445_s22] sm:$0xff] %v3111_v27  ;;  %v3114_v40 = vadd.f32 %v4127_v48, %v2808_v35  ;;  %v2806_v15 = vadd.f32 %v2681_v30, %v2500_v32  ;;  %v2507_v32 = vadd.f32 %v5342_v31, %v2200_v57  ;;  %v2510_v18 = vadd.f32 %v5346_v38, %v2203_v5 }
 0x1d4   : > { %v4082_v36 = vpop.f32.mrf.mxu1  ;;  %v4130_v45 = vpop.f32.mrf.mxu0 }
 0x1d5   : > { %3146 = vst [vmem:[%s5445_s22 + $0x18] sm:$0xff] %v3114_v40  ;;  %v3112_v53 = vadd.f32 %v2987_v60, %v2806_v15  ;;  %v2811_v52 = vadd.f32 %v4082_v36, %v2505_v13  ;;  %v2504_v60 = vadd.f32 %v5334_v17, %v2197_v3  ;;  %v2513_v3 = vadd.f32 %v5354_v22, %v2206_v62  ;;  %v5625_v62 = vld [vmem:[#allocation22_spill] sm:$0xff] }
 0x1d6   : > { %v2694_v44 = vpop.f32.mrf.mxu1  ;;  %v3000_v2 = vpop.f32.mrf.mxu0 }
 0x1d7   : > { %3144 = vst [vmem:[%s5445_s22 + $0x8] sm:$0xff] %v3112_v53  ;;  %v3175_v30 = vadd.f32 %v3112_v53, %v3111_v27  ;;  %v3117_v49 = vadd.f32 %v4130_v45, %v2811_v52  ;;  %v2809_v58 = vadd.f32 %v2694_v44, %v2503_v7  ;;  %v2508_v45 = vadd.f32 %v5350_v59, %v2201_v29 }
 0x1d8   : > { %v4083_v10 = vpop.f32.mrf.mxu1  ;;  %v4131_v28 = vpop.f32.mrf.mxu0  ;;  %v2207_v52 = vadd.f32 %v5360_v63, %v5255_v25  ;;  %v2511_v44 = vadd.f32 %v5358_v6, %v2204_v34  ;;  %v2210_v25 = vadd.f32 %v5368_v26, %v5261_v14 }
 0x1d9   : > { %v3176_v41 = vadd.f32 %v3175_v30, %v3113_v11  ;;  %3149 = vst [vmem:[%s5445_s22 + $0x30] sm:$0xff] %v3117_v49  ;;  %v3115_v43 = vadd.f32 %v3000_v2, %v2809_v58  ;;  %v2812_v20 = vadd.f32 %v4083_v10, %v2506_v42  ;;  %v2205_v42 = vadd.f32 %v5364_v55, %v5258_v12 }
 0x1da   : > { %v2697_v24 = vpop.f32.mrf.mxu1  ;;  %v3003_v51 = vpop.f32.mrf.mxu0  ;;  %v2514_v57 = vadd.f32 %v5362_v39, %v2207_v52  ;;  %v2208_v12 = vadd.f32 %v5372_v47, %v5264_v23 }
 0x1db   : > { %3147 = vst [vmem:[%s5445_s22 + $0x20] sm:$0xff] %v3115_v43  ;;  %v3177_v48 = vadd.f32 %v3176_v41, %v3114_v40  ;;  %v3118_v54 = vadd.f32 %v4131_v28, %v2812_v20  ;;  %v2810_v0 = vadd.f32 %v2697_v24, %v2504_v60  ;;  %v2512_v41 = vadd.f32 %v5366_v19, %v2205_v42  ;;  %v5619_v24 = vld [vmem:[#allocation3_spill] sm:$0xff]  ;;  %v5632_v42 = vld [vmem:[#allocation26_spill] sm:$0xff] }
 0x1dc   : > { %v4086_v17 = vpop.f32.mrf.mxu1  ;;  %v4134_v11 = vpop.f32.mrf.mxu0  ;;  %v2517_v20 = vadd.f32 %v5370_v8, %v2210_v25 }
 0x1dd   : > { %v3178_v27 = vadd.f32 %v3177_v48, %v3115_v43  ;;  %3150 = vst [vmem:[%s5445_s22 + $0x38] sm:$0xff] %v3118_v54  ;;  %v3116_v56 = vadd.f32 %v3003_v51, %v2810_v0  ;;  %v2815_v35 = vadd.f32 %v4086_v17, %v2509_v37  ;;  %v5620_v51 = vld [vmem:[#allocation18_spill] sm:$0xff]  ;;  %v5622_v17 = vld [vmem:[#allocation4_spill] sm:$0xff] }
 0x1de   : > { %v2710_v21 = vpop.f32.mrf.mxu1  ;;  %v3016_v13 = vpop.f32.mrf.mxu0  ;;  %v2211_v5 = vadd.f32 %v5620_v51, %v5619_v24 }
 0x1df   : > { %3148 = vst [vmem:[%s5445_s22 + $0x28] sm:$0xff] %v3116_v56  ;;  %v3179_v31 = vadd.f32 %v3178_v27, %v3116_v56  ;;  %v3121_v40 = vadd.f32 %v4134_v11, %v2815_v35  ;;  %v2813_v15 = vadd.f32 %v2710_v21, %v2507_v32  ;;  %v5623_v11 = vld [vmem:[#allocation20_spill] sm:$0xff]  ;;  %v5624_v35 = vld [vmem:[#allocation5_spill] sm:$0xff] }
 0x1e0   : > { %v4087_v16 = vpop.f32.mrf.mxu1  ;;  %v4135_v36 = vpop.f32.mrf.mxu0  ;;  %v2209_v29 = vadd.f32 %v5623_v11, %v5622_v17  ;;  %v2214_v21 = vadd.f32 %v5625_v62, %v5624_v35 }
 0x1e1   : > { %v3180_v7 = vadd.f32 %v3179_v31, %v3117_v49  ;;  %3153 = vst [vmem:[%s5445_s22 + $0x50] sm:$0xff] %v3121_v40  ;;  %v3119_v61 = vadd.f32 %v3016_v13, %v2813_v15  ;;  %v2816_v46 = vadd.f32 %v4087_v16, %v2510_v18  ;;  %v5626_v31 = vld [vmem:[#allocation19_spill] sm:$0xff] }
 0x1e2   : > { %v2713_v38 = vpop.f32.mrf.mxu1  ;;  %v3019_v53 = vpop.f32.mrf.mxu0 }
 0x1e3   : > { %3151 = vst [vmem:[%s5445_s22 + $0x40] sm:$0xff] %v3119_v61  ;;  %v3181_v4 = vadd.f32 %v3180_v7, %v3118_v54  ;;  %v3122_v9 = vadd.f32 %v4135_v36, %v2816_v46  ;;  %v2814_v50 = vadd.f32 %v2713_v38, %v2508_v45  ;;  %v5621_v54 = vld [vmem:[#allocation17_spill] sm:$0xff]  ;;  %v5627_v36 = vld [vmem:[#allocation6_spill] sm:$0xff]  ;;  %v5628_v45 = vld [vmem:[#allocation24_spill] sm:$0xff] }
 0x1e4   : > { %v4090_v59 = vpop.f32.mrf.mxu1  ;;  %v4138_v2 = vpop.f32.mrf.mxu0  ;;  %v2515_v0 = vadd.f32 %v5621_v54, %v2208_v12  ;;  %v2212_v7 = vadd.f32 %v5628_v45, %v5627_v36 }
 0x1e5   : > { %v3182_v30 = vadd.f32 %v3181_v4, %v3119_v61  ;;  %3154 = vst [vmem:[%s5445_s22 + $0x58] sm:$0xff] %v3122_v9  ;;  %v3120_v22 = vadd.f32 %v3019_v53, %v2814_v50  ;;  %v2819_v49 = vadd.f32 %v4090_v59, %v2513_v3  ;;  %v5629_v3 = vld [vmem:[#allocation21_spill] sm:$0xff] }
 0x1e6   : > { %v2726_v63 = vpop.f32.mrf.mxu1  ;;  %v3032_v58 = vpop.f32.mrf.mxu0  ;;  %v2516_v38 = vadd.f32 %v5629_v3, %v2209_v29 }
 0x1e7   : > { %3152 = vst [vmem:[%s5445_s22 + $0x48] sm:$0xff] %v3120_v22  ;;  %v3183_v6 = vadd.f32 %v3182_v30, %v3120_v22  ;;  %v3125_v10 = vadd.f32 %v4138_v2, %v2819_v49  ;;  %v2817_v28 = vadd.f32 %v2726_v63, %v2511_v44  ;;  %v5631_v2 = vld [vmem:[#allocation7_spill] sm:$0xff]  ;;  %v5633_v63 = vld [vmem:[#allocation25_spill] sm:$0xff] }
 0x1e8   : > { %v4091_v55 = vpop.f32.mrf.mxu1  ;;  %v4139_v60 = vpop.f32.mrf.mxu0  ;;  %v2215_v30 = vadd.f32 %v5632_v42, %v5631_v2 }
 0x1e9   : > { %v3184_v43 = vadd.f32 %v3183_v6, %v3121_v40  ;;  %3157 = vst [vmem:[%s5445_s22 + $0x70] sm:$0xff] %v3125_v10  ;;  %v3123_v14 = vadd.f32 %v3032_v58, %v2817_v28  ;;  %v2820_v26 = vadd.f32 %v4091_v55, %v2514_v57  ;;  %v2518_v40 = vadd.f32 %v5626_v31, %v2211_v5  ;;  %v5635_v28 = vld [vmem:[#allocation28_spill] sm:$0xff] }
 0x1ea   : > { %v2729_v39 = vpop.f32.mrf.mxu1  ;;  %v3035_v37 = vpop.f32.mrf.mxu0  ;;  %v2519_v58 = vadd.f32 %v5633_v63, %v2212_v7  ;;  %v5646_v7 = vld [vmem:[#allocation12_spill] sm:$0xff] }
 0x1eb   : > { %3155 = vst [vmem:[%s5445_s22 + $0x60] sm:$0xff] %v3123_v14  ;;  %v3185_v48 = vadd.f32 %v3184_v43, %v3122_v9  ;;  %v3126_v23 = vadd.f32 %v4139_v60, %v2820_v26  ;;  %v2818_v47 = vadd.f32 %v2729_v39, %v2512_v41  ;;  %v5630_v9 = vld [vmem:[#allocation23_spill] sm:$0xff]  ;;  %v5636_v43 = vld [vmem:[#allocation9_spill] sm:$0xff] }
 0x1ec   : > { %v4094_v19 = vpop.f32.mrf.mxu1  ;;  %v4142_v32 = vpop.f32.mrf.mxu0  ;;  %v2521_v50 = vadd.f32 %v5630_v9, %v2214_v21  ;;  %v5643_v21 = vld [vmem:[#allocation11_spill] sm:$0xff] }
 0x1ed   : > { %v3186_v27 = vadd.f32 %v3185_v48, %v3123_v14  ;;  %3158 = vst [vmem:[%s5445_s22 + $0x78] sm:$0xff] %v3126_v23  ;;  %v3124_v8 = vadd.f32 %v3035_v37, %v2818_v47  ;;  %v2823_v56 = vadd.f32 %v4094_v19, %v2517_v20  ;;  %v5637_v14 = vld [vmem:[#allocation30_spill] sm:$0xff]  ;;  %v5638_v37 = vld [vmem:[#allocation27_spill] sm:$0xff]  ;;  %v5640_v47 = vld [vmem:[#allocation32_spill] sm:$0xff] }
 0x1ee   : > { %v2742_v13 = vpop.f32.mrf.mxu1  ;;  %v3048_v18 = vpop.f32.mrf.mxu0  ;;  %v2218_v26 = vadd.f32 %v5637_v14, %v5636_v43  ;;  %v2522_v24 = vadd.f32 %v5638_v37, %v2215_v30 }
 0x1ef   : > { %3156 = vst [vmem:[%s5445_s22 + $0x68] sm:$0xff] %v3124_v8  ;;  %v3187_v15 = vadd.f32 %v3186_v27, %v3124_v8  ;;  %v3129_v34 = vadd.f32 %v4142_v32, %v2823_v56  ;;  %v2821_v16 = vadd.f32 %v2742_v13, %v2515_v0  ;;  %v5641_v32 = vld [vmem:[#allocation29_spill] sm:$0xff]  ;;  %v5642_v8 = vld [vmem:[#allocation31_spill] sm:$0xff]  ;;  %v5644_v13 = vld [vmem:[#allocation34_spill] sm:$0xff] }
 0x1f0   : > { %v4095_v61 = vpop.f32.mrf.mxu1  ;;  %v4143_v46 = vpop.f32.mrf.mxu0  ;;  %v2525_v56 = vadd.f32 %v5642_v8, %v2218_v26  ;;  %v5655_v26 = vld [vmem:[#allocation15_spill] sm:$0xff] }
 0x1f1   : > { %v3188_v53 = vadd.f32 %v3187_v15, %v3125_v10  ;;  %3161 = vst [vmem:[%s5445_s22 + $0x90] sm:$0xff] %v3129_v34  ;;  %v3127_v52 = vadd.f32 %v3048_v18, %v2821_v16  ;;  %v2824_v4 = vadd.f32 %v4095_v61, %v2518_v40  ;;  %v5634_v10 = vld [vmem:[#allocation8_spill] sm:$0xff]  ;;  %v2219_v18 = vadd.f32 %v5644_v13, %v5643_v21  ;;  %v5645_v16 = vld [vmem:[#allocation33_spill] sm:$0xff]  ;;  %v5659_v21 = vld [vmem:[#allocation43_spill] sm:$0xff] }
 0x1f2   : > { %v2745_v44 = vpop.f32.mrf.mxu1  ;;  %v3051_v59 = vpop.f32.mrf.mxu0  ;;  %v2213_v12 = vadd.f32 %v5635_v28, %v5634_v10  ;;  %v5647_v61 = vld [vmem:[#allocation36_spill] sm:$0xff] }
 0x1f3   : > { %3159 = vst [vmem:[%s5445_s22 + $0x80] sm:$0xff] %v3127_v52  ;;  %v3189_v22 = vadd.f32 %v3188_v53, %v3126_v23  ;;  %v3130_v49 = vadd.f32 %v4143_v46, %v2824_v4  ;;  %v2822_v25 = vadd.f32 %v2745_v44, %v2516_v38  ;;  %v5639_v23 = vld [vmem:[#allocation10_spill] sm:$0xff]  ;;  %v2217_v46 = vadd.f32 %v5647_v61, %v5646_v7 }
 0x1f4   : > { %v4098_v57 = vpop.f32.mrf.mxu1  ;;  %v4146_v6 = vpop.f32.mrf.mxu0  ;;  %v2216_v54 = vadd.f32 %v5640_v47, %v5639_v23  ;;  %v2520_v17 = vadd.f32 %v5641_v32, %v2213_v12  ;;  %v5649_v4 = vld [vmem:[#allocation38_spill] sm:$0xff]  ;;  %v5657_v47 = vld [vmem:[#allocation16_spill] sm:$0xff] }
 0x1f5   : > { %v3190_v55 = vadd.f32 %v3189_v22, %v3127_v52  ;;  %3162 = vst [vmem:[%s5445_s22 + $0x98] sm:$0xff] %v3130_v49  ;;  %v3128_v60 = vadd.f32 %v3051_v59, %v2822_v25  ;;  %v2827_v41 = vadd.f32 %v4098_v57, %v2521_v50  ;;  %v5648_v52 = vld [vmem:[#allocation13_spill] sm:$0xff]  ;;  %v5650_v59 = vld [vmem:[#allocation35_spill] sm:$0xff]  ;;  %v5652_v25 = vld [vmem:[#allocation40_spill] sm:$0xff] }
 0x1f6   : > { %v2758_v20 = vpop.f32.mrf.mxu1  ;;  %v3064_v39 = vpop.f32.mrf.mxu0  ;;  %v2523_v36 = vadd.f32 %v5645_v16, %v2216_v54  ;;  %v2222_v9 = vadd.f32 %v5649_v4, %v5648_v52  ;;  %v2526_v2 = vadd.f32 %v5650_v59, %v2219_v18  ;;  %v2221_v54 = vadd.f32 %v5430_v33, %v5657_v47 }
 0x1f7   : > { %3160 = vst [vmem:[%s5445_s22 + $0x88] sm:$0xff] %v3128_v60  ;;  %v3191_v51 = vadd.f32 %v3190_v55, %v3128_v60  ;;  %v3133_v5 = vadd.f32 %v4146_v6, %v2827_v41  ;;  %v2825_v48 = vadd.f32 %v2758_v20, %v2519_v58  ;;  %v5653_v6 = vld [vmem:[#allocation37_spill] sm:$0xff]  ;;  %v5654_v60 = vld [vmem:[#allocation39_spill] sm:$0xff]  ;;  %v2223_v20 = vadd.f32 %v5425_v1, %v5655_v26 }
 0x1f8   : > { %v4099_v0 = vpop.f32.mrf.mxu1  ;;  %v4147_v19 = vpop.f32.mrf.mxu0  ;;  %v2524_v10 = vadd.f32 %v5653_v6, %v2217_v46  ;;  %v2529_v41 = vadd.f32 %v5654_v60, %v2222_v9  ;;  %v2528_v33 = vadd.f32 %v5659_v21, %v2221_v54 }
 0x1f9   : > { %v3192_v11 = vadd.f32 %v3191_v51, %v3129_v34  ;;  %3165 = vst [vmem:[%s5445_s22 + $0xb0] sm:$0xff] %v3133_v5  ;;  %v3131_v29 = vadd.f32 %v3064_v39, %v2825_v48  ;;  %v2828_v27 = vadd.f32 %v4099_v0, %v2522_v24  ;;  %v5656_v51 = vld [vmem:[#allocation41_spill] sm:$0xff] }
 0x1fa   : > { %v2761_v35 = vpop.f32.mrf.mxu1  ;;  %v3067_v62 = vpop.f32.mrf.mxu0 }
 0x1fb   : > { %3163 = vst [vmem:[%s5445_s22 + $0xa0] sm:$0xff] %v3131_v29  ;;  %v3193_v31 = vadd.f32 %v3192_v11, %v3130_v49  ;;  %v3134_v40 = vadd.f32 %v4147_v19, %v2828_v27  ;;  %v2826_v15 = vadd.f32 %v2761_v35, %v2520_v17  ;;  %v5651_v49 = vld [vmem:[#allocation14_spill] sm:$0xff] }
 0x1fc   : > { %v4102_v45 = vpop.f32.mrf.mxu1  ;;  %v4150_v34 = vpop.f32.mrf.mxu0  ;;  %v2220_v63 = vadd.f32 %v5652_v25, %v5651_v49  ;;  %v5658_v11 = vld [vmem:[#allocation42_spill] sm:$0xff] }
 0x1fd   : > { %v3194_v3 = vadd.f32 %v3193_v31, %v3131_v29  ;;  %3166 = vst [vmem:[%s5445_s22 + $0xb8] sm:$0xff] %v3134_v40  ;;  %v3132_v38 = vadd.f32 %v3067_v62, %v2826_v15  ;;  %v2831_v53 = vadd.f32 %v4102_v45, %v2525_v56  ;;  %v2530_v29 = vadd.f32 %v5658_v11, %v2223_v20 }
 0x1fe   : > { %v2774_v50 = vpop.f32.mrf.mxu1  ;;  %v3080_v44 = vpop.f32.mrf.mxu0  ;;  %v2527_v48 = vadd.f32 %v5656_v51, %v2220_v63 }
 0x1ff   : > { %3164 = vst [vmem:[%s5445_s22 + $0xa8] sm:$0xff] %v3132_v38  ;;  %v3195_v42 = vadd.f32 %v3194_v3, %v3132_v38  ;;  %v3137_v30 = vadd.f32 %v4150_v34, %v2831_v53  ;;  %v2829_v22 = vadd.f32 %v2774_v50, %v2523_v36 }
 0x200   : > { %v4103_v58 = vpop.f32.mrf.mxu1  ;;  %v4151_v57 = vpop.f32.mrf.mxu0 }
 0x201   : > { %v3196_v28 = vadd.f32 %v3195_v42, %v3133_v5  ;;  %3169 = vst [vmem:[%s5445_s22 + $0xd0] sm:$0xff] %v3137_v30  ;;  %v3135_v12 = vadd.f32 %v3080_v44, %v2829_v22  ;;  %v2832_v55 = vadd.f32 %v4103_v58, %v2526_v2 }
 0x202   : > { %v2777_v43 = vpop.f32.mrf.mxu1  ;;  %v3083_v14 = vpop.f32.mrf.mxu0 }
 0x203   : > { %3167 = vst [vmem:[%s5445_s22 + $0xc0] sm:$0xff] %v3135_v12  ;;  %v3197_v39 = vadd.f32 %v3196_v28, %v3134_v40  ;;  %v3138_v37 = vadd.f32 %v4151_v57, %v2832_v55  ;;  %v2830_v24 = vadd.f32 %v2777_v43, %v2524_v10 }
 0x204   : > { %v4106_v23 = vpop.f32.mrf.mxu1  ;;  %v4154_v5 = vpop.f32.mrf.mxu0 }
 0x205   : > { %v3198_v0 = vadd.f32 %v3197_v39, %v3135_v12  ;;  %3170 = vst [vmem:[%s5445_s22 + $0xd8] sm:$0xff] %v3138_v37  ;;  %v3136_v19 = vadd.f32 %v3083_v14, %v2830_v24  ;;  %v2835_v32 = vadd.f32 %v4106_v23, %v2529_v41 }
 0x206   : > { %v2790_v17 = vpop.f32.mrf.mxu1  ;;  %v3096_v1 = vpop.f32.mrf.mxu0 }
 0x207   : > { %3168 = vst [vmem:[%s5445_s22 + $0xc8] sm:$0xff] %v3136_v19  ;;  %v3199_v27 = vadd.f32 %v3198_v0, %v3136_v19  ;;  %v3141_v8 = vadd.f32 %v4154_v5, %v2835_v32  ;;  %v2833_v56 = vadd.f32 %v2790_v17, %v2527_v48 }
 0x208   : > { %v4107_v35 = vpop.f32.mrf.mxu1  ;;  %v4155_v62 = vpop.f32.mrf.mxu0 }
 0x209   : > { %v3200_v13 = vadd.f32 %v3199_v27, %v3137_v30  ;;  %3173 = vst [vmem:[%s5445_s22 + $0xf0] sm:$0xff] %v3141_v8  ;;  %v3139_v18 = vadd.f32 %v3096_v1, %v2833_v56  ;;  %v2836_v31 = vadd.f32 %v4107_v35, %v2530_v29 }
 0x20a   : > { %v2793_v40 = vpop.f32.mrf.mxu1  ;;  %v3099_v45 = vpop.f32.mrf.mxu0 }
 0x20b   : > { %3171 = vst [vmem:[%s5445_s22 + $0xe0] sm:$0xff] %v3139_v18  ;;  %v3201_v15 = vadd.f32 %v3200_v13, %v3138_v37  ;;  %v3142_v16 = vadd.f32 %v4155_v62, %v2836_v31  ;;  %v2834_v36 = vadd.f32 %v2793_v40, %v2528_v33 }
 0x20d   : > { %v3202_v34 = vadd.f32 %v3201_v15, %v3139_v18  ;;  %3174 = vst [vmem:[%s5445_s22 + $0xf8] sm:$0xff] %v3142_v16  ;;  %v3140_v7 = vadd.f32 %v3099_v45, %v2834_v36 }
 0x20f   : > { %3172 = vst [vmem:[%s5445_s22 + $0xe8] sm:$0xff] %v3140_v7  ;;  %v3203_v61 = vadd.f32 %v3202_v34, %v3140_v7 }
 0x211   : > { %v3204_v46 = vadd.f32 %v3203_v61, %v3141_v8 }
 0x213   : > { %v3205_v3 = vadd.f32 %v3204_v46, %v3142_v16 }
 0x215   : > { %v3206_v38 = vrot.slane %v3205_v3, 4 }
 0x217   : > { %v3207_v53 = vadd.f32 %v3206_v38, %v3205_v3 }
 0x219   : > { %v3208_v52 = vrot.slane %v3207_v53, 2 }
 0x21b   : > { %v3209_v4 = vadd.f32 %v3208_v52, %v3207_v53 }
 0x21d   : > { %v3210_v9 = vrot.slane %v3209_v4, 1 }
 0x21f   : > { %v3211_v50 = vadd.f32 %v3210_v9, %v3209_v4 }
 0x221   : > { %3212 = vst [vmem:[%s233_s29] sm:$0x1] %v3211_v50 }
 0x222 PF: > { %s16_s18 = sadd.s32 1, %s4260_s18  }
 0x223   : > { %p13_p4 = scmp.ge.s32.totalorder %s16_s18, 4  }
 0x225   :  { %15 = sbr.rel (!%p13_p4) target bundleno = 1 (0x1), region = 89 }

</bundles_post_ra>
